<compile_context>
chip_gen: v5e
topology: v5e:2x2
jax: 0.10.0
libtpu: 0.0.40
codegen_flags: <defaults>
</compile_context>

<pallas_src>
import functools

import jax
import jax.numpy as jnp
from jax.experimental import pallas as pl
from jax.experimental.pallas import tpu as pltpu

PREC = jax.lax.Precision.HIGHEST


def _gru_combine(gi, gh, h, H):
    """PyTorch nn.GRUCell gate math; gate order [r, z, n]."""
    i_r, i_z, i_n = gi[:, :H], gi[:, H:2 * H], gi[:, 2 * H:]
    h_r, h_z, h_n = gh[:, :H], gh[:, H:2 * H], gh[:, 2 * H:]
    r = jax.nn.sigmoid(i_r + h_r)
    z = jax.nn.sigmoid(i_z + h_z)
    n = jnp.tanh(i_n + r * h_n)
    return (1.0 - z) * n + z * h


def _gru_cell(x, h, w_ih, w_hh, b_ih, b_hh, H):
    """Reference-path GRU cell (concat form)."""
    gi = jnp.dot(x, w_ih, preferred_element_type=jnp.float32, precision=PREC) + b_ih
    gh = jnp.dot(h, w_hh, preferred_element_type=jnp.float32, precision=PREC) + b_hh
    return _gru_combine(gi, gh, h, H)


def decoder_kernel(emb_ref, ctx_ref, mask3_ref, pre_ref, h0_ref, att0_ref,
                   wih0e_ref, wih0c_ref, whh0_ref, bih0_ref, bhh0_ref,
                   wih1_ref, whh1_ref, bih1_ref, bhh1_ref,
                   wq_ref, wv_ref,
                   wre_ref, wro_ref, wrc_ref, br_ref,
                   gout_ref, hout_ref, attn_ref, ctxout_ref,
                   h_scr, ctx_scr, *, H, T, TT, pool):
    blk = pl.program_id(0)
    last_blk = pl.num_programs(0) - 1

    @pl.when(blk == 0)
    def _init():
        h_scr[...] = h0_ref[...]
        ctx_scr[...] = att0_ref[...]

    # ---- per-block hoisted loads (amortized over TT inner steps) ----
    ctx = ctx_ref[...]                       # (B, S, E)
    pre = pre_ref[...]                       # (B, S, A)   precompute (+bias)
    mask3 = mask3_ref[...]                   # (B, 1, S)
    inv_mask3 = 1.0 - mask3
    neg3 = mask3 * (-1.0e6)
    wv_b = wv_ref[...]                       # (B, 1, A)

    wih0e = wih0e_ref[...]
    wih0c = wih0c_ref[...]
    whh0 = whh0_ref[...]
    bih0 = bih0_ref[...]
    bhh0 = bhh0_ref[...]
    wih1 = wih1_ref[...]
    whh1 = whh1_ref[...]
    bih1 = bih1_ref[...]
    bhh1 = bhh1_ref[...]
    wq = wq_ref[...]
    wre = wre_ref[...]
    wro = wro_ref[...]
    wrc = wrc_ref[...]
    br = br_ref[...]

    B = ctx.shape[0]
    S = ctx.shape[1]
    M = H // pool

    h0 = h_scr[0]
    h1 = h_scr[1]
    cur = ctx_scr[...]
    score0 = jnp.zeros((B, 1, S), jnp.float32)

    # number of real decode steps in this block (T may not be a TT multiple)
    n_steps = jnp.minimum(TT, T - blk * TT)

    def step(i, carry):
        h0, h1, cur, _ = carry
        emb_t = emb_ref[i]                                           # (B, W)

        # ---- StackedGRU layer 0 : input = [emb_t, cur_context] (split dots)
        gi0 = (jnp.dot(emb_t, wih0e, preferred_element_type=jnp.float32,
                       precision=PREC)
               + jnp.dot(cur, wih0c, preferred_element_type=jnp.float32,
                         precision=PREC)
               + bih0)
        gh0 = jnp.dot(h0, whh0, preferred_element_type=jnp.float32,
                      precision=PREC) + bhh0
        new0 = _gru_combine(gi0, gh0, h0, H)

        # ---- StackedGRU layer 1 (eval-mode dropout between layers = identity)
        gi1 = jnp.dot(new0, wih1, preferred_element_type=jnp.float32,
                      precision=PREC) + bih1
        gh1 = jnp.dot(h1, whh1, preferred_element_type=jnp.float32,
                      precision=PREC) + bhh1
        new1 = _gru_combine(gi1, gh1, h1, H)
        output = new1                                                # (B, H)

        # ---- ConcatAttention (A- and S-reductions on the MXU)
        target = jnp.dot(output, wq, preferred_element_type=jnp.float32,
                         precision=PREC)                             # (B, A)
        tmp = jnp.tanh(pre + target[:, None, :])                     # (B, S, A)
        energy = jnp.einsum('bqa,bsa->bqs', wv_b, tmp,
                            preferred_element_type=jnp.float32,
                            precision=PREC)                          # (B, 1, S)
        energy = energy * inv_mask3 + neg3
        energy = energy - jnp.max(energy, axis=-1, keepdims=True)
        e = jnp.exp(energy)
        denom = jnp.sum(e, axis=-1, keepdims=True)
        score = e * pl.reciprocal(denom, approx=True)                # (B, 1, S)
        wctx = jnp.sum(
            jnp.einsum('bqs,bse->bqe', score, ctx,
                       preferred_element_type=jnp.float32, precision=PREC),
            axis=1)                                                  # (B, E)

        # ---- readout (split dots, columns pre-permuted) + maxout as slices
        readout = (jnp.dot(emb_t, wre, preferred_element_type=jnp.float32,
                           precision=PREC)
                   + jnp.dot(output, wro, preferred_element_type=jnp.float32,
                             precision=PREC)
                   + jnp.dot(wctx, wrc, preferred_element_type=jnp.float32,
                             precision=PREC)
                   + br)
        mo = readout[:, :M]
        for p in range(1, pool):
            mo = jnp.maximum(mo, readout[:, p * M:(p + 1) * M])      # (B, M)
        gout_ref[i] = mo

        return new0, new1, wctx, score

    h0, h1, cur, score = jax.lax.fori_loop(0, n_steps, step,
                                           (h0, h1, cur, score0))

    # carry recurrent state to the next grid block
    h_scr[0] = h0
    h_scr[1] = h1
    ctx_scr[...] = cur

    # final-state outputs only on the last grid step (saves per-step stores)
    @pl.when(blk == last_blk)
    def _fin():
        hout_ref[0] = h0
        hout_ref[1] = h1
        attn_ref[...] = score
        ctxout_ref[...] = cur


def _const_spec(shape):
    n = len(shape)
    return pl.BlockSpec(shape, lambda t, _n=n: (0,) * _n)


def decoder_forward(params, input_ids, hidden, context, src_pad_mask, init_att,
                    *, pool, tt=16):
    T, B = input_ids.shape
    L, _, H = hidden.shape
    S, _, E = context.shape
    W = params['embedding'].shape[1]
    A = params['wq'].shape[1]
    M = H // pool
    assert L == 2

    # ---- wrapper glue (cheap XLA ops) ----
    emb = jnp.take(params['embedding'], input_ids, axis=0)      # (T, B, W)
    ctx_bse = jnp.transpose(context, (1, 0, 2))                 # (B, S, E)

    # pad batch to a sublane multiple (8) and time to a multiple of TT
    B_pad = ((B + 7) // 8) * 8
    TT = max(1, min(T, tt))
    T_pad = ((T + TT - 1) // TT) * TT
    db = B_pad - B

    emb_p = jnp.pad(emb, ((0, T_pad - T), (0, db), (0, 0)))
    hidden_p = jnp.pad(hidden, ((0, 0), (0, db), (0, 0)))
    ctx_p = jnp.pad(ctx_bse, ((0, db), (0, 0), (0, 0)))
    mask_p = jnp.pad(src_pad_mask, ((0, db), (0, 0)))
    att_p = jnp.pad(init_att, ((0, db), (0, 0)))

    # hoist the attention precompute out of the kernel
    pre = jnp.einsum('bse,ea->bsa', ctx_p, params['wpre'],
                     precision=PREC) + params['bpre'][None]     # (B_pad, S, A)
    mask3 = mask_p[:, None, :]                                  # (B_pad, 1, S)
    wv_b = jnp.broadcast_to(params['wv'][None], (B_pad, 1, A))  # (B_pad, 1, A)

    # split the concat-matmuls so the kernel never concatenates along lanes
    wih0e, wih0c = params['wih0'][:W], params['wih0'][W:]
    # permute readout columns so maxout pool groups become contiguous slices
    perm = jnp.arange(H).reshape(M, pool).T.reshape(-1)
    wr_perm = params['wr'][:, perm]
    br_perm = params['br'][:, perm]
    wre, wro, wrc = wr_perm[:W], wr_perm[W:W + H], wr_perm[W + H:]

    kernel = functools.partial(decoder_kernel, H=H, T=T, TT=TT, pool=pool)

    out_shapes = (
        jax.ShapeDtypeStruct((T_pad, B_pad, M), jnp.float32),   # g_outputs
        jax.ShapeDtypeStruct((L, B_pad, H), jnp.float32),       # hidden
        jax.ShapeDtypeStruct((B_pad, 1, S), jnp.float32),       # attn (last)
        jax.ShapeDtypeStruct((B_pad, E), jnp.float32),          # cur_context
    )

    in_specs = [
        pl.BlockSpec((TT, B_pad, W), lambda t: (t, 0, 0)),      # emb, TT steps
        _const_spec((B_pad, S, E)),                             # context
        _const_spec((B_pad, 1, S)),                             # pad mask
        _const_spec((B_pad, S, A)),                             # precompute
        _const_spec((L, B_pad, H)),                             # init hidden
        _const_spec((B_pad, E)),                                # init_att
        _const_spec(wih0e.shape), _const_spec(wih0c.shape),
        _const_spec(params['whh0'].shape),
        _const_spec(params['bih0'].shape), _const_spec(params['bhh0'].shape),
        _const_spec(params['wih1'].shape), _const_spec(params['whh1'].shape),
        _const_spec(params['bih1'].shape), _const_spec(params['bhh1'].shape),
        _const_spec(params['wq'].shape),
        _const_spec((B_pad, 1, A)),                             # wv (broadcast)
        _const_spec(wre.shape), _const_spec(wro.shape), _const_spec(wrc.shape),
        _const_spec(br_perm.shape),
    ]

    out_specs = (
        pl.BlockSpec((TT, B_pad, M), lambda t: (t, 0, 0)),
        _const_spec((L, B_pad, H)),
        _const_spec((B_pad, 1, S)),
        _const_spec((B_pad, E)),
    )

    scratch_shapes = [
        pltpu.VMEM((L, B_pad, H), jnp.float32),   # recurrent hidden state
        pltpu.VMEM((B_pad, E), jnp.float32),      # current attention context
    ]

    g_out, h_out, attn3, ctx_out = pl.pallas_call(
        kernel,
        out_shape=out_shapes,
        grid=(T_pad // TT,),
        in_specs=in_specs,
        out_specs=out_specs,
        scratch_shapes=scratch_shapes,
        compiler_params=pltpu.CompilerParams(
            dimension_semantics=("arbitrary",)),
    )(emb_p, ctx_p, mask3, pre, hidden_p, att_p,
      wih0e, wih0c, params['whh0'], params['bih0'], params['bhh0'],
      params['wih1'], params['whh1'], params['bih1'], params['bhh1'],
      params['wq'], wv_b, wre, wro, wrc, br_perm)

    return (g_out[:T, :B], h_out[:, :B], attn3[:B, 0, :], ctx_out[:B])


# ---------------------------------------------------------------------------
# pure-JAX reference (same math, same parameter layout) used for a sanity check
# ---------------------------------------------------------------------------
def reference_forward(params, input_ids, hidden, context, mask, init_att, *, pool):
    emb = jnp.take(params['embedding'], input_ids, axis=0)
    ctx = jnp.transpose(context, (1, 0, 2))
    H = hidden.shape[-1]
    pre = jnp.einsum('bse,ea->bsa', ctx, params['wpre'],
                     precision=PREC) + params['bpre'][None]
    h = hidden
    cur = init_att
    outs = []
    score = None
    for t in range(input_ids.shape[0]):
        emb_t = emb[t]
        x = jnp.concatenate([emb_t, cur], axis=1)
        new0 = _gru_cell(x, h[0], params['wih0'], params['whh0'],
                         params['bih0'], params['bhh0'], H)
        new1 = _gru_cell(new0, h[1], params['wih1'], params['whh1'],
                         params['bih1'], params['bhh1'], H)
        h = jnp.stack([new0, new1])
        out = new1
        target = jnp.dot(out, params['wq'], precision=PREC)
        tmp = jnp.tanh(pre + target[:, None, :])
        energy = jnp.sum(tmp * params['wv'][None], axis=-1)
        energy = energy * (1.0 - mask) + mask * (-1000000.0)
        score = jax.nn.softmax(energy, axis=-1)
        cur = jnp.sum(score[:, :, None] * ctx, axis=1)
        ro = jnp.dot(jnp.concatenate([emb_t, out, cur], axis=1),
                     params['wr'], precision=PREC) + params['br']
        outs.append(jnp.max(ro.reshape(ro.shape[0], H // pool, pool), axis=-1))
    return jnp.stack(outs), h, score, cur


if __name__ == "__main__":
    # small, Decoder-consistent config
    vocab = 20
    word_vec = 16      # opt.word_vec_size
    enc_rnn = 32       # opt.enc_rnn_size
    dec_rnn = 32       # opt.dec_rnn_size (H)
    att_vec = 32       # opt.att_vec_size
    layers = 2         # opt.layers
    pool = 2           # opt.maxout_pool_size
    B, T, S = 4, 6, 8  # batch, target len, source len
    in0 = word_vec + enc_rnn            # input_feed=True
    ro_in = enc_rnn + dec_rnn + word_vec

    key = jax.random.PRNGKey(0)
    ks = jax.random.split(key, 24)

    def w(k, shape, scale=0.1):
        return (scale * jax.random.normal(k, shape)).astype(jnp.float32)

    embedding = w(ks[0], (vocab, word_vec))
    embedding = embedding.at[0].set(0.0)    # padding_idx = PAD = 0

    params = {
        'embedding': embedding,
        # StackedGRU layer 0 (input = word_vec + enc_rnn)
        'wih0': w(ks[1], (in0, 3 * dec_rnn)),
        'whh0': w(ks[2], (dec_rnn, 3 * dec_rnn)),
        'bih0': w(ks[3], (1, 3 * dec_rnn)),
        'bhh0': w(ks[4], (1, 3 * dec_rnn)),
        # StackedGRU layer 1 (input = dec_rnn)
        'wih1': w(ks[5], (dec_rnn, 3 * dec_rnn)),
        'whh1': w(ks[6], (dec_rnn, 3 * dec_rnn)),
        'bih1': w(ks[7], (1, 3 * dec_rnn)),
        'bhh1': w(ks[8], (1, 3 * dec_rnn)),
        # ConcatAttention
        'wpre': w(ks[9], (enc_rnn, att_vec)),
        'bpre': w(ks[10], (1, att_vec)),
        'wq': w(ks[11], (dec_rnn, att_vec)),
        'wv': w(ks[12], (1, att_vec)),
        # readout
        'wr': w(ks[13], (ro_in, dec_rnn)),
        'br': w(ks[14], (1, dec_rnn)),
    }

    input_ids = jax.random.randint(ks[15], (T, B), 1, vocab).astype(jnp.int32)
    hidden = w(ks[16], (layers, B, dec_rnn), scale=0.5)
    context = w(ks[17], (S, B, enc_rnn), scale=0.5)
    init_att = w(ks[18], (B, enc_rnn), scale=0.5)
    # mark the last two source positions of half the batch as padding
    src_pad_mask = jnp.zeros((B, S), jnp.float32).at[:2, -2:].set(1.0)

    g_out, h_out, attn_out, ctx_out = jax.block_until_ready(
        decoder_forward(params, input_ids, hidden, context, src_pad_mask,
                        init_att, pool=pool))

    g_ref, h_ref, attn_ref, ctx_ref = reference_forward(
        params, input_ids, hidden, context, src_pad_mask, init_att, pool=pool)

    # approx reciprocal in the in-kernel softmax -> slightly looser tolerance
    assert jnp.allclose(g_out, g_ref, atol=2e-3, rtol=2e-3)
    assert jnp.allclose(h_out, h_ref, atol=2e-3, rtol=2e-3)
    assert jnp.allclose(attn_out, attn_ref, atol=2e-3, rtol=2e-3)
    assert jnp.allclose(ctx_out, ctx_ref, atol=2e-3, rtol=2e-3)

    print("KERNEL_OK")
</pallas_src>

<mosaic_0001>
module attributes {stable_mosaic.version = 11 : i64} {
  func.func @decoder_kernel(%arg0: i32, %arg1: memref<6x8x16xf32, #tpu.memory_space<vmem>>, %arg2: memref<8x8x32xf32, #tpu.memory_space<vmem>>, %arg3: memref<8x1x8xf32, #tpu.memory_space<vmem>>, %arg4: memref<8x8x32xf32, #tpu.memory_space<vmem>>, %arg5: memref<2x8x32xf32, #tpu.memory_space<vmem>>, %arg6: memref<8x32xf32, #tpu.memory_space<vmem>>, %arg7: memref<16x96xf32, #tpu.memory_space<vmem>>, %arg8: memref<32x96xf32, #tpu.memory_space<vmem>>, %arg9: memref<32x96xf32, #tpu.memory_space<vmem>>, %arg10: memref<1x96xf32, #tpu.memory_space<vmem>>, %arg11: memref<1x96xf32, #tpu.memory_space<vmem>>, %arg12: memref<32x96xf32, #tpu.memory_space<vmem>>, %arg13: memref<32x96xf32, #tpu.memory_space<vmem>>, %arg14: memref<1x96xf32, #tpu.memory_space<vmem>>, %arg15: memref<1x96xf32, #tpu.memory_space<vmem>>, %arg16: memref<32x32xf32, #tpu.memory_space<vmem>>, %arg17: memref<8x1x32xf32, #tpu.memory_space<vmem>>, %arg18: memref<16x32xf32, #tpu.memory_space<vmem>>, %arg19: memref<32x32xf32, #tpu.memory_space<vmem>>, %arg20: memref<32x32xf32, #tpu.memory_space<vmem>>, %arg21: memref<1x32xf32, #tpu.memory_space<vmem>>, %arg22: memref<6x8x16xf32, #tpu.memory_space<vmem>>, %arg23: memref<2x8x32xf32, #tpu.memory_space<vmem>>, %arg24: memref<8x1x8xf32, #tpu.memory_space<vmem>>, %arg25: memref<8x32xf32, #tpu.memory_space<vmem>>, %arg26: memref<2x8x32xf32, #tpu.memory_space<vmem>>, %arg27: memref<8x32xf32, #tpu.memory_space<vmem>>) attributes {dimension_semantics = [#tpu.dimension_semantics<arbitrary>], iteration_bounds = array<i64: 1>, scalar_prefetch = 0 : i64, scratch_operands = 2 : i64, tpu.core_type = #tpu.core_type<tc>, window_params = [{transform_indices = @transform_0, window_bounds = array<i64: 6, 8, 16>}, {pipeline_mode = #tpu.pipeline_mode<synchronous>, transform_indices = @transform_1, window_bounds = array<i64: 8, 8, 32>}, {pipeline_mode = #tpu.pipeline_mode<synchronous>, transform_indices = @transform_2, window_bounds = array<i64: 8, 1, 8>}, {pipeline_mode = #tpu.pipeline_mode<synchronous>, transform_indices = @transform_3, window_bounds = array<i64: 8, 8, 32>}, {pipeline_mode = #tpu.pipeline_mode<synchronous>, transform_indices = @transform_4, window_bounds = array<i64: 2, 8, 32>}, {pipeline_mode = #tpu.pipeline_mode<synchronous>, transform_indices = @transform_5, window_bounds = array<i64: 8, 32>}, {pipeline_mode = #tpu.pipeline_mode<synchronous>, transform_indices = @transform_6, window_bounds = array<i64: 16, 96>}, {pipeline_mode = #tpu.pipeline_mode<synchronous>, transform_indices = @transform_7, window_bounds = array<i64: 32, 96>}, {pipeline_mode = #tpu.pipeline_mode<synchronous>, transform_indices = @transform_8, window_bounds = array<i64: 32, 96>}, {pipeline_mode = #tpu.pipeline_mode<synchronous>, transform_indices = @transform_9, window_bounds = array<i64: 1, 96>}, {pipeline_mode = #tpu.pipeline_mode<synchronous>, transform_indices = @transform_10, window_bounds = array<i64: 1, 96>}, {pipeline_mode = #tpu.pipeline_mode<synchronous>, transform_indices = @transform_11, window_bounds = array<i64: 32, 96>}, {pipeline_mode = #tpu.pipeline_mode<synchronous>, transform_indices = @transform_12, window_bounds = array<i64: 32, 96>}, {pipeline_mode = #tpu.pipeline_mode<synchronous>, transform_indices = @transform_13, window_bounds = array<i64: 1, 96>}, {pipeline_mode = #tpu.pipeline_mode<synchronous>, transform_indices = @transform_14, window_bounds = array<i64: 1, 96>}, {pipeline_mode = #tpu.pipeline_mode<synchronous>, transform_indices = @transform_15, window_bounds = array<i64: 32, 32>}, {pipeline_mode = #tpu.pipeline_mode<synchronous>, transform_indices = @transform_16, window_bounds = array<i64: 8, 1, 32>}, {pipeline_mode = #tpu.pipeline_mode<synchronous>, transform_indices = @transform_17, window_bounds = array<i64: 16, 32>}, {pipeline_mode = #tpu.pipeline_mode<synchronous>, transform_indices = @transform_18, window_bounds = array<i64: 32, 32>}, {pipeline_mode = #tpu.pipeline_mode<synchronous>, transform_indices = @transform_19, window_bounds = array<i64: 32, 32>}, {pipeline_mode = #tpu.pipeline_mode<synchronous>, transform_indices = @transform_20, window_bounds = array<i64: 1, 32>}, {transform_indices = @transform_21, window_bounds = array<i64: 6, 8, 16>}, {pipeline_mode = #tpu.pipeline_mode<synchronous>, transform_indices = @transform_22, window_bounds = array<i64: 2, 8, 32>}, {pipeline_mode = #tpu.pipeline_mode<synchronous>, transform_indices = @transform_23, window_bounds = array<i64: 8, 1, 8>}, {pipeline_mode = #tpu.pipeline_mode<synchronous>, transform_indices = @transform_24, window_bounds = array<i64: 8, 32>}]} {
    %c0_i32 = arith.constant 0 : i32
    %0 = arith.cmpi eq, %arg0, %c0_i32 : i32
    %1 = arith.extui %0 : i1 to i32
    %c0_i32_0 = arith.constant 0 : i32
    %2 = arith.cmpi ne, %1, %c0_i32_0 : i32
    scf.if %2 {
      %c0_62 = arith.constant 0 : index
      %c0_63 = arith.constant 0 : index
      %c0_64 = arith.constant 0 : index
      %47 = vector.load %arg5[%c0_62, %c0_63, %c0_64] : memref<2x8x32xf32, #tpu.memory_space<vmem>>, vector<2x8x32xf32>
      %c0_65 = arith.constant 0 : index
      %c0_66 = arith.constant 0 : index
      %c0_67 = arith.constant 0 : index
      %48 = vector.load %arg26[%c0_65, %c0_66, %c0_67] : memref<2x8x32xf32, #tpu.memory_space<vmem>>, vector<2x8x32xf32>
      tpu.vector_store %arg26[%c0_65, %c0_66, %c0_67], %47 {strides = array<i32>} : memref<2x8x32xf32, #tpu.memory_space<vmem>>, vector<2x8x32xf32>,
      %c0_68 = arith.constant 0 : index
      %c0_69 = arith.constant 0 : index
      %49 = vector.load %arg6[%c0_68, %c0_69] : memref<8x32xf32, #tpu.memory_space<vmem>>, vector<8x32xf32>
      %c0_70 = arith.constant 0 : index
      %c0_71 = arith.constant 0 : index
      %50 = vector.load %arg27[%c0_70, %c0_71] : memref<8x32xf32, #tpu.memory_space<vmem>>, vector<8x32xf32>
      tpu.vector_store %arg27[%c0_70, %c0_71], %49 {strides = array<i32>} : memref<8x32xf32, #tpu.memory_space<vmem>>, vector<8x32xf32>,
    } else {
    }
    %c0 = arith.constant 0 : index
    %c0_1 = arith.constant 0 : index
    %c0_2 = arith.constant 0 : index
    %3 = vector.load %arg2[%c0, %c0_1, %c0_2] : memref<8x8x32xf32, #tpu.memory_space<vmem>>, vector<8x8x32xf32>
    %c0_3 = arith.constant 0 : index
    %c0_4 = arith.constant 0 : index
    %c0_5 = arith.constant 0 : index
    %4 = vector.load %arg4[%c0_3, %c0_4, %c0_5] : memref<8x8x32xf32, #tpu.memory_space<vmem>>, vector<8x8x32xf32>
    %c0_6 = arith.constant 0 : index
    %c0_7 = arith.constant 0 : index
    %c0_8 = arith.constant 0 : index
    %5 = vector.load %arg3[%c0_6, %c0_7, %c0_8] : memref<8x1x8xf32, #tpu.memory_space<vmem>>, vector<8x1x8xf32>
    %cst = arith.constant 1.000000e+00 : f32
    %6 = vector.broadcast %cst : f32 to vector<8x1x8xf32>
    %7 = arith.subf %6, %5 : vector<8x1x8xf32>
    %cst_9 = arith.constant -1.000000e+06 : f32
    %8 = vector.broadcast %cst_9 : f32 to vector<8x1x8xf32>
    %9 = arith.mulf %5, %8 : vector<8x1x8xf32>
    %c0_10 = arith.constant 0 : index
    %c0_11 = arith.constant 0 : index
    %c0_12 = arith.constant 0 : index
    %10 = vector.load %arg17[%c0_10, %c0_11, %c0_12] : memref<8x1x32xf32, #tpu.memory_space<vmem>>, vector<8x1x32xf32>
    %c0_13 = arith.constant 0 : index
    %c0_14 = arith.constant 0 : index
    %11 = vector.load %arg7[%c0_13, %c0_14] : memref<16x96xf32, #tpu.memory_space<vmem>>, vector<16x96xf32>
    %c0_15 = arith.constant 0 : index
    %c0_16 = arith.constant 0 : index
    %12 = vector.load %arg8[%c0_15, %c0_16] : memref<32x96xf32, #tpu.memory_space<vmem>>, vector<32x96xf32>
    %c0_17 = arith.constant 0 : index
    %c0_18 = arith.constant 0 : index
    %13 = vector.load %arg9[%c0_17, %c0_18] : memref<32x96xf32, #tpu.memory_space<vmem>>, vector<32x96xf32>
    %c0_19 = arith.constant 0 : index
    %c0_20 = arith.constant 0 : index
    %14 = vector.load %arg10[%c0_19, %c0_20] : memref<1x96xf32, #tpu.memory_space<vmem>>, vector<1x96xf32>
    %c0_21 = arith.constant 0 : index
    %c0_22 = arith.constant 0 : index
    %15 = vector.load %arg11[%c0_21, %c0_22] : memref<1x96xf32, #tpu.memory_space<vmem>>, vector<1x96xf32>
    %c0_23 = arith.constant 0 : index
    %c0_24 = arith.constant 0 : index
    %16 = vector.load %arg12[%c0_23, %c0_24] : memref<32x96xf32, #tpu.memory_space<vmem>>, vector<32x96xf32>
    %c0_25 = arith.constant 0 : index
    %c0_26 = arith.constant 0 : index
    %17 = vector.load %arg13[%c0_25, %c0_26] : memref<32x96xf32, #tpu.memory_space<vmem>>, vector<32x96xf32>
    %c0_27 = arith.constant 0 : index
    %c0_28 = arith.constant 0 : index
    %18 = vector.load %arg14[%c0_27, %c0_28] : memref<1x96xf32, #tpu.memory_space<vmem>>, vector<1x96xf32>
    %c0_29 = arith.constant 0 : index
    %c0_30 = arith.constant 0 : index
    %19 = vector.load %arg15[%c0_29, %c0_30] : memref<1x96xf32, #tpu.memory_space<vmem>>, vector<1x96xf32>
    %c0_31 = arith.constant 0 : index
    %c0_32 = arith.constant 0 : index
    %20 = vector.load %arg16[%c0_31, %c0_32] : memref<32x32xf32, #tpu.memory_space<vmem>>, vector<32x32xf32>
    %c0_33 = arith.constant 0 : index
    %c0_34 = arith.constant 0 : index
    %21 = vector.load %arg18[%c0_33, %c0_34] : memref<16x32xf32, #tpu.memory_space<vmem>>, vector<16x32xf32>
    %c0_35 = arith.constant 0 : index
    %c0_36 = arith.constant 0 : index
    %22 = vector.load %arg19[%c0_35, %c0_36] : memref<32x32xf32, #tpu.memory_space<vmem>>, vector<32x32xf32>
    %c0_37 = arith.constant 0 : index
    %c0_38 = arith.constant 0 : index
    %23 = vector.load %arg20[%c0_37, %c0_38] : memref<32x32xf32, #tpu.memory_space<vmem>>, vector<32x32xf32>
    %c0_39 = arith.constant 0 : index
    %c0_40 = arith.constant 0 : index
    %24 = vector.load %arg21[%c0_39, %c0_40] : memref<1x32xf32, #tpu.memory_space<vmem>>, vector<1x32xf32>
    %c0_41 = arith.constant 0 : index
    %c0_42 = arith.constant 0 : index
    %c0_43 = arith.constant 0 : index
    %25 = vector.load %arg26[%c0_41, %c0_42, %c0_43] : memref<2x8x32xf32, #tpu.memory_space<vmem>>, vector<1x8x32xf32>
    %26 = vector.shape_cast %25 : vector<1x8x32xf32> to vector<8x32xf32>
    %c1 = arith.constant 1 : index
    %c0_44 = arith.constant 0 : index
    %c0_45 = arith.constant 0 : index
    %27 = vector.load %arg26[%c1, %c0_44, %c0_45] : memref<2x8x32xf32, #tpu.memory_space<vmem>>, vector<1x8x32xf32>
    %28 = vector.shape_cast %27 : vector<1x8x32xf32> to vector<8x32xf32>
    %c0_46 = arith.constant 0 : index
    %c0_47 = arith.constant 0 : index
    %29 = vector.load %arg27[%c0_46, %c0_47] : memref<8x32xf32, #tpu.memory_space<vmem>>, vector<8x32xf32>
    %cst_48 = arith.constant 0.000000e+00 : f32
    %30 = vector.broadcast %cst_48 : f32 to vector<8x1x8xf32>
    %c6_i32 = arith.constant 6 : i32
    %31 = arith.muli %arg0, %c6_i32 : i32
    %c6_i32_49 = arith.constant 6 : i32
    %32 = arith.subi %c6_i32_49, %31 : i32
    %c6_i32_50 = arith.constant 6 : i32
    %33 = arith.minsi %c6_i32_50, %32 : i32
    %c0_i32_51 = arith.constant 0 : i32
    %34 = arith.subi %33, %c0_i32_51 : i32
    %35 = arith.addi %c0_i32_51, %34 : i32
    %c1_i32 = arith.constant 1 : i32
    %36:4 = scf.for %arg28 = %c0_i32_51 to %35 step %c1_i32 iter_args(%arg29 = %26, %arg30 = %28, %arg31 = %29, %arg32 = %30) -> (vector<8x32xf32>, vector<8x32xf32>, vector<8x32xf32>, vector<8x1x8xf32>)  : i32 {
      %47 = arith.index_cast %arg28 : i32 to index
      %c0_62 = arith.constant 0 : index
      %c0_63 = arith.constant 0 : index
      %48 = vector.load %arg1[%47, %c0_62, %c0_63] : memref<6x8x16xf32, #tpu.memory_space<vmem>>, vector<1x8x16xf32>
      %49 = vector.shape_cast %48 : vector<1x8x16xf32> to vector<8x16xf32>
      %cst_64 = arith.constant dense<0.000000e+00> : vector<8x96xf32>
      %50 = tpu.matmul %49, %11, %cst_64 {dimension_numbers = #tpu.dot_dimension_numbers<[1], [0], [0], [1], [0, 0, 1, 1], [], []>, precision = #tpu.contract_precision<fp32>} : vector<8x16xf32>, vector<16x96xf32>, vector<8x96xf32> -> vector<8x96xf32>
      %cst_65 = arith.constant dense<0.000000e+00> : vector<8x96xf32>
      %51 = tpu.matmul %arg31, %12, %cst_65 {dimension_numbers = #tpu.dot_dimension_numbers<[1], [0], [0], [1], [0, 0, 1, 1], [], []>, precision = #tpu.contract_precision<fp32>} : vector<8x32xf32>, vector<32x96xf32>, vector<8x96xf32> -> vector<8x96xf32>
      %52 = arith.addf %50, %51 : vector<8x96xf32>
      %53 = vector.broadcast %14 : vector<1x96xf32> to vector<8x96xf32>
      %54 = arith.addf %52, %53 : vector<8x96xf32>
      %cst_66 = arith.constant dense<0.000000e+00> : vector<8x96xf32>
      %55 = tpu.matmul %arg29, %13, %cst_66 {dimension_numbers = #tpu.dot_dimension_numbers<[1], [0], [0], [1], [0, 0, 1, 1], [], []>, precision = #tpu.contract_precision<fp32>} : vector<8x32xf32>, vector<32x96xf32>, vector<8x96xf32> -> vector<8x96xf32>
      %56 = vector.broadcast %15 : vector<1x96xf32> to vector<8x96xf32>
      %57 = arith.addf %55, %56 : vector<8x96xf32>
      %58 = vector.extract_strided_slice %54 {offsets = [0, 0], sizes = [8, 32], strides = [1, 1]} : vector<8x96xf32> to vector<8x32xf32>
      %59 = vector.extract_strided_slice %54 {offsets = [0, 32], sizes = [8, 32], strides = [1, 1]} : vector<8x96xf32> to vector<8x32xf32>
      %60 = vector.extract_strided_slice %54 {offsets = [0, 64], sizes = [8, 32], strides = [1, 1]} : vector<8x96xf32> to vector<8x32xf32>
      %61 = vector.extract_strided_slice %57 {offsets = [0, 0], sizes = [8, 32], strides = [1, 1]} : vector<8x96xf32> to vector<8x32xf32>
      %62 = vector.extract_strided_slice %57 {offsets = [0, 32], sizes = [8, 32], strides = [1, 1]} : vector<8x96xf32> to vector<8x32xf32>
      %63 = vector.extract_strided_slice %57 {offsets = [0, 64], sizes = [8, 32], strides = [1, 1]} : vector<8x96xf32> to vector<8x32xf32>
      %64 = arith.addf %58, %61 : vector<8x32xf32>
      %65 = arith.negf %64 : vector<8x32xf32>
      %66 = math.exp %65 : vector<8x32xf32>
      %cst_67 = arith.constant 1.000000e+00 : f32
      %67 = vector.broadcast %cst_67 : f32 to vector<8x32xf32>
      %68 = arith.addf %67, %66 : vector<8x32xf32>
      %69 = arith.divf %67, %68 : vector<8x32xf32>
      %70 = arith.addf %59, %62 : vector<8x32xf32>
      %71 = arith.negf %70 : vector<8x32xf32>
      %72 = math.exp %71 : vector<8x32xf32>
      %cst_68 = arith.constant 1.000000e+00 : f32
      %73 = vector.broadcast %cst_68 : f32 to vector<8x32xf32>
      %74 = arith.addf %73, %72 : vector<8x32xf32>
      %75 = arith.divf %73, %74 : vector<8x32xf32>
      %76 = arith.mulf %69, %63 : vector<8x32xf32>
      %77 = arith.addf %60, %76 : vector<8x32xf32>
      %78 = math.tanh %77 : vector<8x32xf32>
      %cst_69 = arith.constant 1.000000e+00 : f32
      %79 = vector.broadcast %cst_69 : f32 to vector<8x32xf32>
      %80 = arith.subf %79, %75 : vector<8x32xf32>
      %81 = arith.mulf %80, %78 : vector<8x32xf32>
      %82 = arith.mulf %75, %arg29 : vector<8x32xf32>
      %83 = arith.addf %81, %82 : vector<8x32xf32>
      %cst_70 = arith.constant dense<0.000000e+00> : vector<8x96xf32>
      %84 = tpu.matmul %83, %16, %cst_70 {dimension_numbers = #tpu.dot_dimension_numbers<[1], [0], [0], [1], [0, 0, 1, 1], [], []>, precision = #tpu.contract_precision<fp32>} : vector<8x32xf32>, vector<32x96xf32>, vector<8x96xf32> -> vector<8x96xf32>
      %85 = vector.broadcast %18 : vector<1x96xf32> to vector<8x96xf32>
      %86 = arith.addf %84, %85 : vector<8x96xf32>
      %cst_71 = arith.constant dense<0.000000e+00> : vector<8x96xf32>
      %87 = tpu.matmul %arg30, %17, %cst_71 {dimension_numbers = #tpu.dot_dimension_numbers<[1], [0], [0], [1], [0, 0, 1, 1], [], []>, precision = #tpu.contract_precision<fp32>} : vector<8x32xf32>, vector<32x96xf32>, vector<8x96xf32> -> vector<8x96xf32>
      %88 = vector.broadcast %19 : vector<1x96xf32> to vector<8x96xf32>
      %89 = arith.addf %87, %88 : vector<8x96xf32>
      %90 = vector.extract_strided_slice %86 {offsets = [0, 0], sizes = [8, 32], strides = [1, 1]} : vector<8x96xf32> to vector<8x32xf32>
      %91 = vector.extract_strided_slice %86 {offsets = [0, 32], sizes = [8, 32], strides = [1, 1]} : vector<8x96xf32> to vector<8x32xf32>
      %92 = vector.extract_strided_slice %86 {offsets = [0, 64], sizes = [8, 32], strides = [1, 1]} : vector<8x96xf32> to vector<8x32xf32>
      %93 = vector.extract_strided_slice %89 {offsets = [0, 0], sizes = [8, 32], strides = [1, 1]} : vector<8x96xf32> to vector<8x32xf32>
      %94 = vector.extract_strided_slice %89 {offsets = [0, 32], sizes = [8, 32], strides = [1, 1]} : vector<8x96xf32> to vector<8x32xf32>
      %95 = vector.extract_strided_slice %89 {offsets = [0, 64], sizes = [8, 32], strides = [1, 1]} : vector<8x96xf32> to vector<8x32xf32>
      %96 = arith.addf %90, %93 : vector<8x32xf32>
      %97 = arith.negf %96 : vector<8x32xf32>
      %98 = math.exp %97 : vector<8x32xf32>
      %cst_72 = arith.constant 1.000000e+00 : f32
      %99 = vector.broadcast %cst_72 : f32 to vector<8x32xf32>
      %100 = arith.addf %99, %98 : vector<8x32xf32>
      %101 = arith.divf %99, %100 : vector<8x32xf32>
      %102 = arith.addf %91, %94 : vector<8x32xf32>
      %103 = arith.negf %102 : vector<8x32xf32>
      %104 = math.exp %103 : vector<8x32xf32>
      %cst_73 = arith.constant 1.000000e+00 : f32
      %105 = vector.broadcast %cst_73 : f32 to vector<8x32xf32>
      %106 = arith.addf %105, %104 : vector<8x32xf32>
      %107 = arith.divf %105, %106 : vector<8x32xf32>
      %108 = arith.mulf %101, %95 : vector<8x32xf32>
      %109 = arith.addf %92, %108 : vector<8x32xf32>
      %110 = math.tanh %109 : vector<8x32xf32>
      %cst_74 = arith.constant 1.000000e+00 : f32
      %111 = vector.broadcast %cst_74 : f32 to vector<8x32xf32>
      %112 = arith.subf %111, %107 : vector<8x32xf32>
      %113 = arith.mulf %112, %110 : vector<8x32xf32>
      %114 = arith.mulf %107, %arg30 : vector<8x32xf32>
      %115 = arith.addf %113, %114 : vector<8x32xf32>
      %cst_75 = arith.constant dense<0.000000e+00> : vector<8x32xf32>
      %116 = tpu.matmul %115, %20, %cst_75 {dimension_numbers = #tpu.dot_dimension_numbers<[1], [0], [0], [1], [0, 0, 1, 1], [], []>, precision = #tpu.contract_precision<fp32>} : vector<8x32xf32>, vector<32x32xf32>, vector<8x32xf32> -> vector<8x32xf32>
      %117 = vector.shape_cast %116 : vector<8x32xf32> to vector<8x1x32xf32>
      %118 = vector.broadcast %117 : vector<8x1x32xf32> to vector<8x8x32xf32>
      %119 = arith.addf %4, %118 : vector<8x8x32xf32>
      %120 = math.tanh %119 : vector<8x8x32xf32>
      "tpu.trace_start"() <{level = 10 : i32, message = "bqa,bsa->bqs"}> : () -> ()
      %cst_76 = arith.constant dense<0.000000e+00> : vector<8x1x8xf32>
      %121 = tpu.matmul %10, %120, %cst_76 {dimension_numbers = #tpu.dot_dimension_numbers<[2], [2], [1], [1], [0, 0, 0, 1, 1, 1], [0], [0]>, precision = #tpu.contract_precision<fp32>} : vector<8x1x32xf32>, vector<8x8x32xf32>, vector<8x1x8xf32> -> vector<8x1x8xf32>
      "tpu.trace_stop"() : () -> ()
      %122 = arith.mulf %121, %7 : vector<8x1x8xf32>
      %123 = arith.addf %122, %9 : vector<8x1x8xf32>
      %cst_77 = arith.constant dense<0xFF800000> : vector<8x1xf32>
      %124 = vector.multi_reduction <maximumf>, %123, %cst_77 [2] : vector<8x1x8xf32> to vector<8x1xf32>
      %125 = vector.shape_cast %124 : vector<8x1xf32> to vector<8x1x1xf32>
      %126 = vector.broadcast %125 : vector<8x1x1xf32> to vector<8x1x8xf32>
      %127 = arith.subf %123, %126 : vector<8x1x8xf32>
      %128 = math.exp %127 : vector<8x1x8xf32>
      %cst_78 = arith.constant dense<0.000000e+00> : vector<8x1xf32>
      %129 = vector.multi_reduction <add>, %128, %cst_78 [2] : vector<8x1x8xf32> to vector<8x1xf32>
      %130 = vector.shape_cast %129 : vector<8x1xf32> to vector<8x1x1xf32>
      %131 = tpu.reciprocal %130 {approx = true} : vector<8x1x1xf32> -> vector<8x1x1xf32>
      %132 = vector.broadcast %131 : vector<8x1x1xf32> to vector<8x1x8xf32>
      %133 = arith.mulf %128, %132 : vector<8x1x8xf32>
      "tpu.trace_start"() <{level = 10 : i32, message = "bqs,bse->bqe"}> : () -> ()
      %cst_79 = arith.constant dense<0.000000e+00> : vector<8x1x32xf32>
      %134 = tpu.matmul %133, %3, %cst_79 {dimension_numbers = #tpu.dot_dimension_numbers<[2], [1], [1], [2], [0, 0, 0, 1, 1, 2], [0], [0]>, precision = #tpu.contract_precision<fp32>} : vector<8x1x8xf32>, vector<8x8x32xf32>, vector<8x1x32xf32> -> vector<8x1x32xf32>
      "tpu.trace_stop"() : () -> ()
      %cst_80 = arith.constant dense<0.000000e+00> : vector<8x32xf32>
      %135 = vector.multi_reduction <add>, %134, %cst_80 [1] : vector<8x1x32xf32> to vector<8x32xf32>
      %cst_81 = arith.constant dense<0.000000e+00> : vector<8x32xf32>
      %136 = tpu.matmul %49, %21, %cst_81 {dimension_numbers = #tpu.dot_dimension_numbers<[1], [0], [0], [1], [0, 0, 1, 1], [], []>, precision = #tpu.contract_precision<fp32>} : vector<8x16xf32>, vector<16x32xf32>, vector<8x32xf32> -> vector<8x32xf32>
      %cst_82 = arith.constant dense<0.000000e+00> : vector<8x32xf32>
      %137 = tpu.matmul %115, %22, %cst_82 {dimension_numbers = #tpu.dot_dimension_numbers<[1], [0], [0], [1], [0, 0, 1, 1], [], []>, precision = #tpu.contract_precision<fp32>} : vector<8x32xf32>, vector<32x32xf32>, vector<8x32xf32> -> vector<8x32xf32>
      %138 = arith.addf %136, %137 : vector<8x32xf32>
      %cst_83 = arith.constant dense<0.000000e+00> : vector<8x32xf32>
      %139 = tpu.matmul %135, %23, %cst_83 {dimension_numbers = #tpu.dot_dimension_numbers<[1], [0], [0], [1], [0, 0, 1, 1], [], []>, precision = #tpu.contract_precision<fp32>} : vector<8x32xf32>, vector<32x32xf32>, vector<8x32xf32> -> vector<8x32xf32>
      %140 = arith.addf %138, %139 : vector<8x32xf32>
      %141 = vector.broadcast %24 : vector<1x32xf32> to vector<8x32xf32>
      %142 = arith.addf %140, %141 : vector<8x32xf32>
      %143 = vector.extract_strided_slice %142 {offsets = [0, 0], sizes = [8, 16], strides = [1, 1]} : vector<8x32xf32> to vector<8x16xf32>
      %144 = vector.extract_strided_slice %142 {offsets = [0, 16], sizes = [8, 16], strides = [1, 1]} : vector<8x32xf32> to vector<8x16xf32>
      %145 = arith.maximumf %143, %144 : vector<8x16xf32>
      %146 = arith.index_cast %arg28 : i32 to index
      %c0_84 = arith.constant 0 : index
      %c0_85 = arith.constant 0 : index
      %147 = vector.load %arg22[%146, %c0_84, %c0_85] : memref<6x8x16xf32, #tpu.memory_space<vmem>>, vector<1x8x16xf32>
      %148 = vector.shape_cast %147 : vector<1x8x16xf32> to vector<8x16xf32>
      %149 = vector.shape_cast %145 : vector<8x16xf32> to vector<1x8x16xf32>
      tpu.vector_store %arg22[%146, %c0_84, %c0_85], %149 {strides = array<i32>} : memref<6x8x16xf32, #tpu.memory_space<vmem>>, vector<1x8x16xf32>,
      scf.yield %83, %115, %135, %133 : vector<8x32xf32>, vector<8x32xf32>, vector<8x32xf32>, vector<8x1x8xf32>
    }
    %c0_52 = arith.constant 0 : index
    %c0_53 = arith.constant 0 : index
    %c0_54 = arith.constant 0 : index
    %37 = vector.load %arg26[%c0_52, %c0_53, %c0_54] : memref<2x8x32xf32, #tpu.memory_space<vmem>>, vector<1x8x32xf32>
    %38 = vector.shape_cast %37 : vector<1x8x32xf32> to vector<8x32xf32>
    %39 = vector.shape_cast %36#0 : vector<8x32xf32> to vector<1x8x32xf32>
    tpu.vector_store %arg26[%c0_52, %c0_53, %c0_54], %39 {strides = array<i32>} : memref<2x8x32xf32, #tpu.memory_space<vmem>>, vector<1x8x32xf32>,
    %c1_55 = arith.constant 1 : index
    %c0_56 = arith.constant 0 : index
    %c0_57 = arith.constant 0 : index
    %40 = vector.load %arg26[%c1_55, %c0_56, %c0_57] : memref<2x8x32xf32, #tpu.memory_space<vmem>>, vector<1x8x32xf32>
    %41 = vector.shape_cast %40 : vector<1x8x32xf32> to vector<8x32xf32>
    %42 = vector.shape_cast %36#1 : vector<8x32xf32> to vector<1x8x32xf32>
    tpu.vector_store %arg26[%c1_55, %c0_56, %c0_57], %42 {strides = array<i32>} : memref<2x8x32xf32, #tpu.memory_space<vmem>>, vector<1x8x32xf32>,
    %c0_58 = arith.constant 0 : index
    %c0_59 = arith.constant 0 : index
    %43 = vector.load %arg27[%c0_58, %c0_59] : memref<8x32xf32, #tpu.memory_space<vmem>>, vector<8x32xf32>
    tpu.vector_store %arg27[%c0_58, %c0_59], %36#2 {strides = array<i32>} : memref<8x32xf32, #tpu.memory_space<vmem>>, vector<8x32xf32>,
    %c0_i32_60 = arith.constant 0 : i32
    %44 = arith.cmpi eq, %arg0, %c0_i32_60 : i32
    %45 = arith.extui %44 : i1 to i32
    %c0_i32_61 = arith.constant 0 : i32
    %46 = arith.cmpi ne, %45, %c0_i32_61 : i32
    scf.if %46 {
      %c0_62 = arith.constant 0 : index
      %c0_63 = arith.constant 0 : index
      %c0_64 = arith.constant 0 : index
      %47 = vector.load %arg23[%c0_62, %c0_63, %c0_64] : memref<2x8x32xf32, #tpu.memory_space<vmem>>, vector<1x8x32xf32>
      %48 = vector.shape_cast %47 : vector<1x8x32xf32> to vector<8x32xf32>
      %49 = vector.shape_cast %36#0 : vector<8x32xf32> to vector<1x8x32xf32>
      tpu.vector_store %arg23[%c0_62, %c0_63, %c0_64], %49 {strides = array<i32>} : memref<2x8x32xf32, #tpu.memory_space<vmem>>, vector<1x8x32xf32>,
      %c1_65 = arith.constant 1 : index
      %c0_66 = arith.constant 0 : index
      %c0_67 = arith.constant 0 : index
      %50 = vector.load %arg23[%c1_65, %c0_66, %c0_67] : memref<2x8x32xf32, #tpu.memory_space<vmem>>, vector<1x8x32xf32>
      %51 = vector.shape_cast %50 : vector<1x8x32xf32> to vector<8x32xf32>
      %52 = vector.shape_cast %36#1 : vector<8x32xf32> to vector<1x8x32xf32>
      tpu.vector_store %arg23[%c1_65, %c0_66, %c0_67], %52 {strides = array<i32>} : memref<2x8x32xf32, #tpu.memory_space<vmem>>, vector<1x8x32xf32>,
      %c0_68 = arith.constant 0 : index
      %c0_69 = arith.constant 0 : index
      %c0_70 = arith.constant 0 : index
      %53 = vector.load %arg24[%c0_68, %c0_69, %c0_70] : memref<8x1x8xf32, #tpu.memory_space<vmem>>, vector<8x1x8xf32>
      tpu.vector_store %arg24[%c0_68, %c0_69, %c0_70], %36#3 {strides = array<i32>} : memref<8x1x8xf32, #tpu.memory_space<vmem>>, vector<8x1x8xf32>,
      %c0_71 = arith.constant 0 : index
      %c0_72 = arith.constant 0 : index
      %54 = vector.load %arg25[%c0_71, %c0_72] : memref<8x32xf32, #tpu.memory_space<vmem>>, vector<8x32xf32>
      tpu.vector_store %arg25[%c0_71, %c0_72], %36#2 {strides = array<i32>} : memref<8x32xf32, #tpu.memory_space<vmem>>, vector<8x32xf32>,
    } else {
    }
    return
  }
  func.func @transform_0(%arg0: i32) -> (i32, i32, i32) {
    %c0_i32 = arith.constant 0 : i32
    %c0_i32_0 = arith.constant 0 : i32
    %c0_i32_1 = arith.constant 0 : i32
    return %arg0, %c0_i32, %c0_i32_0 : i32, i32, i32
  }
  func.func @transform_1(%arg0: i32) -> (i32, i32, i32) {
    %c0_i32 = arith.constant 0 : i32
    %c0_i32_0 = arith.constant 0 : i32
    %c0_i32_1 = arith.constant 0 : i32
    %c0_i32_2 = arith.constant 0 : i32
    return %c0_i32, %c0_i32_0, %c0_i32_1 : i32, i32, i32
  }
  func.func @transform_2(%arg0: i32) -> (i32, i32, i32) {
    %c0_i32 = arith.constant 0 : i32
    %c0_i32_0 = arith.constant 0 : i32
    %c0_i32_1 = arith.constant 0 : i32
    %c0_i32_2 = arith.constant 0 : i32
    return %c0_i32, %c0_i32_0, %c0_i32_1 : i32, i32, i32
  }
  func.func @transform_3(%arg0: i32) -> (i32, i32, i32) {
    %c0_i32 = arith.constant 0 : i32
    %c0_i32_0 = arith.constant 0 : i32
    %c0_i32_1 = arith.constant 0 : i32
    %c0_i32_2 = arith.constant 0 : i32
    return %c0_i32, %c0_i32_0, %c0_i32_1 : i32, i32, i32
  }
  func.func @transform_4(%arg0: i32) -> (i32, i32, i32) {
    %c0_i32 = arith.constant 0 : i32
    %c0_i32_0 = arith.constant 0 : i32
    %c0_i32_1 = arith.constant 0 : i32
    %c0_i32_2 = arith.constant 0 : i32
    return %c0_i32, %c0_i32_0, %c0_i32_1 : i32, i32, i32
  }
  func.func @transform_5(%arg0: i32) -> (i32, i32) {
    %c0_i32 = arith.constant 0 : i32
    %c0_i32_0 = arith.constant 0 : i32
    %c0_i32_1 = arith.constant 0 : i32
    return %c0_i32, %c0_i32_0 : i32, i32
  }
  func.func @transform_6(%arg0: i32) -> (i32, i32) {
    %c0_i32 = arith.constant 0 : i32
    %c0_i32_0 = arith.constant 0 : i32
    %c0_i32_1 = arith.constant 0 : i32
    return %c0_i32, %c0_i32_0 : i32, i32
  }
  func.func @transform_7(%arg0: i32) -> (i32, i32) {
    %c0_i32 = arith.constant 0 : i32
    %c0_i32_0 = arith.constant 0 : i32
    %c0_i32_1 = arith.constant 0 : i32
    return %c0_i32, %c0_i32_0 : i32, i32
  }
  func.func @transform_8(%arg0: i32) -> (i32, i32) {
    %c0_i32 = arith.constant 0 : i32
    %c0_i32_0 = arith.constant 0 : i32
    %c0_i32_1 = arith.constant 0 : i32
    return %c0_i32, %c0_i32_0 : i32, i32
  }
  func.func @transform_9(%arg0: i32) -> (i32, i32) {
    %c0_i32 = arith.constant 0 : i32
    %c0_i32_0 = arith.constant 0 : i32
    %c0_i32_1 = arith.constant 0 : i32
    return %c0_i32, %c0_i32_0 : i32, i32
  }
  func.func @transform_10(%arg0: i32) -> (i32, i32) {
    %c0_i32 = arith.constant 0 : i32
    %c0_i32_0 = arith.constant 0 : i32
    %c0_i32_1 = arith.constant 0 : i32
    return %c0_i32, %c0_i32_0 : i32, i32
  }
  func.func @transform_11(%arg0: i32) -> (i32, i32) {
    %c0_i32 = arith.constant 0 : i32
    %c0_i32_0 = arith.constant 0 : i32
    %c0_i32_1 = arith.constant 0 : i32
    return %c0_i32, %c0_i32_0 : i32, i32
  }
  func.func @transform_12(%arg0: i32) -> (i32, i32) {
    %c0_i32 = arith.constant 0 : i32
    %c0_i32_0 = arith.constant 0 : i32
    %c0_i32_1 = arith.constant 0 : i32
    return %c0_i32, %c0_i32_0 : i32, i32
  }
  func.func @transform_13(%arg0: i32) -> (i32, i32) {
    %c0_i32 = arith.constant 0 : i32
    %c0_i32_0 = arith.constant 0 : i32
    %c0_i32_1 = arith.constant 0 : i32
    return %c0_i32, %c0_i32_0 : i32, i32
  }
  func.func @transform_14(%arg0: i32) -> (i32, i32) {
    %c0_i32 = arith.constant 0 : i32
    %c0_i32_0 = arith.constant 0 : i32
    %c0_i32_1 = arith.constant 0 : i32
    return %c0_i32, %c0_i32_0 : i32, i32
  }
  func.func @transform_15(%arg0: i32) -> (i32, i32) {
    %c0_i32 = arith.constant 0 : i32
    %c0_i32_0 = arith.constant 0 : i32
    %c0_i32_1 = arith.constant 0 : i32
    return %c0_i32, %c0_i32_0 : i32, i32
  }
  func.func @transform_16(%arg0: i32) -> (i32, i32, i32) {
    %c0_i32 = arith.constant 0 : i32
    %c0_i32_0 = arith.constant 0 : i32
    %c0_i32_1 = arith.constant 0 : i32
    %c0_i32_2 = arith.constant 0 : i32
    return %c0_i32, %c0_i32_0, %c0_i32_1 : i32, i32, i32
  }
  func.func @transform_17(%arg0: i32) -> (i32, i32) {
    %c0_i32 = arith.constant 0 : i32
    %c0_i32_0 = arith.constant 0 : i32
    %c0_i32_1 = arith.constant 0 : i32
    return %c0_i32, %c0_i32_0 : i32, i32
  }
  func.func @transform_18(%arg0: i32) -> (i32, i32) {
    %c0_i32 = arith.constant 0 : i32
    %c0_i32_0 = arith.constant 0 : i32
    %c0_i32_1 = arith.constant 0 : i32
    return %c0_i32, %c0_i32_0 : i32, i32
  }
  func.func @transform_19(%arg0: i32) -> (i32, i32) {
    %c0_i32 = arith.constant 0 : i32
    %c0_i32_0 = arith.constant 0 : i32
    %c0_i32_1 = arith.constant 0 : i32
    return %c0_i32, %c0_i32_0 : i32, i32
  }
  func.func @transform_20(%arg0: i32) -> (i32, i32) {
    %c0_i32 = arith.constant 0 : i32
    %c0_i32_0 = arith.constant 0 : i32
    %c0_i32_1 = arith.constant 0 : i32
    return %c0_i32, %c0_i32_0 : i32, i32
  }
  func.func @transform_21(%arg0: i32) -> (i32, i32, i32) {
    %c0_i32 = arith.constant 0 : i32
    %c0_i32_0 = arith.constant 0 : i32
    %c0_i32_1 = arith.constant 0 : i32
    return %arg0, %c0_i32, %c0_i32_0 : i32, i32, i32
  }
  func.func @transform_22(%arg0: i32) -> (i32, i32, i32) {
    %c0_i32 = arith.constant 0 : i32
    %c0_i32_0 = arith.constant 0 : i32
    %c0_i32_1 = arith.constant 0 : i32
    %c0_i32_2 = arith.constant 0 : i32
    return %c0_i32, %c0_i32_0, %c0_i32_1 : i32, i32, i32
  }
  func.func @transform_23(%arg0: i32) -> (i32, i32, i32) {
    %c0_i32 = arith.constant 0 : i32
    %c0_i32_0 = arith.constant 0 : i32
    %c0_i32_1 = arith.constant 0 : i32
    %c0_i32_2 = arith.constant 0 : i32
    return %c0_i32, %c0_i32_0, %c0_i32_1 : i32, i32, i32
  }
  func.func @transform_24(%arg0: i32) -> (i32, i32) {
    %c0_i32 = arith.constant 0 : i32
    %c0_i32_0 = arith.constant 0 : i32
    %c0_i32_1 = arith.constant 0 : i32
    return %c0_i32, %c0_i32_0 : i32, i32
  }
}

</mosaic_0001>

<bundles_post_ra>
// kernel: tpu_custom_call.1
= control target key start
LH: loop header
LB: loop body
LE: loop exit
PB: predicated region body
PF: predicated region fallthrough
CT: control target
= control target key end

     0   :  { %s6892_s0 = inlined_call_operand.hbm [shape: f32[6,8,16], index: 0, kind: input, shape index: {}]   ;;  %s6893_s1 = inlined_call_operand.hbm [shape: f32[8,8,32], index: 1, kind: input, shape index: {}]   ;;  %s6894_s2 = inlined_call_operand.hbm [shape: f32[8,1,8], index: 2, kind: input, shape index: {}]   ;;  %s6895_s3 = inlined_call_operand.hbm [shape: f32[8,8,32], index: 3, kind: input, shape index: {}]   ;;  %s6896_s4 = inlined_call_operand.hbm [shape: f32[2,8,32], index: 4, kind: input, shape index: {}]   ;;  %s6897_s5 = inlined_call_operand.hbm [shape: f32[8,32], index: 5, kind: input, shape index: {}]   ;;  %s6898_s6 = inlined_call_operand.hbm [shape: f32[16,96], index: 6, kind: input, shape index: {}]   ;;  %s6899_s7 = inlined_call_operand.hbm [shape: f32[32,96], index: 7, kind: input, shape index: {}]   ;;  %s6900_s8 = inlined_call_operand.hbm [shape: f32[32,96], index: 8, kind: input, shape index: {}]   ;;  %s6901_s9 = inlined_call_operand.hbm [shape: f32[1,96], index: 9, kind: input, shape index: {}]   ;;  %s6902_s10 = inlined_call_operand.hbm [shape: f32[1,96], index: 10, kind: input, shape index: {}]   ;;  %s6903_s11 = inlined_call_operand.hbm [shape: f32[32,96], index: 11, kind: input, shape index: {}]   ;;  %s6904_s12 = inlined_call_operand.hbm [shape: f32[32,96], index: 12, kind: input, shape index: {}]   ;;  %s6905_s13 = inlined_call_operand.hbm [shape: f32[1,96], index: 13, kind: input, shape index: {}]   ;;  %s6906_s14 = inlined_call_operand.hbm [shape: f32[1,96], index: 14, kind: input, shape index: {}]   ;;  %s6907_s15 = inlined_call_operand.hbm [shape: f32[32,32], index: 15, kind: input, shape index: {}]   ;;  %s6908_s16 = inlined_call_operand.hbm [shape: f32[8,1,32], index: 16, kind: input, shape index: {}]   ;;  %s6909_s17 = inlined_call_operand.vmem [shape: f32[16,32], index: 17, kind: input, shape index: {}]   ;;  %s6910_s18 = inlined_call_operand.hbm [shape: f32[32,32], index: 18, kind: input, shape index: {}]   ;;  %s6911_s19 = inlined_call_operand.hbm [shape: f32[32,32], index: 19, kind: input, shape index: {}]   ;;  %s6912_s20 = inlined_call_operand.vmem [shape: f32[1,32], index: 20, kind: input, shape index: {}]   ;;  %s6913_s21 = inlined_call_operand.hbm [shape: f32[6,8,16], index: 21, kind: output, shape index: {0}]   ;;  %s6914_s22 = inlined_call_operand.hbm [shape: f32[2,8,32], index: 22, kind: output, shape index: {1}]   ;;  %s6915_s23 = inlined_call_operand.hbm [shape: f32[8,1,8], index: 23, kind: output, shape index: {2}]   ;;  %s6916_s24 = inlined_call_operand.hbm [shape: f32[8,32], index: 24, kind: output, shape index: {3}]  }
   0x1   :  { %6990 = sst [smem:[#allocation129_spill]] %s6892_s0 }
   0x2   :  { %6991 = sst [smem:[#allocation130_spill]] %s6893_s1 }
   0x3   :  { %6992 = sst [smem:[#allocation131_spill]] %s6894_s2 }
   0x4   :  { %6993 = sst [smem:[#allocation132_spill]] %s6895_s3 }
   0x5   :  { %6994 = sst [smem:[#allocation133_spill]] %s6896_s4 }
   0x6   :  { %6995 = sst [smem:[#allocation134_spill]] %s6897_s5 }
   0x7   :  { %6996 = sst [smem:[#allocation135_spill]] %s6898_s6 }
   0x8   :  { %6997 = sst [smem:[#allocation136_spill]] %s6899_s7 }
   0x9   :  { %6998 = sst [smem:[#allocation137_spill]] %s6900_s8 }
   0xa   :  { %6999 = sst [smem:[#allocation138_spill]] %s6915_s23 }
   0xb   :  { %7000 = sst [smem:[#allocation139_spill]] %s6916_s24 }
   0xc   :  { %30 = vsyncpa [#allocation5], 0 }
   0xd   :  { %31 = vsyncpa [#allocation8], 0 }
   0xe   :  { %32 = vsyncpa [#allocation11], 0 }
   0xf   :  { %33 = vsyncpa [#allocation14], 0 }
  0x10   :  { %34 = vsyncpa [#allocation17], 0 }
  0x11   :  { %35 = vsyncpa [#allocation20], 0 }
  0x12   :  { %36 = vsyncpa [#allocation23], 0 }
  0x13   :  { %37 = vsyncpa [#allocation26], 0 }
  0x14   :  { %38 = vsyncpa [#allocation29], 0 }
  0x15   :  { %39 = vsyncpa [#allocation32], 0 }
  0x16   :  { %40 = vsyncpa [#allocation6], 0 }
  0x17   :  { %41 = vsyncpa [#allocation36], 0 }
  0x18   :  { %42 = vsyncpa [#allocation39], 0  ;;  %s7001_s27 = sld [smem:[#allocation130_spill]]  ;;  %s5703_s6 = smov [#allocation7]  }
  0x19   :  { %s62_s2 = sshll.u32 %s5703_s6, 4  ;;  %s7002_s7 = sld [smem:[#allocation132_spill]]  ;;  %s63_s2 = int_to_ptr.vmem [resolvable:$true] %s62_s2 }
  0x1a   :  { %s5704_s3 = smov 128   ;;  %s5705_s25 = smov 8  }
  0x1b   :  { %s5706_s8 = smov [#allocation10]   ;;  %s7003_s26 = sld [smem:[#allocation134_spill]] }
  0x1c   :  { %s88_s4 = sshll.u32 %s5706_s8, 4  ;;  %s7004_s0 = sld [smem:[#allocation136_spill]]  ;;  %s89_s4 = int_to_ptr.vmem [resolvable:$true] %s88_s4 }
  0x1d   :  { %s5707_s24 = smov [#allocation13]   ;;  %s163_s5 = sshll.u32 %s6901_s9, 4  ;;  %s164_s5 = int_to_ptr.hbm [resolvable:$true] %s163_s5 }
  0x1e   :  { %s60_s28 = sshll.u32 %s7001_s27, 4  ;;  %s115_s23 = sshll.u32 %s5707_s24, 4  ;;  %s61_s28 = int_to_ptr.hbm [resolvable:$true] %s60_s28  ;;  %s116_s23 = int_to_ptr.vmem [resolvable:$true] %s115_s23 }
  0x1f   :  { %s86_s30 = sshll.u32 %s7002_s7, 4  ;;  %s5709_s24 = smov [#allocation19]   ;;  %s87_s30 = int_to_ptr.hbm [resolvable:$true] %s86_s30 }
  0x20   :  { %68 = dma.hbm_to_vmem [thread:$0]  %s61_s28, 1024, %s63_s2, [#allocation8], %s5704_s3, %s5704_s3, %s5705_s25  }
  0x21   :  { %s113_s27 = sshll.u32 %s7003_s26, 4  ;;  %s5708_s28 = smov [#allocation16]   ;;  %s114_s27 = int_to_ptr.hbm [resolvable:$true] %s113_s27 }
  0x22   :  { %94 = dma.hbm_to_vmem [thread:$0]  %s87_s30, 1024, %s89_s4, [#allocation11], %s5704_s3, %s5704_s3, %s5705_s25  }
  0x23   :  { %s136_s7 = sshll.u32 %s7004_s0, 4  ;;  %s138_s2 = sshll.u32 %s5708_s28, 4  ;;  %s137_s7 = int_to_ptr.hbm [resolvable:$true] %s136_s7  ;;  %s139_s2 = int_to_ptr.vmem [resolvable:$true] %s138_s2 }
  0x24   :  { %118 = dma.hbm_to_vmem [thread:$0]  %s114_s27, 128, %s116_s23, [#allocation14]  }
  0x25   :  { %144 = dma.hbm_to_vmem [thread:$0]  %s137_s7, 512, %s139_s2, [#allocation17], %s5704_s3, %s5704_s3, %s5705_s25  }
  0x26   :  { %s184_s26 = sshll.u32 %s6903_s11, 4  ;;  %s165_s6 = sshll.u32 %s5709_s24, 4  ;;  %s185_s26 = int_to_ptr.hbm [resolvable:$true] %s184_s26  ;;  %s166_s6 = int_to_ptr.vmem [resolvable:$true] %s165_s6 }
  0x27   :  { %168 = dma.hbm_to_vmem [thread:$0]  %s164_s5, 16, %s166_s6, [#allocation20]  }
  0x28   :  { %s5710_s23 = smov [#allocation22]   ;;  %s211_s9 = sshll.u32 %s6905_s13, 4  ;;  %s212_s9 = int_to_ptr.hbm [resolvable:$true] %s211_s9 }
  0x29   :  { %s186_s27 = sshll.u32 %s5710_s23, 4  ;;  %s232_s11 = sshll.u32 %s6907_s15, 4  ;;  %s187_s27 = int_to_ptr.vmem [resolvable:$true] %s186_s27  ;;  %s233_s11 = int_to_ptr.hbm [resolvable:$true] %s232_s11 }
  0x2a   :  { %192 = dma.hbm_to_vmem [thread:$0]  %s185_s26, 512, %s187_s27, [#allocation23], %s5704_s3, %s5704_s3, %s5705_s25  }
  0x2b   :  { %s5711_s2 = smov [#allocation25]   ;;  %s5712_s1 = smov [#allocation28]  }
  0x2c   :  { %s213_s8 = sshll.u32 %s5711_s2, 4  ;;  %s234_s5 = sshll.u32 %s5712_s1, 4  ;;  %s214_s8 = int_to_ptr.vmem [resolvable:$true] %s213_s8  ;;  %s235_s5 = int_to_ptr.vmem [resolvable:$true] %s234_s5 }
  0x2d   :  { %216 = dma.hbm_to_vmem [thread:$0]  %s212_s9, 16, %s214_s8, [#allocation26]  }
  0x2e   :  { %s260_s13 = sshll.u32 %s6910_s18, 4  ;;  %s7005_s15 = sld [smem:[#allocation129_spill]]  ;;  %s261_s13 = int_to_ptr.hbm [resolvable:$true] %s260_s13 }
  0x2f   :  { %240 = dma.hbm_to_vmem [thread:$0]  %s233_s11, 512, %s235_s5, [#allocation29], %s5704_s3, %s5704_s3, %s5705_s25  }
  0x30   :  { %s5713_s23 = smov [#allocation31]   ;;  %s5714_s29 = smov [#allocation4]  }
  0x31   :  { %s262_s27 = sshll.u32 %s5713_s23, 4  ;;  %s49_s18 = sshll.u32 %s5714_s29, 4  ;;  %s263_s27 = int_to_ptr.vmem [resolvable:$true] %s262_s27  ;;  %s50_s18 = int_to_ptr.vmem [resolvable:$true] %s49_s18 }
  0x32   :  { %268 = dma.hbm_to_vmem [thread:$0]  %s261_s13, 512, %s263_s27, [#allocation32], %s5704_s3, %s5704_s3, %s5705_s25  }
  0x33   :  { %s7006_s7 = sld [smem:[#allocation131_spill]]  ;;  %s5715_s11 = smov [#allocation9]  }
  0x34   :  { %s47_s6 = sshll.u32 %s7005_s15, 4  ;;  %s75_s2 = sshll.u32 %s5715_s11, 4  ;;  %s48_s6 = int_to_ptr.hbm [resolvable:$true] %s47_s6  ;;  %s76_s2 = int_to_ptr.vmem [resolvable:$true] %s75_s2 }
  0x35   :  { %55 = dma.hbm_to_vmem [thread:$0]  %s48_s6, 768, %s50_s18, [#allocation5], %s5704_s3, %s5704_s3, %s5705_s25  }
  0x36   :  { %s7007_s5 = sld [smem:[#allocation133_spill]]  ;;  %s5716_s4 = smov 16  }
  0x37   :  { %s5717_s13 = smov 1   ;;  %s5718_s26 = smov [#allocation12]  }
  0x38   :  { %s101_s24 = sshll.u32 %s5718_s26, 4  ;;  %s7008_s27 = sld [smem:[#allocation135_spill]]  ;;  %s102_s24 = int_to_ptr.vmem [resolvable:$true] %s101_s24 }
  0x39   :  { %s73_s28 = sshll.u32 %s7006_s7, 4  ;;  %s7009_s0 = sld [smem:[#allocation137_spill]]  ;;  %s74_s28 = int_to_ptr.hbm [resolvable:$true] %s73_s28 }
  0x3a   :  { %81 = dma.hbm_to_vmem [thread:$0]  %s74_s28, 128, %s76_s2, [#allocation8], %s5716_s4, %s5716_s4, %s5717_s13  }
  0x3b   :  { %s5719_s7 = smov [#allocation15]   ;;  %s5720_s28 = smov [#allocation18]  }
  0x3c   :  { %s99_s30 = sshll.u32 %s7007_s5, 4  ;;  %s125_s11 = sshll.u32 %s5719_s7, 4  ;;  %s100_s30 = int_to_ptr.hbm [resolvable:$true] %s99_s30  ;;  %s126_s11 = int_to_ptr.vmem [resolvable:$true] %s125_s11 }
  0x3d   :  { %107 = dma.hbm_to_vmem [thread:$0]  %s100_s30, 256, %s102_s24, [#allocation11], %s5704_s3, %s5704_s3, %s5705_s25  }
  0x3e   :  { %s123_s6 = sshll.u32 %s7008_s27, 4  ;;  %s151_s2 = sshll.u32 %s5720_s28, 4  ;;  %s124_s6 = int_to_ptr.hbm [resolvable:$true] %s123_s6  ;;  %s152_s2 = int_to_ptr.vmem [resolvable:$true] %s151_s2 }
  0x3f   :  { %s149_s9 = sshll.u32 %s7009_s0, 4  ;;  %s174_s5 = sshll.u32 %s6902_s10, 4  ;;  %s150_s9 = int_to_ptr.hbm [resolvable:$true] %s149_s9  ;;  %s175_s5 = int_to_ptr.hbm [resolvable:$true] %s174_s5 }
  0x40   :  { %131 = dma.hbm_to_vmem [thread:$0]  %s124_s6, 256, %s126_s11, [#allocation14], %s5704_s3, %s5704_s3, %s5705_s25  }
  0x41   :  { %157 = dma.hbm_to_vmem [thread:$0]  %s150_s9, 512, %s152_s2, [#allocation17], %s5704_s3, %s5704_s3, %s5705_s25  }
  0x42   :  { %s197_s24 = sshll.u32 %s6904_s12, 4  ;;  %s5721_s15 = smov [#allocation21]   ;;  %s198_s24 = int_to_ptr.hbm [resolvable:$true] %s197_s24 }
  0x43   :  { %s176_s23 = sshll.u32 %s5721_s15, 4  ;;  %s5722_s27 = smov [#allocation24]   ;;  %s177_s23 = int_to_ptr.vmem [resolvable:$true] %s176_s23 }
  0x44   :  { %179 = dma.hbm_to_vmem [thread:$0]  %s175_s5, 16, %s177_s23, [#allocation20]  }
  0x45   :  { %s199_s6 = sshll.u32 %s5722_s27, 4  ;;  %s222_s10 = sshll.u32 %s6906_s14, 4  ;;  %s200_s6 = int_to_ptr.vmem [resolvable:$true] %s199_s6  ;;  %s223_s10 = int_to_ptr.hbm [resolvable:$true] %s222_s10 }
  0x46   :  { %205 = dma.hbm_to_vmem [thread:$0]  %s198_s24, 512, %s200_s6, [#allocation23], %s5704_s3, %s5704_s3, %s5705_s25  }
  0x47   :  { %s245_s12 = sshll.u32 %s6908_s16, 4  ;;  %s5723_s7 = smov [#allocation27]   ;;  %s246_s12 = int_to_ptr.hbm [resolvable:$true] %s245_s12 }
  0x48   :  { %s224_s11 = sshll.u32 %s5723_s7, 4  ;;  %s5724_s28 = smov [#allocation30]   ;;  %s225_s11 = int_to_ptr.vmem [resolvable:$true] %s224_s11 }
  0x49   :  { %227 = dma.hbm_to_vmem [thread:$0]  %s223_s10, 16, %s225_s11, [#allocation26]  }
  0x4a   :  { %s247_s2 = sshll.u32 %s5724_s28, 4  ;;  %s273_s14 = sshll.u32 %s6911_s19, 4  ;;  %s248_s2 = int_to_ptr.vmem [resolvable:$true] %s247_s2  ;;  %s274_s14 = int_to_ptr.hbm [resolvable:$true] %s273_s14 }
  0x4b   :  { %253 = dma.hbm_to_vmem [thread:$0]  %s246_s12, 128, %s248_s2, [#allocation29], %s5716_s4, %s5716_s4, %s5717_s13  }
  0x4c   :  { %s5725_s5 = smov [#allocation33]  }
  0x4d   :  { %s275_s30 = sshll.u32 %s5725_s5, 4  ;;  %s276_s30 = int_to_ptr.vmem [resolvable:$true] %s275_s30 }
  0x4e   :  { %281 = dma.hbm_to_vmem [thread:$0]  %s274_s14, 512, %s276_s30, [#allocation32], %s5704_s3, %s5704_s3, %s5705_s25  }
  0x4f   :  { %5661 = dma.done.wait [#allocation5], 768  }
  0x50   :  { %5662 = vsyncadd [#allocation5], 4294966528 }
  0x51   :  { %5663 = dma.done.wait [#allocation8], 1152  }
  0x52   :  { %5664 = vsyncadd [#allocation8], 4294966144 }
  0x53   :  { %5665 = dma.done.wait [#allocation11], 1280  }
  0x54   :  { %5666 = vsyncadd [#allocation11], 4294966016 }
  0x55   :  { %5667 = dma.done.wait [#allocation14], 384  }
  0x56   :  { %5668 = vsyncadd [#allocation14], 4294966912 }
  0x57   :  { %5669 = dma.done.wait [#allocation17], 1024  }
  0x58   :  { %5670 = vsyncadd [#allocation17], 4294966272 }
  0x59   :  { %5671 = dma.done.wait [#allocation20], 32  }
  0x5a   :  { %5672 = vsyncadd [#allocation20], 4294967264 }
  0x5b   :  { %5673 = dma.done.wait [#allocation23], 1024  }
  0x5c   :  { %5674 = vsyncadd [#allocation23], 4294966272 }
  0x5d   :  { %5675 = dma.done.wait [#allocation26], 32  }
  0x5e   :  { %5676 = vsyncadd [#allocation26], 4294967264 }
  0x5f   :  { %5677 = dma.done.wait [#allocation29], 640  }
  0x60   :  { %5678 = vsyncadd [#allocation29], 4294966656 }
  0x61   :  { %5679 = dma.done.wait [#allocation32], 1024  }
  0x62   :  { %5680 = vsyncadd [#allocation32], 4294966272  ;;  %v5958_v0 = vld [vmem:[#allocation7] sm:$0xff]  ;;  %v5960_v1 = vld [vmem:[#allocation7 + $0x8] sm:$0xff]  ;;  %vm366_vm0 = vcmask 261120  }
  0x63   :  { %7010 = vst [vmem:[#allocation53_spill] sm:$0xff] %v5958_v0  ;;  %v5962_v2 = vld [vmem:[#allocation7 + $0x10] sm:$0xff]  ;;  %v5964_v3 = vld [vmem:[#allocation7 + $0x18] sm:$0xff]  ;;  %v5966_v4 = vld [vmem:[#allocation7 + $0x20] sm:$0xff] }
  0x64   :  { %7011 = vst [vmem:[#allocation54_spill] sm:$0xff] %v5960_v1  ;;  %v5968_v5 = vld [vmem:[#allocation7 + $0x28] sm:$0xff]  ;;  %v5970_v6 = vld [vmem:[#allocation7 + $0x30] sm:$0xff]  ;;  %v5972_v7 = vld [vmem:[#allocation7 + $0x38] sm:$0xff] }
  0x65   :  { %7012 = vst [vmem:[#allocation55_spill] sm:$0xff] %v5962_v2  ;;  %v5974_v8 = vld [vmem:[#allocation10] sm:$0xff]  ;;  %v5976_v9 = vld [vmem:[#allocation10 + $0x8] sm:$0xff]  ;;  %v5978_v10 = vld [vmem:[#allocation10 + $0x10] sm:$0xff] }
  0x66   :  { %7013 = vst [vmem:[#allocation56_spill] sm:$0xff] %v5964_v3  ;;  %v5980_v11 = vld [vmem:[#allocation10 + $0x18] sm:$0xff]  ;;  %v5982_v12 = vld [vmem:[#allocation10 + $0x20] sm:$0xff]  ;;  %v5984_v13 = vld [vmem:[#allocation10 + $0x28] sm:$0xff] }
  0x67   :  { %7014 = vst [vmem:[#allocation57_spill] sm:$0xff] %v5966_v4  ;;  %v5986_v14 = vld [vmem:[#allocation10 + $0x30] sm:$0xff]  ;;  %v5988_v15 = vld [vmem:[#allocation10 + $0x38] sm:$0xff]  ;;  %v6056_v49 = vld [vmem:[#allocation15 + $0x8] sm:$0xff] }
  0x68   :  { %7015 = vst [vmem:[#allocation58_spill] sm:$0xff] %v5968_v5  ;;  %v5990_v16 = vld [vmem:[#allocation9] sm:$0x1]  ;;  %v5992_v17 = vld [vmem:[#allocation9 + $0x1] sm:$0x1]  ;;  %v6058_v50 = vld [vmem:[#allocation16] sm:$0xff] }
  0x69   :  { %7016 = vst [vmem:[#allocation59_spill] sm:$0xff] %v5970_v6  ;;  %v5994_v18 = vld [vmem:[#allocation9 + $0x2] sm:$0x1]  ;;  %v5996_v19 = vld [vmem:[#allocation9 + $0x3] sm:$0x1]  ;;  %v6060_v51 = vld [vmem:[#allocation16 + $0x8] sm:$0xff] }
  0x6a   :  { %7017 = vst [vmem:[#allocation60_spill] sm:$0xff] %v5972_v7  ;;  %v5998_v20 = vld [vmem:[#allocation9 + $0x4] sm:$0x1]  ;;  %v6000_v21 = vld [vmem:[#allocation9 + $0x5] sm:$0x1]  ;;  %v6064_v53 = vld [vmem:[#allocation16 + $0x18] sm:$0xff] }
  0x6b   :  { %7018 = vst [vmem:[#allocation61_spill] sm:$0xff] %v5974_v8  ;;  %v6002_v22 = vld [vmem:[#allocation9 + $0x6] sm:$0x1]  ;;  %v6004_v23 = vld [vmem:[#allocation9 + $0x7] sm:$0x1]  ;;  %v6066_v54 = vld [vmem:[#allocation18] sm:$0xff] }
  0x6c   :  { %7019 = vst [vmem:[#allocation62_spill] sm:$0xff] %v5976_v9  ;;  %v6010_v28 = vld [vmem:[#allocation30] sm:$0x1]  ;;  %v6016_v33 = vld [vmem:[#allocation30 + $0x1] sm:$0x1]  ;;  %v6054_v48 = vld [vmem:[#allocation15] sm:$0xff] }
  0x6d   :  { %7020 = vst [vmem:[#allocation63_spill] sm:$0xff] %v5978_v10  ;;  %v6019_v34 = vmul.f32 -1000000.0, %v5990_v16  ;;  %v6022_v35 = vmul.f32 -1000000.0, %v5992_v17  ;;  %v6062_v52 = vld [vmem:[#allocation16 + $0x10] sm:$0xff] }
  0x6e   :  { %7021 = vst [vmem:[#allocation64_spill] sm:$0xff] %v5980_v11  ;;  %v6025_v36 = vmul.f32 -1000000.0, %v5994_v18  ;;  %v6028_v37 = vmul.f32 -1000000.0, %v5996_v19  ;;  %v6068_v55 = vld [vmem:[#allocation18 + $0x8] sm:$0xff] }
  0x6f   :  { %7022 = vst [vmem:[#allocation65_spill] sm:$0xff] %v5982_v12  ;;  %v6031_v38 = vmul.f32 -1000000.0, %v5998_v20  ;;  %v6034_v39 = vmul.f32 -1000000.0, %v6000_v21  ;;  %v6070_v56 = vld [vmem:[#allocation18 + $0x10] sm:$0xff] }
  0x70   :  { %7023 = vst [vmem:[#allocation66_spill] sm:$0xff] %v5984_v13  ;;  %v6037_v40 = vmul.f32 -1000000.0, %v6002_v22  ;;  %v6040_v41 = vmul.f32 -1000000.0, %v6004_v23  ;;  %v6072_v57 = vld [vmem:[#allocation18 + $0x18] sm:$0xff] }
  0x71   :  { %7024 = vst [vmem:[#allocation67_spill] sm:$0xff] %v5986_v14  ;;  %v6042_v42 = vld [vmem:[#allocation30 + $0x2] sm:$0x1]  ;;  %v6044_v43 = vld [vmem:[#allocation30 + $0x3] sm:$0x1]  ;;  %v6080_v61 = vld [vmem:[#allocation22 + $0x8] sm:$0xff] }
  0x72   :  { %7025 = vst [vmem:[#allocation68_spill] sm:$0xff] %v5988_v15  ;;  %v6046_v44 = vld [vmem:[#allocation30 + $0x4] sm:$0x1]  ;;  %v6048_v45 = vld [vmem:[#allocation30 + $0x5] sm:$0x1]  ;;  %v6078_v60 = vld [vmem:[#allocation22] sm:$0xff] }
  0x73   :  { %7026 = vst [vmem:[#allocation69_spill] sm:$0xff] %v5990_v16  ;;  %v6050_v46 = vld [vmem:[#allocation30 + $0x6] sm:$0x1]  ;;  %v6052_v47 = vld [vmem:[#allocation30 + $0x7] sm:$0x1]  ;;  %v6082_v62 = vld [vmem:[#allocation22 + $0x10] sm:$0xff] }
  0x74   :  { %7027 = vst [vmem:[#allocation70_spill] sm:$0xff] %v5992_v17  ;;  %v6074_v58 = vld [vmem:[#allocation19] sm:$0x1]  ;;  %v6076_v59 = vld [vmem:[#allocation21] sm:$0x1]  ;;  %v6086_v32 = vld [vmem:[#allocation24] sm:$0xff] }
  0x75   :  { %7028 = vst [vmem:[#allocation71_spill] sm:$0xff] %v5994_v18  ;;  %v6084_v63 = vld [vmem:[#allocation22 + $0x18] sm:$0xff]  ;;  %v6088_v31 = vld [vmem:[#allocation24 + $0x8] sm:$0xff]  ;;  %v6090_v30 = vld [vmem:[#allocation24 + $0x10] sm:$0xff] }
  0x76   :  { %7029 = vst [vmem:[#allocation72_spill] sm:$0xff] %v5996_v19  ;;  %v6092_v29 = vld [vmem:[#allocation24 + $0x18] sm:$0xff]  ;;  %v6094_v27 = vld [vmem:[#allocation25] sm:$0x1]  ;;  %v6096_v26 = vld [vmem:[#allocation27] sm:$0x1] }
  0x77   :  { %7030 = vst [vmem:[#allocation73_spill] sm:$0xff] %v5998_v20  ;;  %v6098_v25 = vld [vmem:[#allocation28] sm:$0xff]  ;;  %v6100_v24 = vld [vmem:[#allocation28 + $0x8] sm:$0xff]  ;;  %v6102_v7 = vld [vmem:[#allocation28 + $0x10] sm:$0xff] }
  0x78   :  { %7031 = vst [vmem:[#allocation74_spill] sm:$0xff] %v6000_v21  ;;  %v6104_v6 = vld [vmem:[#allocation28 + $0x18] sm:$0xff]  ;;  %v6109_v5 = vld [vmem:[%s6909_s17] sm:$0xff]  ;;  %v6114_v4 = vld [vmem:[%s6909_s17 + $0x8] sm:$0xff] }
  0x79   :  { %7032 = vst [vmem:[#allocation75_spill] sm:$0xff] %v6002_v22  ;;  %v6116_v3 = vld [vmem:[#allocation31] sm:$0xff]  ;;  %v6118_v2 = vld [vmem:[#allocation31 + $0x8] sm:$0xff]  ;;  %v6120_v1 = vld [vmem:[#allocation31 + $0x10] sm:$0xff] }
  0x7a   :  { %7033 = vst [vmem:[#allocation76_spill] sm:$0xff] %v6004_v23  ;;  %v6122_v0 = vld [vmem:[#allocation31 + $0x18] sm:$0xff]  ;;  %v6126_v23 = vld [vmem:[#allocation33 + $0x8] sm:$0xff] }
  0x7b   :  { %7034 = vst [vmem:[#allocation77_spill] sm:$0xff] %v6010_v28  ;;  %v369_v22 = vld [vmem:[#allocation13] sm:$0xff] }
  0x7c   :  { %7035 = vst [vmem:[#allocation78_spill] sm:$0xff] %v6016_v33 }
  0x7d   :  { %7036 = vst [vmem:[#allocation79_spill] sm:$0xff] %v6019_v34 }
  0x7e   :  { %7037 = vst [vmem:[#allocation80_spill] sm:$0xff] %v6022_v35 }
  0x7f   :  { %7038 = vst [vmem:[#allocation81_spill] sm:$0xff] %v6025_v36 }
  0x80   :  { %7039 = vst [vmem:[#allocation82_spill] sm:$0xff] %v6028_v37 }
  0x81   :  { %7040 = vst [vmem:[#allocation83_spill] sm:$0xff] %v6031_v38 }
  0x82   :  { %7041 = vst [vmem:[#allocation84_spill] sm:$0xff] %v6034_v39 }
  0x83   :  { %7042 = vst [vmem:[#allocation85_spill] sm:$0xff] %v6037_v40  ;;  %v6128_v40 = vld [vmem:[#allocation33 + $0x10] sm:$0xff] }
  0x84   :  { %7043 = vst [vmem:[#allocation86_spill] sm:$0xff] %v6040_v41  ;;  %v6124_v41 = vld [vmem:[#allocation33] sm:$0xff] }
  0x85   :  { %7044 = vst [vmem:[#allocation87_spill] sm:$0xff] %v6042_v42 }
  0x86   :  { %7045 = vst [vmem:[#allocation88_spill] sm:$0xff] %v6044_v43 }
  0x87   :  { %7046 = vst [vmem:[#allocation89_spill] sm:$0xff] %v6046_v44 }
  0x88   :  { %7047 = vst [vmem:[#allocation90_spill] sm:$0xff] %v6048_v45 }
  0x89   :  { %7048 = vst [vmem:[#allocation91_spill] sm:$0xff] %v6050_v46 }
  0x8a   :  { %7049 = vst [vmem:[#allocation92_spill] sm:$0xff] %v6052_v47 }
  0x8b   :  { %7050 = vst [vmem:[#allocation93_spill] sm:$0xff] %v6054_v48 }
  0x8c   :  { %7051 = vst [vmem:[#allocation94_spill] sm:$0xff] %v6056_v49 }
  0x8d   :  { %7052 = vst [vmem:[#allocation95_spill] sm:$0xff] %v6058_v50 }
  0x8e   :  { %7053 = vst [vmem:[#allocation96_spill] sm:$0xff] %v6060_v51 }
  0x8f   :  { %7054 = vst [vmem:[#allocation97_spill] sm:$0xff] %v6062_v52 }
  0x90   :  { %7055 = vst [vmem:[#allocation98_spill] sm:$0xff] %v6064_v53 }
  0x91   :  { %7056 = vst [vmem:[#allocation99_spill] sm:$0xff] %v6066_v54 }
  0x92   :  { %7057 = vst [vmem:[#allocation100_spill] sm:$0xff] %v6068_v55 }
  0x93   :  { %7058 = vst [vmem:[#allocation101_spill] sm:$0xff] %v6070_v56 }
  0x94   :  { %7059 = vst [vmem:[#allocation102_spill] sm:$0xff] %v6072_v57 }
  0x95   :  { %7060 = vst [vmem:[#allocation103_spill] sm:$0xff] %v6074_v58 }
  0x96   :  { %7061 = vst [vmem:[#allocation104_spill] sm:$0xff] %v6076_v59 }
  0x97   :  { %7062 = vst [vmem:[#allocation105_spill] sm:$0xff] %v6078_v60 }
  0x98   :  { %7063 = vst [vmem:[#allocation106_spill] sm:$0xff] %v6080_v61 }
  0x99   :  { %7064 = vst [vmem:[#allocation107_spill] sm:$0xff] %v6082_v62 }
  0x9a   :  { %7065 = vst [vmem:[#allocation108_spill] sm:$0xff] %v6086_v32 }
  0x9b   :  { %7066 = vst [vmem:[#allocation109_spill] sm:$0xff] %v6088_v31 }
  0x9c   :  { %7067 = vst [vmem:[#allocation110_spill] sm:$0xff] %v6090_v30 }
  0x9d   :  { %7068 = vst [vmem:[#allocation111_spill] sm:$0xff] %v6092_v29 }
  0x9e   :  { %7069 = vst [vmem:[#allocation112_spill] sm:$0xff] %v6094_v27 }
  0x9f   :  { %7070 = vst [vmem:[#allocation113_spill] sm:$0xff] %v6096_v26 }
  0xa0   :  { %7071 = vst [vmem:[#allocation114_spill] sm:$0xff] %v6098_v25 }
  0xa1   :  { %7072 = vst [vmem:[#allocation115_spill] sm:$0xff] %v6100_v24 }
  0xa2   :  { %7073 = vst [vmem:[#allocation116_spill] sm:$0xff] %v6102_v7 }
  0xa3   :  { %7074 = vst [vmem:[#allocation117_spill] sm:$0xff] %v6104_v6 }
  0xa4   :  { %7075 = vst [vmem:[#allocation118_spill] sm:$0xff] %v6109_v5  ;;  %v6130_v5 = vld [vmem:[#allocation33 + $0x18] sm:$0xff] }
  0xa5   :  { %7076 = vst [vmem:[#allocation119_spill] sm:$0xff] %v6114_v4  ;;  %v6135_v4 = vld [vmem:[%s6912_s20] sm:$0x1]  ;;  %s6146_s20 = smov 0  }
  0xa6   :  { %7077 = vst [vmem:[#allocation120_spill] sm:$0xff] %v6116_v3  ;;  %v364_v3 = vld [vmem:[#allocation12] sm:$0xff] }
  0xa7   :  { %7078 = vst [vmem:[#allocation121_spill] sm:$0xff] %v6118_v2  ;;  %v365_v2 = vld [vmem:[#allocation12 + $0x8] sm:$0xff] }
  0xa8   :  { %7079 = vst [vmem:[#allocation122_spill] sm:$0xff] %v6120_v1 }
  0xa9   :  { %7080 = vst [vmem:[#allocation123_spill] sm:$0xff] %v6122_v0 }
  0xaa   :  { %7081 = vst [vmem:[#allocation124_spill] sm:$0xff] %v6124_v41 }
  0xab   :  { %7082 = vst [vmem:[#allocation125_spill] sm:$0xff] %v6126_v23 }
  0xac   :  { %7083 = vst [vmem:[#allocation126_spill] sm:$0xff] %v6128_v40 }
  0xad   :  { %7084 = vst [vmem:[#allocation127_spill] sm:$0xff] %v6130_v5 }
  0xae   :  { %7085 = vst [vmem:[#allocation128_spill] sm:$0xff] %v6135_v4 }
  0xaf   :  { %367 = vst.msk [vmem:[#allocation2] sm:$0xff] %vm366_vm0, %v364_v3 }
  0xb0   :  { %368 = vst.msk [vmem:[#allocation2 + $0x8] sm:$0xff] %vm366_vm0, %v365_v2 }
  0xb1   :  { %370 = vst.msk [vmem:[#allocation3] sm:$0xff] %vm366_vm0, %v369_v22 }
  0xb6   :  { %v456_v41 = vld [vmem:[#allocation2] sm:$0xff]  }
  0xb7   :  { %v458_v23 = vld [vmem:[#allocation2 + $0x8] sm:$0xff]  }
  0xb8   :  { %v459_v1 = vld [vmem:[#allocation3] sm:$0xff]  }
  0xb9 LB: > { %v7086_v62 = vld [vmem:[#allocation107_spill] sm:$0xff]  ;;  %v7087_v61 = vld [vmem:[#allocation106_spill] sm:$0xff]  ;;  %v7088_v60 = vld [vmem:[#allocation105_spill] sm:$0xff]  ;;  %vm673_vm1 = vcmask 130048   ;;  %s4967_s23 = sshll.u32 %s5701_s20, 3  ;;  %v486_v20 = vsel %vm366_vm0, %v5689_v1, 0  ;;  %v5689_v1 = vphi %v459_v1, %v7186_v1   ;;  %s5701_s20 = sphi %s6146_s20, %s467_s20   ;;  %v5697_v41 = vphi %v456_v41, %v7188_v41   ;;  %v5693_v23 = vphi %v458_v23, %v7187_v23  }
  0xba   : > { %v7089_v57 = vld [vmem:[#allocation102_spill] sm:$0xff]  ;;  %v7090_v32 = vld [vmem:[#allocation108_spill] sm:$0xff]  ;;  %v7091_v31 = vld [vmem:[#allocation109_spill] sm:$0xff]  ;;  %v6199_v19 = vand.u32 4294901760, %v486_v20  ;;  %s482_s27 = scalar_lea.vmem [#allocation4], %s4967_s23  ;;  %s5726_s6 = smov 64  }
  0xbb   : > { %v7092_v30 = vld [vmem:[#allocation110_spill] sm:$0xff]  ;;  %v7093_v29 = vld [vmem:[#allocation111_spill] sm:$0xff]  ;;  %v7096_v7 = vld [vmem:[#allocation116_spill] sm:$0xff]  ;;  %s5727_s29 = smov 96   ;;  %s5728_s18 = smov 32   ;;  %vm2961_vm10 = vcmask 57344  }
  0xbc   : > { %v7094_v25 = vld [vmem:[#allocation114_spill] sm:$0xff]  ;;  %v7095_v24 = vld [vmem:[#allocation115_spill] sm:$0xff]  ;;  %v7097_v6 = vld [vmem:[#allocation117_spill] sm:$0xff]  ;;  %v509_v34 = vsub.f32 %v486_v20, %v6199_v19  ;;  %vm3050_vm11 = vcmask 64512   ;;  %vm4604_vm12 = vcmask 1041409   ;;  %vm4607_vm13 = vcmask 1042434  }
  0xbd   : > { %v7098_v56 = vld [vmem:[#allocation101_spill] sm:$0xff]  ;;  %v7099_v55 = vld [vmem:[#allocation100_spill] sm:$0xff]  ;;  %v7100_v54 = vld [vmem:[#allocation99_spill] sm:$0xff]  ;;  %vm4610_vm14 = vcmask 1043459   ;;  %vm4613_vm15 = vcmask 1044484   ;;  %s5729_s10 = smov 112  }
  0xbe   : > { %v7101_v48 = vld [vmem:[#allocation93_spill] sm:$0xff]  ;;  %v7102_v49 = vld [vmem:[#allocation94_spill] sm:$0xff]  ;;  %v7103_v50 = vld [vmem:[#allocation95_spill] sm:$0xff]  ;;  %s4821_s0 = scalar_lea.vmem [#allocation34], %s4967_s23  ;;  %s467_s20 = sadd.s32 1, %s5701_s20  }
  0xbf   : > { %v7104_v51 = vld [vmem:[#allocation96_spill] sm:$0xff]  ;;  %v7105_v52 = vld [vmem:[#allocation97_spill] sm:$0xff]  ;;  %v7106_v53 = vld [vmem:[#allocation98_spill] sm:$0xff]  ;;  %v6168_v4 = vand.u32 4294901760, %v7103_v50  ;;  %v6171_v40 = vand.u32 4294901760, %v7102_v49  ;;  %v6174_v5 = vand.u32 4294901760, %v7101_v48 }
  0xc0   : > { %v6159_v2 = vand.u32 4294901760, %v7106_v53  ;;  %v6162_v3 = vand.u32 4294901760, %v7105_v52  ;;  %v6165_v22 = vand.u32 4294901760, %v7104_v51  ;;  %v7108_v59 = vld [vmem:[#allocation104_spill] sm:$0xff]  ;;  %v7109_v58 = vld [vmem:[#allocation103_spill] sm:$0xff]  ;;  %v7111_v26 = vld [vmem:[#allocation113_spill] sm:$0xff] }
  0xc1   : > { %v6187_v38 = vsub.f32 %v7103_v50, %v6168_v4  ;;  %v6196_v37 = vsub.f32 %v7101_v48, %v6174_v5  ;;  %v483_v50 = vld [vmem:[%s482_s27] sm:$0xff]  ;;  %v7112_v27 = vld [vmem:[#allocation112_spill] sm:$0xff]  ;;  %v7114_v28 = vld [vmem:[#allocation77_spill] sm:$0xff]  ;;  %p466_p0 = scmp.ge.s32.totalorder %s467_s20, 6 }
  0xc2   : > { %v530_v0 = vsub.f32 %v7106_v53, %v6159_v2  ;;  %501 = vmatpush.msra.mxu0 %v6159_v2  ;;  %v536_v39 = vsub.f32 %v7105_v52, %v6162_v3  ;;  %601 = vmatpush.msra.mxu3 %v6159_v2  ;;  %v542_v21 = vsub.f32 %v7104_v51, %v6165_v22  ;;  %v675_v48 = vsel %vm673_vm1, %v483_v50, 0  ;;  %v7115_v8 = vld [vmem:[#allocation61_spill] sm:$0xff]  ;;  %v7116_v33 = vld [vmem:[#allocation78_spill] sm:$0xff]  ;;  %v7118_v10 = vld [vmem:[#allocation63_spill] sm:$0xff]  ;;  %s4865_s7 = sshll.u32 (%p466_p0), %s6914_s22, 4  ;;  %s5730_s11 = smov (%p466_p0), [#allocation35]   ;;  %s4866_s7 = int_to_ptr.hbm [resolvable:$true] %s4865_s7 }
  0xc3   : > { %v6192_v53 = vsub.f32 %v7102_v49, %v6171_v40  ;;  %v549_v1 = vand.u32 4294901760, %v6187_v38  ;;  %v6949_v18 = vand.u32 4294901760, %v6196_v37  ;;  %v6210_v16 = vand.u32 4294901760, %v675_v48  ;;  %v7117_v9 = vld [vmem:[#allocation62_spill] sm:$0xff]  ;;  %v7119_v11 = vld [vmem:[#allocation64_spill] sm:$0xff]  ;;  %v7120_v42 = vld [vmem:[#allocation87_spill] sm:$0xff] }
  0xc4   : > { %572 = vmatpush.msra.mxu2 %v530_v0  ;;  %503 = vmatpush.msra.mxu0 %v6162_v3  ;;  %v531_v52 = vand.u32 4294901760, %v530_v0  ;;  %v537_v51 = vand.u32 4294901760, %v536_v39  ;;  %v543_v36 = vand.u32 4294901760, %v542_v21  ;;  %v7121_v12 = vld [vmem:[#allocation65_spill] sm:$0xff]  ;;  %v7122_v13 = vld [vmem:[#allocation66_spill] sm:$0xff]  ;;  %s4863_s28 = sshll.u32 (%p466_p0), %s5730_s11, 4  ;;  %s4864_s28 = int_to_ptr.vmem [resolvable:$true] %s4863_s28 }
  0xc5   : > { %603 = vmatpush.msra.mxu3 %v6162_v3  ;;  %v720_v49 = vand.u32 4294901760, %v6192_v53  ;;  %v550_v46 = vsub.f32 %v6187_v38, %v549_v1  ;;  %v727_v50 = vsub.f32 %v6196_v37, %v6949_v18  ;;  %v6220_v20 = vsub.f32 %v675_v48, %v6210_v16  ;;  %s5731_s22 = smov (%p466_p0), [#allocation34]   ;;  %s4852_s14 = sshll.u32 (%p466_p0), %s6913_s21, 4  ;;  %s4853_s14 = int_to_ptr.hbm [resolvable:$true] %s4852_s14 }
  0xc6   : > { %575 = vmatpush.msra.mxu2 %v536_v39  ;;  %v532_v35 = vsub.f32 %v530_v0, %v531_v52  ;;  %505 = vmatpush.msra.mxu0 %v6165_v22  ;;  %v538_v17 = vsub.f32 %v536_v39, %v537_v51  ;;  %v544_v47 = vsub.f32 %v542_v21, %v543_v36  ;;  %v510_v39 = vand.u32 4294901760, %v509_v34  ;;  %s4850_s2 = sshll.u32 (%p466_p0), %s5731_s22, 4  ;;  %s7189_s16 = sld [smem:[#allocation138_spill]] (%p466_p0)  ;;  %s4851_s2 = int_to_ptr.vmem [resolvable:$true] %s4850_s2 }
  0xc7   : > { %605 = vmatpush.msra.mxu3 %v6165_v22  ;;  %v721_v45 = vsub.f32 %v6192_v53, %v720_v49  ;;  %v6225_v18 = vand.u32 4294901760, %v6220_v20  ;;  %s5732_s21 = smov (%p466_p0), [#allocation37]   ;;  %s7190_s17 = sld [smem:[#allocation139_spill]] (%p466_p0) }
  0xc8   : > { %v533_v15 = vand.u32 4294901760, %v532_v35  ;;  %578 = vmatpush.msra.mxu2 %v542_v21  ;;  %v539_v0 = vand.u32 4294901760, %v538_v17  ;;  %507 = vmatpush.msra.mxu0 %v6168_v4  ;;  %v545_v44 = vand.u32 4294901760, %v544_v47  ;;  %v511_v43 = vsub.f32 %v509_v34, %v510_v39  ;;  %s4876_s26 = sshll.u32 (%p466_p0), %s5732_s21, 4  ;;  %s4877_s26 = int_to_ptr.vmem [resolvable:$true] %s4876_s26 }
  0xc9   : > { %607 = vmatpush.msra.mxu3 %v6168_v4  ;;  %v722_v14 = vand.u32 4294901760, %v721_v45  ;;  %v6228_v17 = vand.u32 4294901760, %v7089_v57  ;;  %v551_v21 = vand.u32 4294901760, %v550_v46  ;;  %v698_v45 = vsub.f32 %v6220_v20, %v6225_v18 }
  0xca   : > { %630 = vmatpush.msrb.mxu0 %v531_v52  ;;  %534 = vmatpush.msra.mxu1 %v533_v15  ;;  %v512_v35 = vand.u32 4294901760, %v511_v43  ;;  %v728_v15 = vand.u32 4294901760, %v727_v50  ;;  %v844_v46 = vsel %vm366_vm0, %v5697_v41, 0 }
  0xcb   : > { %581 = vmatpush.msra.mxu2 %v6187_v38  ;;  %611 = vmatmul.f32.vlgmr.msra.gmra.mxu3 %v510_v39  ;;  %v6233_v38 = vand.u32 4294901760, %v7098_v56  ;;  %v6238_v47 = vsub.f32 %v7089_v57, %v6228_v17  ;;  %v6244_v43 = vand.u32 4294901760, %v698_v45 }
  0xcc   : > { %584 = vmatmul.f32.vlgmr.msra.gmra.mxu2 %v509_v34  ;;  %540 = vmatpush.msra.mxu1 %v539_v0  ;;  %v6241_v34 = vand.u32 4294901760, %v7099_v55  ;;  %s4878_s19 = sshll.u32 (%p466_p0), %s7189_s16, 4  ;;  %s4879_s19 = int_to_ptr.hbm [resolvable:$true] %s4878_s19 }
  0xcd   : > { %634 = vmatpush.msrb.mxu0 %v537_v51  ;;  %692 = vmatpush.msrb.mxu2 %v6171_v40  ;;  %v6260_v51 = vand.u32 4294901760, %v844_v46  ;;  %s4892_s20 = sshll.u32 (%p466_p0), %s7190_s17, 4  ;;  %s4893_s20 = int_to_ptr.hbm [resolvable:$true] %s4892_s20 }
  0xce   : > { %723 = vmatpush.msrb.mxu3 %v722_v14  ;;  %546 = vmatpush.msra.mxu1 %v545_v44  ;;  %v6250_v14 = vsub.f32 %v7098_v56, %v6233_v38  ;;  %v6253_v44 = vand.u32 4294901760, %v7100_v54  ;;  %v900_v48 = vsub.f32 %v7099_v55, %v6241_v34 }
  0xcf   : > { %513 = vmatmul.f32.vlgmr.msra.gmra.mxu0 %v512_v35  ;;  %694 = vmatpush.msrb.mxu2 %v6174_v5 }
  0xd0   : > { %638 = vmatpush.msrb.mxu0 %v543_v36  ;;  %552 = vmatpush.msra.mxu1 %v551_v21  ;;  %v889_v36 = vand.u32 4294901760, %v6238_v47  ;;  %v895_v52 = vand.u32 4294901760, %v6250_v14  ;;  %v901_v50 = vand.u32 4294901760, %v900_v48 }
  0xd1   : > { %729 = vmatpush.msrb.mxu3 %v728_v15  ;;  %554 = vmatmul.f32.vlgmr.msra.gmra.mxu1 %v6199_v19 }
  0xd2   : > { %642 = vmatpush.msrb.mxu0 %v549_v1  ;;  %661 = vmatpush.msrb.mxu1 %v6159_v2  ;;  %v906_v1 = vsub.f32 %v7100_v54, %v6253_v44  ;;  %v890_v2 = vsub.f32 %v6238_v47, %v889_v36  ;;  %v902_v39 = vsub.f32 %v900_v48, %v901_v50 }
  0xd3   : > { %803 = vmatpush.msra.mxu2 %v720_v49  ;;  %731 = vmatmul.f32.vlgmr.msrb.gmra.mxu3 %v6210_v16  ;;  %v7107_v49 = vand.u32 4294901760, %v6196_v37 }
  0xd4   : > { %700 = vmatmul.f32.vlgmr.msrb.gmra.mxu2 %v6244_v43  ;;  %663 = vmatpush.msrb.mxu1 %v6162_v3  ;;  %v867_v3 = vsub.f32 %v844_v46, %v6260_v51  ;;  %v907_v0 = vand.u32 4294901760, %v906_v1 }
  0xd5   : > { %751 = vmatpush.msra.mxu0 %v6192_v53  ;;  %807 = vmatpush.msra.mxu2 %v7107_v49  ;;  %v896_v53 = vsub.f32 %v6250_v14, %v895_v52 }
  0xd6   : > { %828 = vmatpush.msra.mxu3 %v6171_v40  ;;  %665 = vmatpush.msrb.mxu1 %v6165_v22  ;;  %v891_v22 = vand.u32 4294901760, %v890_v2  ;;  %v908_v21 = vsub.f32 %v906_v1, %v907_v0 }
  0xd7   : > { %644 = vmatmul.f32.vlgmr.msrb.gmra.mxu0 %v6199_v19  ;;  %930 = vmatpush.msrb.mxu2 %v6238_v47 }
  0xd8   : > { %754 = vmatpush.msra.mxu0 %v6196_v37  ;;  %830 = vmatpush.msra.mxu3 %v6174_v5  ;;  %v868_v37 = vand.u32 4294901760, %v867_v3  ;;  %v909_v35 = vand.u32 4294901760, %v908_v21 }
  0xd9   : > { %667 = vmatpush.msrb.mxu1 %v6168_v4  ;;  %933 = vmatpush.msrb.mxu2 %v6250_v14  ;;  %v897_v4 = vand.u32 4294901760, %v896_v53 }
  0xda   : > { %669 = vmatmul.f32.vlgmr.msrb.gmra.mxu1 %v6199_v19  ;;  %859 = vmatpush.msrb.mxu0 %v6228_v17  ;;  %v903_v19 = vand.u32 4294901760, %v902_v39 }
  0xdb   : > { %776 = vmatpush.msra.mxu1 %v6171_v40  ;;  %832 = vmatmul.f32.vlgmr.msra.gmra.mxu3 %v6210_v16  ;;  %v869_v40 = vsub.f32 %v867_v3, %v868_v37 }
  0xdc   : > { %809 = vmatmul.f32.vlgmr.msra.gmra.mxu2 %v6210_v16  ;;  %959 = vmatpush.msrb.mxu3 %v6228_v17 }
  0xdd   : > { %778 = vmatpush.msra.mxu1 %v6174_v5  ;;  %861 = vmatpush.msrb.mxu0 %v6233_v38  ;;  %v870_v5 = vand.u32 4294901760, %v869_v40 }
  0xde   : > { %936 = vmatpush.msrb.mxu2 %v900_v48  ;;  %961 = vmatpush.msrb.mxu3 %v6233_v38 }
  0xdf   : > { %892 = vmatpush.msrb.mxu1 %v891_v22  ;;  %757 = vmatmul.f32.vlgmr.msra.gmra.mxu0 %v6220_v20 }
  0xe0   : > { %863 = vmatpush.msrb.mxu0 %v6241_v34  ;;  %939 = vmatpush.msrb.mxu2 %v906_v1 }
  0xe1   : > { %898 = vmatpush.msrb.mxu1 %v897_v4  ;;  %963 = vmatpush.msrb.mxu3 %v6241_v34 }
  0xe2   : > { %782 = vmatmul.f32.vlgmr.msra.gmra.mxu1 %v6225_v18  ;;  %865 = vmatpush.msrb.mxu0 %v6253_v44 }
  0xe3   : > { %904 = vmatpush.msrb.mxu1 %v903_v19  ;;  %965 = vmatpush.msrb.mxu3 %v6253_v44 }
  0xe4   : > { %942 = vmatmul.f32.vlgmr.msrb.gmra.mxu2 %v867_v3  ;;  %969 = vmatmul.f32.vlgmr.msrb.gmra.mxu3 %v868_v37 }
  0xe5   : > { %910 = vmatpush.msrb.mxu1 %v909_v35  ;;  %988 = vmatpush.msra.mxu0 %v889_v36 }
  0xe7   : > { %1019 = vmatpush.msra.mxu1 %v6228_v17  ;;  %871 = vmatmul.f32.vlgmr.msrb.gmra.mxu0 %v870_v5 }
  0xe8   : > { %992 = vmatpush.msra.mxu0 %v895_v52 }
  0xe9   : > { %1021 = vmatpush.msra.mxu1 %v6233_v38 }
  0xea   : > { %912 = vmatmul.f32.vlgmr.msrb.gmra.mxu1 %v6260_v51  ;;  %996 = vmatpush.msra.mxu0 %v901_v50 }
  0xeb   : > { %1023 = vmatpush.msra.mxu1 %v6241_v34  ;;  %v841_v34 = vperm.slane %v7108_v59, 0 }
  0xec   : > { %1000 = vmatpush.msra.mxu0 %v907_v0 }
  0xed   : > { %1025 = vmatpush.msra.mxu1 %v6253_v44 }
  0xef   : > { %1002 = vmatmul.f32.vlgmr.msra.gmra.mxu0 %v6260_v51 }
  0xf2   : > { %1027 = vmatmul.f32.vlgmr.msra.gmra.mxu1 %v6260_v51 }
 0x14c   : > { %v514_v45 = vpop.f32.mrf.mxu0 }
 0x14e   : > { %v555_v15 = vpop.f32.mrf.mxu1  ;;  %v612_v17 = vpop.f32.mrf.mxu3 }
 0x14f   : > { %v585_v47 = vpop.f32.mrf.mxu2  ;;  %v556_v19 = vadd.f32 %v555_v15, %v514_v45 }
 0x151   : > { %v586_v40 = vadd.f32 %v585_v47, %v556_v19 }
 0x153   : > { %v613_v35 = vadd.f32 %v612_v17, %v586_v40 }
 0x154   : > { %v645_v46 = vpop.f32.mrf.mxu0 }
 0x155   : > { %v646_v5 = vadd.f32 %v645_v46, %v613_v35 }
 0x156   : > { %v732_v38 = vpop.f32.mrf.mxu3 }
 0x157   : > { %v670_v14 = vpop.f32.mrf.mxu1  ;;  %v701_v36 = vpop.f32.mrf.mxu2 }
 0x158   : > { %v671_v54 = vadd.f32 %v670_v14, %v646_v5 }
 0x15a   : > { %v702_v55 = vadd.f32 %v701_v36, %v671_v54 }
 0x15c   : > { %v758_v48 = vpop.f32.mrf.mxu0 }
 0x15e   : > { %v833_v49 = vpop.f32.mrf.mxu3 }
 0x15f   : > { %v783_v52 = vpop.f32.mrf.mxu1  ;;  %v810_v1 = vpop.f32.mrf.mxu2 }
 0x164   : > { %v872_v2 = vpop.f32.mrf.mxu0 }
 0x165   : > { %v873_v44 = vadd.f32 %v872_v2, %v841_v34  ;;  %v733_v34 = vadd.f32 %v732_v38, %v702_v55 }
 0x167   : > { %v913_v3 = vpop.f32.mrf.mxu1  ;;  %v943_v50 = vpop.f32.mrf.mxu2  ;;  %v759_v2 = vadd.f32 %v758_v48, %v733_v34 }
 0x168   : > { %v914_v53 = vadd.f32 %v913_v3, %v873_v44  ;;  %v970_v51 = vpop.f32.mrf.mxu3 }
 0x169   : > { %v784_v56 = vadd.f32 %v783_v52, %v759_v2 }
 0x16a   : > { %v944_v0 = vadd.f32 %v943_v50, %v914_v53  ;;  %v837_v50 = vperm.slane %v7109_v58, 0 }
 0x16b   : > { %v811_v44 = vadd.f32 %v810_v1, %v784_v56 }
 0x16c   : > { %v971_v22 = vadd.f32 %v970_v51, %v944_v0  ;;  %v1003_v39 = vpop.f32.mrf.mxu0 }
 0x16d   : > { %v834_v3 = vadd.f32 %v833_v49, %v811_v44 }
 0x16e   : > { %v1004_v37 = vadd.f32 %v1003_v39, %v971_v22 }
 0x16f   : > { %v1028_v4 = vpop.f32.mrf.mxu1  ;;  %v839_v53 = vadd.f32 %v837_v50, %v834_v3 }
 0x170   : > { %v1029_v21 = vadd.f32 %v1028_v4, %v1004_v37  ;;  %v1093_v37 = vand.u32 4294901760, %v6084_v63  ;;  %v1095_v4 = vand.u32 4294901760, %v7086_v62 }
 0x172   : > { %1052 = vrot.lane.b32.xlu0 %v1029_v21, %s5726_s6  ;;  %v1031_v51 = vadd.f32 %v1029_v21, %v839_v53  ;;  %v1123_v21 = vsub.f32 %v6084_v63, %v1093_v37  ;;  %v1129_v19 = vsub.f32 %v7086_v62, %v1095_v4  ;;  %1194 = vmatpush.msrb.mxu1 %v1093_v37 }
 0x173   : > { %1094 = vmatpush.msra.mxu2 %v1093_v37 }
 0x174   : > { %v4968_v0 = vmul.f32 -1.442695, %v1031_v51  ;;  %v1124_v40 = vand.u32 4294901760, %v1123_v21  ;;  %v1130_v35 = vand.u32 4294901760, %v1129_v19  ;;  %1165 = vmatpush.msrb.mxu0 %v1123_v21  ;;  %1196 = vmatpush.msrb.mxu1 %v1095_v4 }
 0x175   : > { %1096 = vmatpush.msra.mxu2 %v1095_v4 }
 0x176   : > { %5033 = vpow2.f32 %v4968_v0  ;;  %v1125_v5 = vsub.f32 %v1123_v21, %v1124_v40  ;;  %v1131_v34 = vsub.f32 %v1129_v19, %v1130_v35  ;;  %1168 = vmatpush.msrb.mxu0 %v1129_v19 }
 0x178   : > { %v1126_v2 = vand.u32 4294901760, %v1125_v5  ;;  %v1270_v5 = vsel %vm366_vm0, %v5693_v23, 0 }
 0x17a   : > { %1127 = vmatpush.msra.mxu3 %v1126_v2 }
 0x17c   : > { %v5034_v22 = vpop.eup %5033 }
 0x17d   : > { %v1035_v39 = vadd.f32 1.0, %v5034_v22  ;;  %v1097_v22 = vand.u32 4294901760, %v7087_v61 }
 0x17f   : > { %5035 = vrcp.f32 %v1035_v39  ;;  %v1047_v54 = vand.u32 2147483648, %v1035_v39  ;;  %vm1041_vm3 = vweird.f32 %v1035_v39  ;;  %v1045_v55 = vand.u32 2147483647, %v1035_v39  ;;  %1198 = vmatpush.msrb.mxu1 %v1097_v22  ;;  %1098 = vmatpush.msra.mxu2 %v1097_v22 }
 0x181   : > { %v1048_v14 = vor.u32 1.1754944e-38, %v1047_v54  ;;  %vm1046_vm5 = vcmp.eq.f32.partialorder %v1045_v55, 8.507059e+37 }
 0x185   : > { %v5036_v45 = vpop.eup %5035 }
 0x186   : > { %v1037_v15 = vmul.f32 %v5036_v45, %v1035_v39  ;;  %vm1042_vm2 = vweird.f32 %v5036_v45  ;;  %v1135_v39 = vsub.f32 %v7087_v61, %v1097_v22 }
 0x187   : > { %vm1043_vm4 = vmor %vm1041_vm3, %vm1042_vm2  ;;  %vm4616_vm2 = vcmask 1045509   ;;  %vm4619_vm3 = vcmask 1046534  }
 0x188   : > { %v1038_v47 = vsub.f32 1.0, %v1037_v15  ;;  %v1136_v15 = vand.u32 4294901760, %v1135_v39  ;;  %1171 = vmatpush.msrb.mxu0 %v1135_v39 }
 0x18a   : > { %v1039_v17 = vmul.f32 %v5036_v45, %v1038_v47 }
 0x18c   : > { %v1040_v46 = vadd.f32 %v5036_v45, %v1039_v17  ;;  %v1137_v17 = vsub.f32 %v1135_v39, %v1136_v15 }
 0x18e   : > { %v1044_v56 = vsel %vm1043_vm4, %v5036_v45, %v1040_v46  ;;  %v1099_v45 = vand.u32 4294901760, %v7088_v60  ;;  %v1138_v54 = vand.u32 4294901760, %v1137_v17  ;;  %vm4622_vm4 = vcmask 1047559  }
 0x18f   : > { %v1049_v38 = vsel %vm1046_vm5, %v1048_v14, %v1044_v56  ;;  %v1284_v14 = vand.u32 4294901760, %v7093_v29 }
 0x190   : > { %v1062_v3 = vsub.f32 1.0, %v1049_v38  ;;  %v1141_v47 = vsub.f32 %v7088_v60, %v1099_v45  ;;  %1200 = vmatpush.msrb.mxu1 %v1099_v45  ;;  %1100 = vmatpush.msra.mxu2 %v1099_v45 }
 0x192   : > { %v1142_v46 = vand.u32 4294901760, %v1141_v47  ;;  %1174 = vmatpush.msrb.mxu0 %v1141_v47  ;;  %1223 = vmatpush.msrb.mxu2 %v1124_v40 }
 0x194   : > { %v1143_v55 = vsub.f32 %v1141_v47, %v1142_v46  ;;  %1227 = vmatpush.msrb.mxu2 %v1130_v35  ;;  %1285 = vmatpush.msra.mxu0 %v1284_v14 }
 0x196   : > { %v1144_v56 = vand.u32 4294901760, %v1143_v55  ;;  %1231 = vmatpush.msrb.mxu2 %v1136_v15 }
 0x198   : > { %1235 = vmatpush.msrb.mxu2 %v1142_v46 }
 0x1e4   : > { %v1053_v36 = vpop.permute.xlu0 %1052 }
 0x1e5   : > { %v1055_v48 = vmul.f32 %v1053_v36, %v1049_v38  ;;  %v1314_v36 = vsub.f32 %v7093_v29, %v1284_v14 }
 0x1e7   : > { %1057 = vrot.lane.b32.xlu0 %v1055_v48, %s5726_s6 }
 0x259   : > { %v1058_v52 = vpop.permute.xlu0 %1057 }
 0x25a   : > { %v1060_v1 = vadd.f32 %v1058_v52, %v839_v53  ;;  %v1315_v52 = vand.u32 4294901760, %v1314_v36 }
 0x25c   : > { %5037 = vtanh.f32 %v1060_v1  ;;  %v1288_v1 = vand.u32 4294901760, %v7091_v31  ;;  %v1316_v21 = vsub.f32 %v1314_v36, %v1315_v52 }
 0x25e   : > { %v1317_v40 = vand.u32 4294901760, %v1316_v21 }
 0x260   : > { %1318 = vmatpush.msra.mxu1 %v1317_v40 }
 0x262   : > { %v5038_v49 = vpop.eup %5037 }
 0x263   : > { %1064 = vrot.lane.b32.xlu1 %v5038_v49, %s5727_s29  ;;  %v1290_v49 = vand.u32 4294901760, %v7090_v32 }
 0x265   : > { %v1332_v19 = vsub.f32 %v7090_v32, %v1290_v49 }
 0x26b   : > { %1068 = vrot.lane.b32.xlu1 %v5697_v41, %s5728_s18  ;;  %v1132_v41 = vand.u32 4294901760, %v1131_v34 }
 0x26d   : > { %1133 = vmatpush.msra.mxu3 %v1132_v41 }
 0x26f   : > { %1139 = vmatpush.msra.mxu3 %v1138_v54 }
 0x271   : > { %1145 = vmatpush.msra.mxu3 %v1144_v56 }
 0x273   : > { %1254 = vmatpush.msrb.mxu3 %v1093_v37  ;;  %v1326_v37 = vsub.f32 %v7091_v31, %v1288_v1  ;;  %v7183_v31 = vld [vmem:[#allocation124_spill] sm:$0xff] }
 0x274   : > { %v4644_v32 = vand.u32 4294901760, %v7183_v31 }
 0x275   : > { %1256 = vmatpush.msrb.mxu3 %v1095_v4  ;;  %v1327_v34 = vand.u32 4294901760, %v1326_v37 }
 0x277   : > { %1258 = vmatpush.msrb.mxu3 %v1097_v22  ;;  %v1328_v41 = vsub.f32 %v1326_v37, %v1327_v34 }
 0x279   : > { %1260 = vmatpush.msrb.mxu3 %v1099_v45 }
 0x2d5   : > { %v1065_v44 = vpop.permute.xlu1 %1064 }
 0x2d6   : > { %v1067_v53 = vmul.f32 %v1065_v44, %v1062_v3  ;;  %v1333_v44 = vand.u32 4294901760, %v1332_v19  ;;  %v1292_v3 = vand.u32 4294901760, %v1270_v5 }
 0x2dd   : > { %v1069_v50 = vpop.permute.xlu1 %1068 }
 0x2de   : > { %v1071_v51 = vmul.f32 %v1069_v50, %v1049_v38  ;;  %v1286_v38 = vand.u32 4294901760, %v7092_v30  ;;  %v1329_v50 = vand.u32 4294901760, %v1328_v41 }
 0x2e0   : > { %v1072_v0 = vadd.f32 %v1071_v51, %v1067_v53  ;;  %v1320_v48 = vsub.f32 %v7092_v30, %v1286_v38  ;;  %1287 = vmatpush.msra.mxu0 %v1286_v38  ;;  %v1334_v53 = vsub.f32 %v1332_v19, %v1333_v44 }
 0x2e2   : > { %1077 = vrot.lane.b32.xlu2 %v1072_v0, %s5727_s29  ;;  %1289 = vmatpush.msra.mxu0 %v1288_v1  ;;  %v1321_v4 = vand.u32 4294901760, %v1320_v48  ;;  %v1335_v51 = vand.u32 4294901760, %v1334_v53  ;;  %v1293_v0 = vsub.f32 %v1270_v5, %v1292_v3 }
 0x2e4   : > { %v1322_v35 = vsub.f32 %v1320_v48, %v1321_v4  ;;  %1291 = vmatpush.msra.mxu0 %v1290_v49  ;;  %v1294_v15 = vand.u32 4294901760, %v1293_v0 }
 0x2e6   : > { %v1323_v2 = vand.u32 4294901760, %v1322_v35  ;;  %v1295_v46 = vsub.f32 %v1293_v0, %v1294_v15 }
 0x2e8   : > { %1324 = vmatpush.msra.mxu1 %v1323_v2  ;;  %v1296_v56 = vand.u32 4294901760, %v1295_v46 }
 0x2ea   : > { %1330 = vmatpush.msra.mxu1 %v1329_v50  ;;  %v1074_v50 = vperm.slane %v7112_v27, 0 }
 0x2ec   : > { %1336 = vmatpush.msra.mxu1 %v1335_v51 }
 0x33c   : > { %v6330_v41 = vpop.permute.xlu2 %1077  }
 0x33d   : > { %v7110_v22 = vmov %v6330_v41 }
 0x33e   : > { %v1079_v39 = vsel %vm366_vm0, %v7110_v22, 0  ;;  %4833 = vst.msk [vmem:[#allocation35] sm:$0xff] (%p466_p0), %vm366_vm0, %v7110_v22 }
 0x33f   : > { %v1101_v45 = vand.u32 4294901760, %v1079_v39  ;;  %4827 = vst.msk [vmem:[#allocation2] sm:$0xff] (%p466_p0), %vm366_vm0, %v7110_v22 }
 0x341   : > { %v1102_v47 = vsub.f32 %v1079_v39, %v1101_v45  ;;  %1147 = vmatmul.f32.vlgmr.msra.gmra.mxu3 %v1101_v45 }
 0x342   : > { %1385 = vmatpush.msra.mxu3 %v1284_v14 }
 0x343   : > { %v1103_v17 = vand.u32 4294901760, %v1102_v47  ;;  %1177 = vmatmul.f32.vlgmr.msrb.gmra.mxu0 %v1102_v47 }
 0x344   : > { %1387 = vmatpush.msra.mxu3 %v1286_v38  ;;  %1414 = vmatpush.msrb.mxu0 %v1315_v52 }
 0x345   : > { %v1104_v54 = vsub.f32 %v1102_v47, %v1103_v17  ;;  %1204 = vmatmul.f32.vlgmr.msrb.gmra.mxu1 %v1103_v17 }
 0x346   : > { %1389 = vmatpush.msra.mxu3 %v1288_v1  ;;  %1418 = vmatpush.msrb.mxu0 %v1321_v4 }
 0x347   : > { %v1105_v55 = vand.u32 4294901760, %v1104_v54  ;;  %1445 = vmatpush.msrb.mxu1 %v1284_v14 }
 0x348   : > { %1391 = vmatpush.msra.mxu3 %v1290_v49  ;;  %1422 = vmatpush.msrb.mxu0 %v1327_v34 }
 0x349   : > { %1106 = vmatmul.f32.vlgmr.msra.gmra.mxu2 %v1105_v55  ;;  %1262 = vmatmul.f32.vlgmr.msrb.gmra.mxu3 %v1101_v45 }
 0x34a   : > { %1356 = vmatpush.msra.mxu2 %v1314_v36  ;;  %1447 = vmatpush.msrb.mxu1 %v1286_v38  ;;  %v1267_v36 = vperm.slane %v7111_v26, 0 }
 0x34b   : > { %1297 = vmatmul.f32.vlgmr.msra.gmra.mxu0 %v1296_v56 }
 0x34c   : > { %1359 = vmatpush.msra.mxu2 %v1320_v48  ;;  %1426 = vmatpush.msrb.mxu0 %v1333_v44 }
 0x34d   : > { %1338 = vmatmul.f32.vlgmr.msra.gmra.mxu1 %v1292_v3 }
 0x34e   : > { %1362 = vmatpush.msra.mxu2 %v1326_v37  ;;  %1449 = vmatpush.msrb.mxu1 %v1288_v1 }
 0x350   : > { %1365 = vmatpush.msra.mxu2 %v1332_v19  ;;  %1451 = vmatpush.msrb.mxu1 %v1290_v49 }
 0x351   : > { %1237 = vmatmul.f32.vlgmr.msrb.gmra.mxu2 %v1101_v45  ;;  %1395 = vmatmul.f32.vlgmr.msra.gmra.mxu3 %v1294_v15 }
 0x353   : > { %1428 = vmatmul.f32.vlgmr.msrb.gmra.mxu0 %v1292_v3 }
 0x355   : > { %1453 = vmatmul.f32.vlgmr.msrb.gmra.mxu1 %v1292_v3 }
 0x359   : > { %1368 = vmatmul.f32.vlgmr.msra.gmra.mxu2 %v1293_v0 }
 0x3c0   : > { %v1178_v14 = vpop.f32.mrf.mxu0 }
 0x3c2   : > { %v1205_v4 = vpop.f32.mrf.mxu1 }
 0x3c4   : > { %v1148_v52 = vpop.f32.mrf.mxu3 }
 0x3c8   : > { %v1298_v38 = vpop.f32.mrf.mxu0 }
 0x3c9   : > { %v1299_v35 = vadd.f32 %v1298_v38, %v1267_v36 }
 0x3ca   : > { %v1339_v5 = vpop.f32.mrf.mxu1 }
 0x3cb   : > { %v1340_v37 = vadd.f32 %v1339_v5, %v1299_v35 }
 0x3cc   : > { %v1107_v21 = vpop.f32.mrf.mxu2  ;;  %v1263_v40 = vpop.f32.mrf.mxu3 }
 0x3cd   : > { %v1108_v53 = vadd.f32 %v1107_v21, %v1074_v50 }
 0x3cf   : > { %v1149_v51 = vadd.f32 %v1148_v52, %v1108_v53 }
 0x3d0   : > { %v1429_v34 = vpop.f32.mrf.mxu0 }
 0x3d1   : > { %v1179_v0 = vadd.f32 %v1178_v14, %v1149_v51 }
 0x3d2   : > { %v1454_v41 = vpop.f32.mrf.mxu1 }
 0x3d3   : > { %v1206_v39 = vadd.f32 %v1205_v4, %v1179_v0 }
 0x3d4   : > { %v1238_v48 = vpop.f32.mrf.mxu2  ;;  %v1396_v19 = vpop.f32.mrf.mxu3 }
 0x3d5   : > { %v1239_v45 = vadd.f32 %v1238_v48, %v1206_v39 }
 0x3d7   : > { %v1264_v15 = vadd.f32 %v1263_v40, %v1239_v45 }
 0x3dc   : > { %v1369_v1 = vpop.f32.mrf.mxu2 }
 0x3dd   : > { %v1370_v49 = vadd.f32 %v1369_v1, %v1340_v37 }
 0x3df   : > { %v1397_v2 = vadd.f32 %v1396_v19, %v1370_v49  ;;  %v1516_v19 = vand.u32 4294901760, %v7097_v6  ;;  %v1518_v49 = vand.u32 4294901760, %v7096_v7 }
 0x3e1   : > { %v1430_v44 = vadd.f32 %v1429_v34, %v1397_v2  ;;  %v1546_v34 = vsub.f32 %v7097_v6, %v1516_v19  ;;  %v1552_v2 = vsub.f32 %v7096_v7, %v1518_v49  ;;  %1617 = vmatpush.msra.mxu1 %v1516_v19  ;;  %1517 = vmatpush.msrb.mxu2 %v1516_v19 }
 0x3e3   : > { %v1455_v3 = vadd.f32 %v1454_v41, %v1430_v44  ;;  %v1547_v41 = vand.u32 4294901760, %v1546_v34  ;;  %v1553_v44 = vand.u32 4294901760, %v1552_v2  ;;  %1588 = vmatpush.msra.mxu0 %v1546_v34  ;;  %1619 = vmatpush.msra.mxu1 %v1518_v49 }
 0x3e4   : > { %1519 = vmatpush.msrb.mxu2 %v1518_v49 }
 0x3e5   : > { %1478 = vrot.lane.b32.xlu2 %v1455_v3, %s5726_s6  ;;  %v1457_v47 = vadd.f32 %v1455_v3, %v1264_v15  ;;  %v1548_v3 = vsub.f32 %v1546_v34, %v1547_v41  ;;  %v1554_v50 = vsub.f32 %v1552_v2, %v1553_v44  ;;  %1591 = vmatpush.msra.mxu0 %v1552_v2 }
 0x3e7   : > { %v4969_v17 = vmul.f32 -1.442695, %v1457_v47  ;;  %v1549_v53 = vand.u32 4294901760, %v1548_v3  ;;  %v1555_v51 = vand.u32 4294901760, %v1554_v50  ;;  %v1730_v50 = vsel %vm366_vm0, %v7114_v28, 0 }
 0x3e9   : > { %5039 = vpow2.f32 %v4969_v17  ;;  %1550 = vmatpush.msrb.mxu3 %v1549_v53 }
 0x3eb   : > { %1556 = vmatpush.msrb.mxu3 %v1555_v51 }
 0x3ed   : > { %1494 = vrot.lane.b32.xlu2 %v5693_v23, %s5728_s18 }
 0x3ef   : > { %v5040_v46 = vpop.eup %5039 }
 0x3f0   : > { %v1461_v54 = vadd.f32 1.0, %v5040_v46  ;;  %v1520_v46 = vand.u32 4294901760, %v7095_v24 }
 0x3f2   : > { %5041 = vrcp.f32 %v1461_v54  ;;  %v1473_v23 = vand.u32 2147483648, %v1461_v54  ;;  %vm1467_vm7 = vweird.f32 %v1461_v54  ;;  %v1471_v21 = vand.u32 2147483647, %v1461_v54  ;;  %1621 = vmatpush.msra.mxu1 %v1520_v46  ;;  %1521 = vmatpush.msrb.mxu2 %v1520_v46 }
 0x3f4   : > { %v1474_v52 = vor.u32 1.1754944e-38, %v1473_v23  ;;  %vm1472_vm9 = vcmp.eq.f32.partialorder %v1471_v21, 8.507059e+37 }
 0x3f8   : > { %v5042_v55 = vpop.eup %5041 }
 0x3f9   : > { %v1463_v56 = vmul.f32 %v5042_v55, %v1461_v54  ;;  %vm1468_vm6 = vweird.f32 %v5042_v55  ;;  %v1558_v54 = vsub.f32 %v7095_v24, %v1520_v46 }
 0x3fa   : > { %vm1469_vm8 = vmor %vm1467_vm7, %vm1468_vm6 }
 0x3fb   : > { %v1464_v36 = vsub.f32 1.0, %v1463_v56  ;;  %v1559_v56 = vand.u32 4294901760, %v1558_v54  ;;  %1594 = vmatpush.msra.mxu0 %v1558_v54 }
 0x3fd   : > { %v1465_v38 = vmul.f32 %v5042_v55, %v1464_v36 }
 0x3ff   : > { %v1466_v35 = vadd.f32 %v5042_v55, %v1465_v38  ;;  %v1560_v38 = vsub.f32 %v1558_v54, %v1559_v56 }
 0x401   : > { %v1470_v14 = vsel %vm1469_vm8, %v5042_v55, %v1466_v35  ;;  %v1522_v55 = vand.u32 4294901760, %v7094_v25  ;;  %v1561_v23 = vand.u32 4294901760, %v1560_v38 }
 0x402   : > { %v1475_v40 = vsel %vm1472_vm9, %v1474_v52, %v1470_v14 }
 0x403   : > { %v1488_v39 = vsub.f32 1.0, %v1475_v40  ;;  %v1564_v36 = vsub.f32 %v7094_v25, %v1522_v55  ;;  %1623 = vmatpush.msra.mxu1 %v1522_v55  ;;  %1523 = vmatpush.msrb.mxu2 %v1522_v55 }
 0x404   : > { %1562 = vmatpush.msrb.mxu3 %v1561_v23 }
 0x405   : > { %v1565_v35 = vand.u32 4294901760, %v1564_v36  ;;  %1597 = vmatpush.msra.mxu0 %v1564_v36  ;;  %1646 = vmatpush.msra.mxu2 %v1547_v41 }
 0x407   : > { %v1566_v21 = vsub.f32 %v1564_v36, %v1565_v35  ;;  %1650 = vmatpush.msra.mxu2 %v1553_v44 }
 0x409   : > { %v1567_v14 = vand.u32 4294901760, %v1566_v21  ;;  %1654 = vmatpush.msra.mxu2 %v1559_v56 }
 0x40b   : > { %1568 = vmatpush.msrb.mxu3 %v1567_v14  ;;  %1658 = vmatpush.msra.mxu2 %v1565_v35  ;;  %v1882_v35 = vsel %vm366_vm0, %v7116_v33, 0 }
 0x40d   : > { %1677 = vmatpush.msra.mxu3 %v1516_v19 }
 0x40f   : > { %1679 = vmatpush.msra.mxu3 %v1518_v49 }
 0x411   : > { %1681 = vmatpush.msra.mxu3 %v1520_v46 }
 0x413   : > { %1683 = vmatpush.msra.mxu3 %v1522_v55 }
 0x43f   : > { %v1479_v4 = vpop.permute.xlu2 %1478 }
 0x440   : > { %v1481_v48 = vmul.f32 %v1479_v4, %v1475_v40 }
 0x442   : > { %1483 = vrot.lane.b32.xlu0 %v1481_v48, %s5726_s6 }
 0x447   : > { %v1495_v0 = vpop.permute.xlu2 %1494 }
 0x4b4   : > { %v1484_v5 = vpop.permute.xlu0 %1483 }
 0x4b5   : > { %v1486_v37 = vadd.f32 %v1484_v5, %v1264_v15  ;;  %v1497_v15 = vmul.f32 %v1495_v0, %v1475_v40 }
 0x4b7   : > { %5043 = vtanh.f32 %v1486_v37 }
 0x4bd   : > { %v5044_v1 = vpop.eup %5043 }
 0x4be   : > { %1490 = vrot.lane.b32.xlu1 %v5044_v1, %s5727_s29 }
 0x530   : > { %v1491_v45 = vpop.permute.xlu1 %1490 }
 0x531   : > { %v1493_v47 = vmul.f32 %v1491_v45, %v1488_v39  ;;  %v6374_v39 = vand.u32 4294901760, %v1730_v50 }
 0x533   : > { %v1498_v17 = vadd.f32 %v1497_v15, %v1493_v47  ;;  %v1753_v54 = vsub.f32 %v1730_v50, %v6374_v39 }
 0x535   : > { %1500 = vrot.lane.b32.xlu0 %v1498_v17, %s5727_s29 }
 0x5a7   : > { %v6350_v23 = vpop.permute.xlu0 %1500  }
 0x5a8   : > { %v7113_v52 = vmov %v6350_v23 }
 0x5a9   : > { %v1502_v4 = vsel %vm366_vm0, %v7113_v52, 0  ;;  %4835 = vst.msk [vmem:[#allocation35 + $0x8] sm:$0xff] (%p466_p0), %vm366_vm0, %v7113_v52 }
 0x5aa   : > { %v6354_v40 = vand.u32 4294901760, %v1502_v4  ;;  %4871 = dma.vmem_to_hbm [thread:$0]  (%p466_p0), %s4864_s28, 256, %s4866_s7, [#allocation36], %s5704_s3, %s5704_s3, %s5705_s25   ;;  %4828 = vst.msk [vmem:[#allocation2 + $0x8] sm:$0xff] (%p466_p0), %vm366_vm0, %v7113_v52 }
 0x5ac   : > { %v6357_v48 = vsub.f32 %v1502_v4, %v6354_v40  ;;  %1570 = vmatmul.f32.vlgmr.msrb.gmra.mxu3 %v6354_v40  ;;  %v1754_v4 = vand.u32 4294901760, %v1753_v54 }
 0x5ae   : > { %1600 = vmatmul.f32.vlgmr.msra.gmra.mxu0 %v6357_v48  ;;  %v6362_v5 = vand.u32 4294901760, %v6357_v48 }
 0x5b0   : > { %1627 = vmatmul.f32.vlgmr.msra.gmra.mxu1 %v6362_v5  ;;  %v1527_v37 = vsub.f32 %v6357_v48, %v6362_v5 }
 0x5b2   : > { %v6367_v1 = vand.u32 4294901760, %v1527_v37  ;;  %v6389_v37 = vand.u32 4294901760, %v1882_v35 }
 0x5b4   : > { %1529 = vmatmul.f32.vlgmr.msrb.gmra.mxu2 %v6367_v1  ;;  %1685 = vmatmul.f32.vlgmr.msra.gmra.mxu3 %v6354_v40 }
 0x5bc   : > { %1660 = vmatmul.f32.vlgmr.msra.gmra.mxu2 %v6354_v40 }
 0x62b   : > { %v1601_v2 = vpop.f32.mrf.mxu0 }
 0x62d   : > { %v1628_v44 = vpop.f32.mrf.mxu1 }
 0x62f   : > { %v1571_v19 = vpop.f32.mrf.mxu3 }
 0x637   : > { %v1530_v49 = vpop.f32.mrf.mxu2  ;;  %v1686_v0 = vpop.f32.mrf.mxu3 }
 0x638   : > { %v1572_v34 = vadd.f32 %v1571_v19, %v1530_v49  ;;  %v1755_v19 = vsub.f32 %v1753_v54, %v1754_v4 }
 0x63a   : > { %v1602_v41 = vadd.f32 %v1601_v2, %v1572_v34  ;;  %v6393_v2 = vsub.f32 %v1882_v35, %v6389_v37  ;;  %v1756_v50 = vand.u32 4294901760, %v1755_v19 }
 0x63c   : > { %v1629_v3 = vadd.f32 %v1628_v44, %v1602_v41 }
 0x63f   : > { %v1661_v53 = vpop.f32.mrf.mxu2 }
 0x640   : > { %v1662_v51 = vadd.f32 %v1661_v53, %v1629_v3 }
 0x642   : > { %v6376_v45 = vadd.f32 %v1686_v0, %v1662_v51 }
 0x644   : > { %v1697_v15 = vperm.slane %v6376_v45, 0  ;;  %v1690_v47 = vrot.slane %v6376_v45, 1  ;;  %v1691_v17 = vrot.slane %v6376_v45, 2  ;;  %v1692_v46 = vrot.slane %v6376_v45, 3 }
 0x646   : > { %v1713_v55 = vadd.f32 %v1697_v15, %v7115_v8  ;;  %v1698_v56 = vperm.slane %v1690_v47, 0  ;;  %v1699_v36 = vperm.slane %v1691_v17, 0  ;;  %v1700_v38 = vperm.slane %v1692_v46, 0 }
 0x647   : > { %v6953_v17 = vand.u32 4294901760, %v6393_v2  ;;  %v1693_v46 = vrot.slane %v6376_v45, 4 }
 0x648   : > { %5045 = vtanh.f32 %v1713_v55  ;;  %v1714_v23 = vadd.f32 %v1698_v56, %v7117_v9  ;;  %v1715_v21 = vadd.f32 %v1699_v36, %v7118_v10  ;;  %v1716_v14 = vadd.f32 %v1700_v38, %v7119_v11 }
 0x64a   : > { %5047 = vtanh.f32 %v1714_v23 }
 0x64b   : > { %5049 = vtanh.f32 %v1715_v21  ;;  %v2034_v21 = vsel %vm366_vm0, %v7120_v42, 0 }
 0x64c   : > { %5051 = vtanh.f32 %v1716_v14  ;;  %v1907_v14 = vsub.f32 %v6393_v2, %v6953_v17 }
 0x64e   : > { %v5046_v49 = vpop.eup %5045 }
 0x64f   : > { %v1733_v34 = vsel %vm366_vm0, %v5046_v49, 0  ;;  %v1694_v49 = vrot.slane %v6376_v45, 5 }
 0x650   : > { %v5048_v41 = vpop.eup %5047  ;;  %v1750_v44 = vand.u32 4294901760, %v1733_v34 }
 0x651   : > { %v5050_v3 = vpop.eup %5049  ;;  %v1885_v53 = vsel %vm366_vm0, %v5048_v41, 0 }
 0x652   : > { %v5052_v51 = vpop.eup %5051  ;;  %1751 = vmatpush.xpose.msrb.mxu0 %v1750_v44  ;;  %1827 = vmatpush.xpose.msrb.mxu3 %v1750_v44  ;;  %v1777_v0 = vsub.f32 %v1733_v34, %v1750_v44  ;;  %v1902_v15 = vand.u32 4294901760, %v1885_v53  ;;  %v2037_v47 = vsel %vm366_vm0, %v5050_v3, 0  ;;  %v1701_v3 = vperm.slane %v1693_v46, 0 }
 0x653   : > { %v6399_v36 = vand.u32 4294901760, %v2037_v47  ;;  %v2189_v38 = vsel %vm366_vm0, %v5052_v51, 0 }
 0x654   : > { %1804 = vmatpush.xpose.msrb.mxu2 %v1777_v0  ;;  %v1778_v55 = vand.u32 4294901760, %v1777_v0  ;;  %v1929_v56 = vsub.f32 %v1885_v53, %v1902_v15  ;;  %v6407_v19 = vand.u32 4294901760, %v2189_v38  ;;  %v1717_v17 = vadd.f32 %v1701_v3, %v7121_v12 }
 0x655   : > { %1757 = vmatmul.f32.vlgmr.msrb.gmra.mxu0 %v1756_v50  ;;  %1831 = vmatmul.f32.vlgmr.msrb.gmra.mxu3 %v1754_v4  ;;  %v2081_v4 = vsub.f32 %v2037_v47, %v6399_v36  ;;  %v6411_v50 = vand.u32 4294901760, %v2034_v21 }
 0x656   : > { %1853 = vmatpush.xpose.msra.mxu0 %v1778_v55  ;;  %v1930_v35 = vand.u32 4294901760, %v1929_v56  ;;  %v1779_v23 = vsub.f32 %v1777_v0, %v1778_v55  ;;  %v2233_v51 = vsub.f32 %v2189_v38, %v6407_v19  ;;  %v1702_v0 = vperm.slane %v1694_v49, 0  ;;  %v7123_v38 = vld [vmem:[#allocation88_spill] sm:$0xff] }
 0x657   : > { %1807 = vmatmul.f32.vlgmr.msrb.gmra.mxu2 %v1753_v54  ;;  %v1908_v54 = vand.u32 4294901760, %v1907_v14  ;;  %v2082_v55 = vand.u32 4294901760, %v2081_v4  ;;  %v2057_v47 = vsub.f32 %v2034_v21, %v6411_v50  ;;  %5053 = vtanh.f32 %v1717_v17 }
 0x658   : > { %1903 = vmatpush.xpose.msra.mxu2 %v1902_v15  ;;  %v1780_v34 = vand.u32 4294901760, %v1779_v23  ;;  %v1931_v41 = vsub.f32 %v1929_v56, %v1930_v35  ;;  %v1718_v46 = vadd.f32 %v1702_v0, %v7122_v13 }
 0x659   : > { %v2058_v23 = vand.u32 4294901760, %v2057_v47 }
 0x65a   : > { %1956 = vmatpush.xpose.msrb.mxu0 %v1929_v56  ;;  %1781 = vmatpush.xpose.msrb.mxu1 %v1780_v34  ;;  %v1932_v53 = vand.u32 4294901760, %v1931_v41  ;;  %v2083_v56 = vsub.f32 %v2081_v4, %v2082_v55  ;;  %5055 = vtanh.f32 %v1718_v46  ;;  %v7124_v46 = vand.u32 4294901760, %v6393_v2 }
 0x65b   : > { %v2059_v49 = vsub.f32 %v2057_v47, %v2058_v23 }
 0x65c   : > { %2005 = vmatpush.xpose.msrb.mxu2 %v1930_v35  ;;  %1933 = vmatpush.xpose.msra.mxu3 %v1932_v53  ;;  %v2186_v35 = vsel %vm366_vm0, %v7123_v38, 0 }
 0x65d   : > { %1783 = vmatmul.f32.vlgmr.msrb.gmra.mxu1 %v6374_v39  ;;  %1855 = vmatmul.f32.vlgmr.msra.gmra.mxu0 %v6374_v39  ;;  %v6424_v14 = vand.u32 4294901760, %v2186_v35  ;;  %v5054_v34 = vpop.eup %5053  ;;  %v2060_v3 = vand.u32 4294901760, %v2059_v49 }
 0x65e   : > { %1875 = vmatpush.xpose.msra.mxu1 %v1750_v44  ;;  %2055 = vmatpush.xpose.msra.mxu0 %v6399_v36  ;;  %v2234_v44 = vand.u32 4294901760, %v2233_v51 }
 0x65f   : > { %1909 = vmatmul.f32.vlgmr.msra.gmra.mxu2 %v1908_v54  ;;  %1935 = vmatmul.f32.vlgmr.msra.gmra.mxu3 %v6389_v37  ;;  %v6430_v41 = vsub.f32 %v2186_v35, %v6424_v14 }
 0x660   : > { %2027 = vmatpush.xpose.msrb.mxu3 %v1902_v15  ;;  %2108 = vmatpush.xpose.msra.mxu2 %v2081_v4  ;;  %v2235_v21 = vsub.f32 %v2233_v51, %v2234_v44  ;;  %v5056_v4 = vpop.eup %5055 }
 0x661   : > { %v2210_v53 = vand.u32 4294901760, %v6430_v41  ;;  %v2493_v0 = vsel %vm366_vm0, %v5056_v4, 0 }
 0x662   : > { %1979 = vmatpush.xpose.msrb.mxu1 %v1902_v15  ;;  %v2084_v15 = vand.u32 4294901760, %v2083_v56  ;;  %v2236_v17 = vand.u32 4294901760, %v2235_v21  ;;  %v6444_v35 = vand.u32 4294901760, %v2493_v0  ;;  %v1696_v21 = vrot.slane %v6376_v45, 7 }
 0x663   : > { %v2211_v38 = vsub.f32 %v6430_v41, %v2210_v53 }
 0x664   : > { %2131 = vmatpush.xpose.msra.mxu3 %v6399_v36 }
 0x665   : > { %1877 = vmatmul.f32.vlgmr.msra.gmra.mxu1 %v6374_v39  ;;  %1959 = vmatmul.f32.vlgmr.msrb.gmra.mxu0 %v6393_v2  ;;  %v2341_v39 = vsel %vm366_vm0, %v5054_v34, 0  ;;  %v1704_v34 = vperm.slane %v1696_v21, 0 }
 0x666   : > { %2085 = vmatpush.xpose.msra.mxu1 %v2084_v15  ;;  %2157 = vmatpush.xpose.msrb.mxu0 %v2082_v55  ;;  %v2358_v54 = vand.u32 4294901760, %v2341_v39  ;;  %v1695_v55 = vrot.slane %v6376_v45, 6 }
 0x667   : > { %2007 = vmatmul.f32.vlgmr.msrb.gmra.mxu2 %v6389_v37  ;;  %2029 = vmatmul.f32.vlgmr.msrb.gmra.mxu3 %v6389_v37  ;;  %v7125_v37 = vld [vmem:[#allocation89_spill] sm:$0xff] }
 0x668   : > { %2207 = vmatpush.xpose.msrb.mxu2 %v6407_v19  ;;  %2237 = vmatpush.xpose.msrb.mxu3 %v2236_v17  ;;  %v2338_v56 = vsel %vm366_vm0, %v7125_v37, 0  ;;  %v2385_v15 = vsub.f32 %v2341_v39, %v2358_v54  ;;  %v1703_v49 = vperm.slane %v1695_v55, 0 }
 0x669   : > { %v6448_v2 = vand.u32 4294901760, %v2338_v56 }
 0x66a   : > { %v2386_v17 = vand.u32 4294901760, %v2385_v15 }
 0x66b   : > { %v2361_v45 = vsub.f32 %v2338_v56, %v6448_v2 }
 0x66c   : > { %v2387_v39 = vsub.f32 %v2385_v15, %v2386_v17 }
 0x66d   : > { %1983 = vmatmul.f32.vlgmr.msrb.gmra.mxu1 %v7124_v46  ;;  %2061 = vmatmul.f32.vlgmr.msra.gmra.mxu0 %v2060_v3  ;;  %v2362_v46 = vand.u32 4294901760, %v2361_v45 }
 0x66e   : > { %2179 = vmatpush.xpose.msrb.mxu1 %v6399_v36  ;;  %2260 = vmatpush.xpose.msra.mxu0 %v2233_v51  ;;  %v2212_v36 = vand.u32 4294901760, %v2211_v38  ;;  %v2537_v51 = vsub.f32 %v2493_v0, %v6444_v35  ;;  %v7128_v0 = vld [vmem:[#allocation90_spill] sm:$0xff]  ;;  %v2388_v56 = vand.u32 4294901760, %v2387_v39 }
 0x66f   : > { %2111 = vmatmul.f32.vlgmr.msra.gmra.mxu2 %v2057_v47  ;;  %2135 = vmatmul.f32.vlgmr.msra.gmra.mxu3 %v2058_v23  ;;  %v7126_v47 = vld [vmem:[#allocation67_spill] sm:$0xff]  ;;  %v7127_v23 = vld [vmem:[#allocation68_spill] sm:$0xff]  ;;  %v2490_v55 = vsel %vm366_vm0, %v7128_v0, 0 }
 0x670   : > { %2309 = vmatpush.xpose.msra.mxu2 %v2234_v44  ;;  %2331 = vmatpush.xpose.msra.mxu3 %v6407_v19  ;;  %v1719_v4 = vadd.f32 %v1703_v49, %v7126_v47  ;;  %v2538_v44 = vand.u32 4294901760, %v2537_v51  ;;  %v1720_v3 = vadd.f32 %v1704_v34, %v7127_v23  ;;  %v2512_v38 = vand.u32 4294901760, %v2490_v55 }
 0x672   : > { %5057 = vtanh.f32 %v1719_v4  ;;  %v2539_v37 = vsub.f32 %v2537_v51, %v2538_v44  ;;  %v2513_v49 = vsub.f32 %v2490_v55, %v2512_v38 }
 0x673   : > { %5059 = vtanh.f32 %v1720_v3 }
 0x675   : > { %2087 = vmatmul.f32.vlgmr.msra.gmra.mxu1 %v6411_v50  ;;  %2159 = vmatmul.f32.vlgmr.msrb.gmra.mxu0 %v6411_v50 }
 0x676   : > { %2283 = vmatpush.xpose.msra.mxu1 %v6407_v19  ;;  %2359 = vmatpush.xpose.msrb.mxu0 %v2358_v54  ;;  %v2363_v19 = vsub.f32 %v2361_v45, %v2362_v46 }
 0x677   : > { %2213 = vmatmul.f32.vlgmr.msrb.gmra.mxu2 %v2212_v36  ;;  %2239 = vmatmul.f32.vlgmr.msrb.gmra.mxu3 %v6424_v14 }
 0x678   : > { %2412 = vmatpush.xpose.msrb.mxu2 %v2385_v15  ;;  %2435 = vmatpush.xpose.msrb.mxu3 %v2358_v54  ;;  %v5058_v21 = vpop.eup %5057  ;;  %v2540_v15 = vand.u32 4294901760, %v2539_v37  ;;  %v2364_v34 = vand.u32 4294901760, %v2363_v19 }
 0x679   : > { %v5060_v36 = vpop.eup %5059  ;;  %v2645_v47 = vsel %vm366_vm0, %v5058_v21, 0 }
 0x67a   : > { %v2662_v4 = vand.u32 4294901760, %v2645_v47 }
 0x67c   : > { %v2689_v39 = vsub.f32 %v2645_v47, %v2662_v4 }
 0x67d   : > { %2181 = vmatmul.f32.vlgmr.msrb.gmra.mxu1 %v6411_v50  ;;  %2263 = vmatmul.f32.vlgmr.msra.gmra.mxu0 %v6430_v41  ;;  %v2514_v50 = vand.u32 4294901760, %v2513_v49  ;;  %v2797_v41 = vsel %vm366_vm0, %v5060_v36, 0 }
 0x67e   : > { %2389 = vmatpush.xpose.msrb.mxu1 %v2388_v56  ;;  %2461 = vmatpush.xpose.msra.mxu0 %v2386_v17  ;;  %v7129_v17 = vld [vmem:[#allocation91_spill] sm:$0xff]  ;;  %v2814_v3 = vand.u32 4294901760, %v2797_v41  ;;  %v2690_v56 = vand.u32 4294901760, %v2689_v39 }
 0x67f   : > { %2311 = vmatmul.f32.vlgmr.msra.gmra.mxu2 %v6424_v14  ;;  %2333 = vmatmul.f32.vlgmr.msra.gmra.mxu3 %v6424_v14  ;;  %v2642_v23 = vsel %vm366_vm0, %v7129_v17, 0  ;;  %v2515_v14 = vsub.f32 %v2513_v49, %v2514_v50 }
 0x680   : > { %2511 = vmatpush.xpose.msra.mxu2 %v6444_v35  ;;  %2541 = vmatpush.xpose.msra.mxu3 %v2540_v15  ;;  %v2664_v0 = vand.u32 4294901760, %v2642_v23  ;;  %v2841_v37 = vsub.f32 %v2797_v41, %v2814_v3 }
 0x681   : > { %v2516_v55 = vand.u32 4294901760, %v2515_v14 }
 0x685   : > { %2287 = vmatmul.f32.vlgmr.msra.gmra.mxu1 %v2210_v53  ;;  %2365 = vmatmul.f32.vlgmr.msrb.gmra.mxu0 %v2364_v34  ;;  %v2665_v53 = vsub.f32 %v2642_v23, %v2664_v0 }
 0x686   : > { %2483 = vmatpush.xpose.msra.mxu1 %v2358_v54  ;;  %2564 = vmatpush.xpose.msrb.mxu0 %v2537_v51  ;;  %v2842_v54 = vand.u32 4294901760, %v2841_v37  ;;  %v2691_v51 = vsub.f32 %v2689_v39, %v2690_v56 }
 0x687   : > { %2415 = vmatmul.f32.vlgmr.msrb.gmra.mxu2 %v2361_v45  ;;  %2439 = vmatmul.f32.vlgmr.msrb.gmra.mxu3 %v2362_v46  ;;  %v2666_v45 = vand.u32 4294901760, %v2665_v53 }
 0x688   : > { %2613 = vmatpush.xpose.msrb.mxu2 %v2538_v44  ;;  %2635 = vmatpush.xpose.msrb.mxu3 %v6444_v35  ;;  %v2843_v44 = vsub.f32 %v2841_v37, %v2842_v54  ;;  %v2692_v46 = vand.u32 4294901760, %v2691_v51  ;;  %v7131_v51 = vld [vmem:[#allocation69_spill] sm:$0xff] }
 0x689   : > { %v2667_v19 = vsub.f32 %v2665_v53, %v2666_v45 }
 0x68a   : > { %v2844_v21 = vand.u32 4294901760, %v2843_v44 }
 0x68d   : > { %2391 = vmatmul.f32.vlgmr.msrb.gmra.mxu1 %v6448_v2  ;;  %2463 = vmatmul.f32.vlgmr.msra.gmra.mxu0 %v6448_v2 }
 0x68e   : > { %2587 = vmatpush.xpose.msrb.mxu1 %v6444_v35  ;;  %2663 = vmatpush.xpose.msra.mxu0 %v2662_v4  ;;  %v2668_v35 = vand.u32 4294901760, %v2667_v19  ;;  %v7133_v19 = vld [vmem:[#allocation79_spill] sm:$0xff] }
 0x68f   : > { %2517 = vmatmul.f32.vlgmr.msra.gmra.mxu2 %v2516_v55  ;;  %2543 = vmatmul.f32.vlgmr.msra.gmra.mxu3 %v2512_v38 }
 0x690   : > { %2716 = vmatpush.xpose.msra.mxu2 %v2689_v39  ;;  %2739 = vmatpush.xpose.msra.mxu3 %v2662_v4 }
 0x695   : > { %2485 = vmatmul.f32.vlgmr.msra.gmra.mxu1 %v6448_v2  ;;  %2567 = vmatmul.f32.vlgmr.msrb.gmra.mxu0 %v2513_v49  ;;  %v7130_v2 = vld [vmem:[#allocation92_spill] sm:$0xff] }
 0x696   : > { %2693 = vmatpush.xpose.msra.mxu1 %v2692_v46  ;;  %2765 = vmatpush.xpose.msrb.mxu0 %v2690_v56  ;;  %v2794_v15 = vsel %vm366_vm0, %v7130_v2, 0 }
 0x697   : > { %2615 = vmatmul.f32.vlgmr.msrb.gmra.mxu2 %v2512_v38  ;;  %2637 = vmatmul.f32.vlgmr.msrb.gmra.mxu3 %v2512_v38  ;;  %v2816_v49 = vand.u32 4294901760, %v2794_v15 }
 0x698   : > { %2815 = vmatpush.xpose.msrb.mxu2 %v2814_v3  ;;  %2845 = vmatpush.xpose.msrb.mxu3 %v2844_v21 }
 0x699   : > { %v2817_v38 = vsub.f32 %v2794_v15, %v2816_v49 }
 0x69b   : > { %v2818_v36 = vand.u32 4294901760, %v2817_v38 }
 0x69d   : > { %2591 = vmatmul.f32.vlgmr.msrb.gmra.mxu1 %v2514_v50  ;;  %2669 = vmatmul.f32.vlgmr.msra.gmra.mxu0 %v2668_v35  ;;  %v2819_v34 = vsub.f32 %v2817_v38, %v2818_v36 }
 0x69e   : > { %2787 = vmatpush.xpose.msrb.mxu1 %v2662_v4  ;;  %2868 = vmatpush.xpose.msra.mxu0 %v2841_v37 }
 0x69f   : > { %2719 = vmatmul.f32.vlgmr.msra.gmra.mxu2 %v2665_v53  ;;  %2743 = vmatmul.f32.vlgmr.msra.gmra.mxu3 %v2666_v45  ;;  %v2820_v47 = vand.u32 4294901760, %v2819_v34  ;;  %v7132_v45 = vsub.f32 1.0, %v7131_v51 }
 0x6a0   : > { %2917 = vmatpush.xpose.msra.mxu2 %v2842_v54  ;;  %2939 = vmatpush.xpose.msra.mxu3 %v2814_v3 }
 0x6a5   : > { %2695 = vmatmul.f32.vlgmr.msra.gmra.mxu1 %v2664_v0  ;;  %2767 = vmatmul.f32.vlgmr.msrb.gmra.mxu0 %v2664_v0 }
 0x6a6   : > { %2891 = vmatpush.xpose.msra.mxu1 %v2814_v3 }
 0x6a7   : > { %2847 = vmatmul.f32.vlgmr.msrb.gmra.mxu3 %v2816_v49  ;;  %2821 = vmatmul.f32.vlgmr.msrb.gmra.mxu2 %v2820_v47 }
 0x6ad   : > { %2789 = vmatmul.f32.vlgmr.msrb.gmra.mxu1 %v2664_v0  ;;  %2871 = vmatmul.f32.vlgmr.msra.gmra.mxu0 %v2817_v38 }
 0x6af   : > { %2941 = vmatmul.f32.vlgmr.msra.gmra.mxu3 %v2816_v49  ;;  %2919 = vmatmul.f32.vlgmr.msra.gmra.mxu2 %v2816_v49 }
 0x6b5   : > { %2895 = vmatmul.f32.vlgmr.msra.gmra.mxu1 %v2818_v36 }
 0x6d2   : > { %v1758_v50 = vpop.f32.mrf.mxu0 }
 0x6d8   : > { %v1832_v4 = vpop.f32.mrf.mxu3 }
 0x6da   : > { %v1784_v41 = vpop.f32.mrf.mxu1  ;;  %v1808_v17 = vpop.f32.mrf.mxu2 }
 0x6db   : > { %v1785_v23 = vadd.f32 %v1784_v41, %v1758_v50  ;;  %v1856_v14 = vpop.f32.mrf.mxu0 }
 0x6dd   : > { %v1809_v3 = vadd.f32 %v1808_v17, %v1785_v23 }
 0x6df   : > { %v1833_v39 = vadd.f32 %v1832_v4, %v1809_v3  ;;  %v7134_v4 = vld [vmem:[#allocation70_spill] sm:$0xff] }
 0x6e0   : > { %v7135_v41 = vsub.f32 1.0, %v7134_v4 }
 0x6e1   : > { %v1857_v0 = vadd.f32 %v1856_v14, %v1833_v39 }
 0x6e2   : > { %v1878_v55 = vpop.f32.mrf.mxu1  ;;  %v1910_v37 = vpop.f32.mrf.mxu2 }
 0x6e3   : > { %v1879_v56 = vadd.f32 %v1878_v55, %v1857_v0  ;;  %v1936_v53 = vpop.f32.mrf.mxu3  ;;  %v1960_v54 = vpop.f32.mrf.mxu0  ;;  %v7136_v0 = vld [vmem:[#allocation80_spill] sm:$0xff] }
 0x6e4   : > { %v1937_v46 = vadd.f32 %v1936_v53, %v1910_v37 }
 0x6e5   : > { %v2945_v44 = vmul.f32 %v1879_v56, %v7132_v45 }
 0x6e6   : > { %v1961_v35 = vadd.f32 %v1960_v54, %v1937_v46 }
 0x6e7   : > { %v6479_v21 = vadd.f32 %v2945_v44, %v7133_v19 }
 0x6e9   : > { %v2962_v2 = vsel %vm2961_vm10, %v6479_v21, -inf }
 0x6ea   : > { %2963 = vmax.xlane.f32.xlu1 %v2962_v2  ;;  %v1984_v15 = vpop.f32.mrf.mxu1  ;;  %v2008_v49 = vpop.f32.mrf.mxu2 }
 0x6eb   : > { %v1985_v38 = vadd.f32 %v1984_v15, %v1961_v35  ;;  %v2030_v36 = vpop.f32.mrf.mxu3  ;;  %v2062_v34 = vpop.f32.mrf.mxu0  ;;  %v7137_v15 = vld [vmem:[#allocation71_spill] sm:$0xff] }
 0x6ed   : > { %v2009_v47 = vadd.f32 %v2008_v49, %v1985_v38  ;;  %v7138_v49 = vsub.f32 1.0, %v7137_v15 }
 0x6ef   : > { %v2031_v50 = vadd.f32 %v2030_v36, %v2009_v47 }
 0x6f1   : > { %v2946_v17 = vmul.f32 %v2031_v50, %v7135_v41 }
 0x6f2   : > { %v2088_v23 = vpop.f32.mrf.mxu1  ;;  %v2112_v14 = vpop.f32.mrf.mxu2 }
 0x6f3   : > { %v2089_v3 = vadd.f32 %v2088_v23, %v2062_v34  ;;  %v2136_v39 = vpop.f32.mrf.mxu3  ;;  %v6486_v55 = vadd.f32 %v2946_v17, %v7136_v0  ;;  %v2160_v37 = vpop.f32.mrf.mxu0  ;;  %v7139_v34 = vld [vmem:[#allocation81_spill] sm:$0xff]  ;;  %v7140_v0 = vld [vmem:[#allocation72_spill] sm:$0xff] }
 0x6f5   : > { %v2113_v56 = vadd.f32 %v2112_v14, %v2089_v3  ;;  %v2965_v53 = vsel %vm2961_vm10, %v6486_v55, -inf }
 0x6f6   : > { %2966 = vmax.xlane.f32.xlu2 %v2965_v53 }
 0x6f7   : > { %v2137_v54 = vadd.f32 %v2136_v39, %v2113_v56 }
 0x6f9   : > { %v2161_v51 = vadd.f32 %v2160_v37, %v2137_v54  ;;  %v7141_v37 = vsub.f32 1.0, %v7140_v0 }
 0x6fa   : > { %v2182_v45 = vpop.f32.mrf.mxu1  ;;  %v2214_v44 = vpop.f32.mrf.mxu2 }
 0x6fb   : > { %v2183_v46 = vadd.f32 %v2182_v45, %v2161_v51  ;;  %v2240_v19 = vpop.f32.mrf.mxu3  ;;  %v2264_v35 = vpop.f32.mrf.mxu0  ;;  %v7142_v51 = vld [vmem:[#allocation82_spill] sm:$0xff] }
 0x6fc   : > { %v2241_v2 = vadd.f32 %v2240_v19, %v2214_v44 }
 0x6fd   : > { %v2947_v38 = vmul.f32 %v2183_v46, %v7138_v49 }
 0x6fe   : > { %v2265_v36 = vadd.f32 %v2264_v35, %v2241_v2 }
 0x6ff   : > { %v6493_v47 = vadd.f32 %v2947_v38, %v7139_v34 }
 0x701   : > { %v2968_v50 = vsel %vm2961_vm10, %v6493_v47, -inf }
 0x702   : > { %v2288_v4 = vpop.f32.mrf.mxu1  ;;  %2969 = vmax.xlane.f32.xlu0 %v2968_v50  ;;  %v2312_v41 = vpop.f32.mrf.mxu2 }
 0x703   : > { %v2289_v17 = vadd.f32 %v2288_v4, %v2265_v36  ;;  %v2334_v23 = vpop.f32.mrf.mxu3  ;;  %v2366_v14 = vpop.f32.mrf.mxu0 }
 0x705   : > { %v2313_v3 = vadd.f32 %v2312_v41, %v2289_v17  ;;  %v7143_v17 = vld [vmem:[#allocation73_spill] sm:$0xff] }
 0x707   : > { %v2335_v39 = vadd.f32 %v2334_v23, %v2313_v3  ;;  %v7144_v23 = vsub.f32 1.0, %v7143_v17 }
 0x709   : > { %v2948_v56 = vmul.f32 %v2335_v39, %v7141_v37  ;;  %v7145_v39 = vld [vmem:[#allocation83_spill] sm:$0xff] }
 0x70a   : > { %v2392_v53 = vpop.f32.mrf.mxu1  ;;  %v2416_v54 = vpop.f32.mrf.mxu2 }
 0x70b   : > { %v6500_v45 = vadd.f32 %v2948_v56, %v7142_v51  ;;  %v2393_v44 = vadd.f32 %v2392_v53, %v2366_v14  ;;  %v2440_v46 = vpop.f32.mrf.mxu3  ;;  %v2464_v19 = vpop.f32.mrf.mxu0 }
 0x70d   : > { %v2417_v35 = vadd.f32 %v2416_v54, %v2393_v44  ;;  %v2971_v2 = vsel %vm2961_vm10, %v6500_v45, -inf }
 0x70e   : > { %2972 = vmax.xlane.f32.xlu2 %v2971_v2 }
 0x70f   : > { %v2441_v15 = vadd.f32 %v2440_v46, %v2417_v35 }
 0x711   : > { %v2465_v49 = vadd.f32 %v2464_v19, %v2441_v15  ;;  %v7146_v19 = vld [vmem:[#allocation74_spill] sm:$0xff]  ;;  %v7148_v15 = vld [vmem:[#allocation84_spill] sm:$0xff] }
 0x712   : > { %v2486_v38 = vpop.f32.mrf.mxu1  ;;  %v2518_v36 = vpop.f32.mrf.mxu2  ;;  %v7147_v35 = vsub.f32 1.0, %v7146_v19 }
 0x713   : > { %v2487_v34 = vadd.f32 %v2486_v38, %v2465_v49  ;;  %v2544_v50 = vpop.f32.mrf.mxu3  ;;  %v2568_v41 = vpop.f32.mrf.mxu0 }
 0x714   : > { %v2545_v4 = vadd.f32 %v2544_v50, %v2518_v36 }
 0x715   : > { %v2949_v3 = vmul.f32 %v2487_v34, %v7144_v23 }
 0x716   : > { %v2569_v0 = vadd.f32 %v2568_v41, %v2545_v4 }
 0x717   : > { %v6507_v14 = vadd.f32 %v2949_v3, %v7145_v39 }
 0x719   : > { %v2974_v37 = vsel %vm2961_vm10, %v6507_v14, -inf }
 0x71a   : > { %v2592_v56 = vpop.f32.mrf.mxu1  ;;  %2975 = vmax.xlane.f32.xlu1 %v2974_v37  ;;  %v2616_v53 = vpop.f32.mrf.mxu2 }
 0x71b   : > { %v2593_v54 = vadd.f32 %v2592_v56, %v2569_v0  ;;  %v2638_v51 = vpop.f32.mrf.mxu3  ;;  %v2670_v36 = vpop.f32.mrf.mxu0 }
 0x71d   : > { %v2617_v44 = vadd.f32 %v2616_v53, %v2593_v54 }
 0x71f   : > { %v2639_v46 = vadd.f32 %v2638_v51, %v2617_v44 }
 0x721   : > { %v2950_v2 = vmul.f32 %v2639_v46, %v7147_v35 }
 0x722   : > { %v2696_v34 = vpop.f32.mrf.mxu1  ;;  %v2720_v41 = vpop.f32.mrf.mxu2 }
 0x723   : > { %v6514_v49 = vadd.f32 %v2950_v2, %v7148_v15  ;;  %v2744_v50 = vpop.f32.mrf.mxu3  ;;  %v2697_v4 = vadd.f32 %v2696_v34, %v2670_v36  ;;  %v2768_v17 = vpop.f32.mrf.mxu0  ;;  %v7149_v36 = vld [vmem:[#allocation75_spill] sm:$0xff] }
 0x724   : > { %v7150_v34 = vsub.f32 1.0, %v7149_v36 }
 0x725   : > { %v2977_v38 = vsel %vm2961_vm10, %v6514_v49, -inf  ;;  %v2721_v23 = vadd.f32 %v2720_v41, %v2697_v4 }
 0x726   : > { %2978 = vmax.xlane.f32.xlu0 %v2977_v38 }
 0x727   : > { %v2745_v0 = vadd.f32 %v2744_v50, %v2721_v23 }
 0x729   : > { %v2769_v51 = vadd.f32 %v2768_v17, %v2745_v0 }
 0x72a   : > { %v2790_v3 = vpop.f32.mrf.mxu1  ;;  %v2822_v54 = vpop.f32.mrf.mxu2 }
 0x72b   : > { %v2848_v56 = vpop.f32.mrf.mxu3  ;;  %v2872_v46 = vpop.f32.mrf.mxu0  ;;  %v2791_v19 = vadd.f32 %v2790_v3, %v2769_v51 }
 0x72c   : > { %v2849_v44 = vadd.f32 %v2848_v56, %v2822_v54 }
 0x72d   : > { %v2951_v4 = vmul.f32 %v2791_v19, %v7150_v34 }
 0x72e   : > { %v2873_v35 = vadd.f32 %v2872_v46, %v2849_v44  ;;  %v7152_v44 = vld [vmem:[#allocation76_spill] sm:$0xff] }
 0x72f   : > { %v7153_v46 = vsub.f32 1.0, %v7152_v44 }
 0x732   : > { %v2896_v2 = vpop.f32.mrf.mxu1  ;;  %v2920_v17 = vpop.f32.mrf.mxu2 }
 0x75d   : > { %v2964_v39 = vpop.xlane.xlu1 %2963 }
 0x75e   : > { %v2986_v37 = vsub.f32 %v6479_v21, %v2964_v39  ;;  %v2897_v21 = vadd.f32 %v2896_v2, %v2873_v35  ;;  %v7151_v39 = vld [vmem:[#allocation85_spill] sm:$0xff] }
 0x75f   : > { %v6527_v0 = vadd.f32 %v2951_v4, %v7151_v39 }
 0x760   : > { %v2994_v53 = vmul.f32 1.442695, %v2986_v37  ;;  %v2921_v3 = vadd.f32 %v2920_v17, %v2897_v21  ;;  %v2942_v37 = vpop.f32.mrf.mxu3 }
 0x761   : > { %v2980_v56 = vsel %vm2961_vm10, %v6527_v0, -inf }
 0x762   : > { %5061 = vpow2.f32 %v2994_v53  ;;  %v2943_v53 = vadd.f32 %v2942_v37, %v2921_v3 }
 0x768   : > { %v6519_v15 = vpop.eup %5061 }
 0x769   : > { %v2967_v38 = vpop.xlane.xlu2 %2966  ;;  %v3010_v50 = vsel %vm2961_vm10, %v6519_v15, 0.0 }
 0x76a   : > { %v2987_v41 = vsub.f32 %v6486_v55, %v2967_v38  ;;  %3011 = vadd.xlane.f32.xlu2 %v3010_v50  ;;  %v2952_v55 = vmul.f32 %v2943_v53, %v7153_v46  ;;  %v7154_v38 = vld [vmem:[#allocation86_spill] sm:$0xff] }
 0x76c   : > { %v2996_v23 = vmul.f32 1.442695, %v2987_v41  ;;  %v6539_v36 = vadd.f32 %v2952_v55, %v7154_v38 }
 0x76e   : > { %5063 = vpow2.f32 %v2996_v23  ;;  %v2983_v34 = vsel %vm2961_vm10, %v6539_v36, -inf }
 0x772   : > { %2981 = vmax.xlane.f32.xlu2 %v2980_v56 }
 0x774   : > { %v6531_v54 = vpop.eup %5063 }
 0x775   : > { %v2970_v51 = vpop.xlane.xlu0 %2969  ;;  %v3013_v19 = vsel %vm2961_vm10, %v6531_v54, 0.0 }
 0x776   : > { %v2988_v35 = vsub.f32 %v6493_v47, %v2970_v51  ;;  %3014 = vadd.xlane.f32.xlu1 %v3013_v19 }
 0x778   : > { %v2998_v2 = vmul.f32 1.442695, %v2988_v35 }
 0x77a   : > { %5065 = vpow2.f32 %v2998_v2 }
 0x77e   : > { %2984 = vmax.xlane.f32.xlu1 %v2983_v34  ;;  %v7156_v34 = vld [vmem:[#allocation54_spill] sm:$0xff] }
 0x780   : > { %v6543_v4 = vpop.eup %5065 }
 0x781   : > { %v2973_v50 = vpop.xlane.xlu2 %2972  ;;  %v3016_v21 = vsel %vm2961_vm10, %v6543_v4, 0.0 }
 0x782   : > { %v2989_v41 = vsub.f32 %v6500_v45, %v2973_v50  ;;  %3017 = vadd.xlane.f32.xlu0 %v3016_v21  ;;  %v3218_v50 = vand.u32 4294901760, %v7156_v34 }
 0x784   : > { %v3000_v47 = vmul.f32 1.442695, %v2989_v41  ;;  %v3245_v21 = vsub.f32 %v7156_v34, %v3218_v50 }
 0x786   : > { %5067 = vpow2.f32 %v3000_v47  ;;  %v3246_v41 = vand.u32 4294901760, %v3245_v21 }
 0x788   : > { %v3247_v47 = vsub.f32 %v3245_v21, %v3246_v41 }
 0x78c   : > { %v6548_v17 = vpop.eup %5067 }
 0x78d   : > { %v2976_v23 = vpop.xlane.xlu1 %2975  ;;  %v3019_v39 = vsel %vm2961_vm10, %v6548_v17, 0.0 }
 0x78e   : > { %v2990_v3 = vsub.f32 %v6507_v14, %v2976_v23  ;;  %3020 = vadd.xlane.f32.xlu2 %v3019_v39  ;;  %v7155_v14 = vld [vmem:[#allocation53_spill] sm:$0xff]  ;;  %v3248_v23 = vand.u32 4294901760, %v3247_v47 }
 0x78f   : > { %v3069_v19 = vand.u32 4294901760, %v7155_v14 }
 0x790   : > { %v3002_v37 = vmul.f32 1.442695, %v2990_v3  ;;  %v7157_v3 = vld [vmem:[#allocation55_spill] sm:$0xff] }
 0x791   : > { %v3096_v35 = vsub.f32 %v7155_v14, %v3069_v19  ;;  %3146 = vmatpush.msrb.mxu3 %v3069_v19  ;;  %3070 = vmatpush.msrb.mxu0 %v3069_v19 }
 0x792   : > { %5069 = vpow2.f32 %v3002_v37  ;;  %v3367_v37 = vand.u32 4294901760, %v7157_v3 }
 0x793   : > { %v3097_v2 = vand.u32 4294901760, %v3096_v35  ;;  %3123 = vmatpush.msrb.mxu2 %v3096_v35  ;;  %3249 = vmatpush.msra.mxu3 %v3248_v23 }
 0x795   : > { %v3098_v38 = vsub.f32 %v3096_v35, %v3097_v2  ;;  %3172 = vmatpush.msra.mxu0 %v3097_v2  ;;  %3219 = vmatpush.msra.mxu2 %v3218_v50 }
 0x798   : > { %v6553_v56 = vpop.eup %5069 }
 0x799   : > { %v2979_v53 = vpop.xlane.xlu0 %2978  ;;  %v3022_v45 = vsel %vm2961_vm10, %v6553_v56, 0.0 }
 0x79a   : > { %v2991_v51 = vsub.f32 %v6514_v49, %v2979_v53  ;;  %3023 = vadd.xlane.f32.xlu0 %v3022_v45  ;;  %v3099_v49 = vand.u32 4294901760, %v3098_v38  ;;  %v6568_v45 = vsub.f32 %v7157_v3, %v3367_v37 }
 0x79c   : > { %v3004_v44 = vmul.f32 1.442695, %v2991_v51  ;;  %3100 = vmatpush.msrb.mxu1 %v3099_v49  ;;  %v6955_v38 = vand.u32 4294901760, %v6568_v45 }
 0x79e   : > { %5071 = vpow2.f32 %v3004_v44  ;;  %3194 = vmatpush.msra.mxu1 %v3069_v19 }
 0x7a4   : > { %v6558_v46 = vpop.eup %5071 }
 0x7a5   : > { %v3025_v55 = vsel %vm2961_vm10, %v6558_v46, 0.0 }
 0x7a6   : > { %3026 = vadd.xlane.f32.xlu1 %v3025_v55 }
 0x7dd   : > { %v3012_v39 = vpop.xlane.xlu2 %3011 }
 0x7de   : > { %5073 = vrcp.f32 %v3012_v39 }
 0x7e4   : > { %v5074_v53 = vpop.eup %5073 }
 0x7e5   : > { %v6571_v51 = vmul.f32 %v5074_v53, %v6519_v15  ;;  %v2982_v44 = vpop.xlane.xlu2 %2981  ;;  %v3396_v15 = vsub.f32 %v6568_v45, %v6955_v38 }
 0x7e6   : > { %v2992_v55 = vsub.f32 %v6527_v0, %v2982_v44  ;;  %v7158_v0 = vld [vmem:[#allocation56_spill] sm:$0xff] }
 0x7e7   : > { %v3052_v19 = vsel %vm3050_vm11, %v6571_v51, 0  ;;  %v6581_v39 = vand.u32 4294901760, %v7158_v0  ;;  %4837 = vst.msk [vmem:[#allocation37] sm:$0x1] (%p466_p0), %vm2961_vm10, %v6571_v51 }
 0x7e8   : > { %v3006_v35 = vmul.f32 1.442695, %v2992_v55  ;;  %v3071_v2 = vand.u32 4294901760, %v3052_v19 }
 0x7e9   : > { %v3015_v49 = vpop.xlane.xlu1 %3014 }
 0x7ea   : > { %5075 = vpow2.f32 %v3006_v35  ;;  %3102 = vmatmul.f32.vlgmr.msrb.gmra.mxu1 %v3071_v2  ;;  %v3072_v47 = vsub.f32 %v3052_v19, %v3071_v2  ;;  %v3397_v35 = vand.u32 4294901760, %v3396_v15  ;;  %v6587_v19 = vsub.f32 %v7158_v0, %v6581_v39 }
 0x7eb   : > { %5077 = vrcp.f32 %v3015_v49  ;;  %3295 = vmatpush.msrb.mxu1 %v3218_v50 }
 0x7ec   : > { %3126 = vmatmul.f32.vlgmr.msrb.gmra.mxu2 %v3072_v47  ;;  %v3073_v23 = vand.u32 4294901760, %v3072_v47 }
 0x7ed   : > { %3321 = vmatpush.msrb.mxu2 %v3246_v41 }
 0x7ee   : > { %3150 = vmatmul.f32.vlgmr.msrb.gmra.mxu3 %v3073_v23  ;;  %v3074_v53 = vsub.f32 %v3072_v47, %v3073_v23  ;;  %v6958_v23 = vand.u32 4294901760, %v6587_v19 }
 0x7ef   : > { %3343 = vmatpush.msrb.mxu3 %v3218_v50 }
 0x7f0   : > { %v6583_v44 = vpop.eup %5075  ;;  %v3075_v55 = vand.u32 4294901760, %v3074_v53 }
 0x7f1   : > { %v5078_v49 = vpop.eup %5077  ;;  %v2985_v3 = vpop.xlane.xlu1 %2984  ;;  %v3028_v38 = vsel %vm2961_vm10, %v6583_v44, 0.0 }
 0x7f2   : > { %v6592_v6 = vmul.f32 %v5078_v49, %v6531_v54  ;;  %v2993_v41 = vsub.f32 %v6539_v36, %v2985_v3  ;;  %3076 = vmatmul.f32.vlgmr.msrb.gmra.mxu0 %v3075_v55  ;;  %3196 = vmatmul.f32.vlgmr.msra.gmra.mxu1 %v3071_v2  ;;  %v3545_v54 = vsub.f32 %v6587_v19, %v6958_v23  ;;  %v7159_v36 = vld [vmem:[#allocation57_spill] sm:$0xff] }
 0x7f3   : > { %3029 = vadd.xlane.f32.xlu2 %v3028_v38  ;;  %3272 = vmatpush.msrb.mxu0 %v3245_v21  ;;  %v6602_v21 = vand.u32 4294901760, %v7159_v36 }
 0x7f4   : > { %v3008_v50 = vmul.f32 1.442695, %v2993_v41  ;;  %v3201_v47 = vsel %vm3050_vm11, %v6592_v6, 0  ;;  %3398 = vmatpush.msra.mxu1 %v3397_v35  ;;  %v3546_v35 = vand.u32 4294901760, %v3545_v54  ;;  %4838 = vst.msk [vmem:[#allocation37 + $0x1] sm:$0x1] (%p466_p0), %vm2961_vm10, %v6592_v6 }
 0x7f5   : > { %v3018_v15 = vpop.xlane.xlu0 %3017  ;;  %v3220_v53 = vand.u32 4294901760, %v3201_v47  ;;  %v6608_v49 = vsub.f32 %v7159_v36, %v6602_v21 }
 0x7f6   : > { %5079 = vpow2.f32 %v3008_v50 }
 0x7f7   : > { %5081 = vrcp.f32 %v3018_v15  ;;  %v3221_v0 = vsub.f32 %v3201_v47, %v3220_v53  ;;  %3251 = vmatmul.f32.vlgmr.msra.gmra.mxu3 %v3220_v53 }
 0x7f8   : > { %3444 = vmatpush.msra.mxu3 %v3367_v37 }
 0x7f9   : > { %v3222_v3 = vand.u32 4294901760, %v3221_v0 }
 0x7fa   : > { %3174 = vmatmul.f32.vlgmr.msra.gmra.mxu0 %v3071_v2 }
 0x7fb   : > { %3299 = vmatmul.f32.vlgmr.msrb.gmra.mxu1 %v3222_v3  ;;  %v3223_v38 = vsub.f32 %v3221_v0, %v3222_v3  ;;  %3368 = vmatpush.msra.mxu0 %v3367_v37 }
 0x7fc   : > { %v6604_v55 = vpop.eup %5079  ;;  %3492 = vmatpush.msrb.mxu1 %v3367_v37  ;;  %v3693_v37 = vand.u32 4294901760, %v6608_v49 }
 0x7fd   : > { %v5082_v41 = vpop.eup %5081  ;;  %v3031_v50 = vsel %vm2961_vm10, %v6604_v55, 0.0  ;;  %v3224_v47 = vand.u32 4294901760, %v3223_v38 }
 0x7fe   : > { %v6613_v15 = vmul.f32 %v5082_v41, %v6543_v4  ;;  %3032 = vadd.xlane.f32.xlu0 %v3031_v50  ;;  %v7160_v4 = vand.u32 4294901760, %v6568_v45  ;;  %v3694_v38 = vsub.f32 %v6608_v49, %v3693_v37  ;;  %v7161_v41 = vld [vmem:[#allocation58_spill] sm:$0xff] }
 0x7ff   : > { %3225 = vmatmul.f32.vlgmr.msra.gmra.mxu2 %v3224_v47  ;;  %3345 = vmatmul.f32.vlgmr.msrb.gmra.mxu3 %v3220_v53  ;;  %v7162_v50 = vmov %v7161_v41  ;;  %v3814_v47 = vand.u32 4294901760, %v7161_v41 }
 0x800   : > { %v3350_v2 = vsel %vm3050_vm11, %v6613_v15, 0  ;;  %3421 = vmatpush.msra.mxu2 %v6568_v45  ;;  %3547 = vmatpush.msrb.mxu3 %v3546_v35  ;;  %4839 = vst.msk [vmem:[#allocation37 + $0x2] sm:$0x1] (%p466_p0), %vm2961_vm10, %v6613_v15 }
 0x801   : > { %v3369_v54 = vand.u32 4294901760, %v3350_v2  ;;  %v3021_v3 = vpop.xlane.xlu2 %3020 }
 0x802   : > { %5083 = vrcp.f32 %v3021_v3  ;;  %3275 = vmatmul.f32.vlgmr.msrb.gmra.mxu0 %v3221_v0  ;;  %v3695_v0 = vand.u32 4294901760, %v3694_v38 }
 0x803   : > { %v3370_v23 = vsub.f32 %v3350_v2, %v3369_v54  ;;  %3400 = vmatmul.f32.vlgmr.msra.gmra.mxu1 %v3369_v54  ;;  %3470 = vmatpush.msrb.mxu0 %v7160_v4  ;;  %v3841_v2 = vsub.f32 %v7162_v50, %v3814_v47 }
 0x804   : > { %3593 = vmatpush.msra.mxu1 %v6581_v39 }
 0x805   : > { %v3371_v7 = vand.u32 4294901760, %v3370_v23 }
 0x807   : > { %3323 = vmatmul.f32.vlgmr.msrb.gmra.mxu2 %v3220_v53  ;;  %3448 = vmatmul.f32.vlgmr.msra.gmra.mxu3 %v3371_v7  ;;  %v3372_v35 = vsub.f32 %v3370_v23, %v3371_v7  ;;  %v3842_v7 = vand.u32 4294901760, %v3841_v2 }
 0x808   : > { %v5084_v8 = vpop.eup %5083  ;;  %3517 = vmatpush.msrb.mxu2 %v6581_v39  ;;  %3641 = vmatpush.msra.mxu3 %v6581_v39 }
 0x809   : > { %v6628_v45 = vmul.f32 %v5084_v8, %v6548_v17  ;;  %v3373_v3 = vand.u32 4294901760, %v3372_v35  ;;  %v7163_v8 = vand.u32 4294901760, %v6587_v19  ;;  %v3843_v17 = vsub.f32 %v3841_v2, %v3842_v7 }
 0x80b   : > { %v3499_v4 = vsel %vm3050_vm11, %v6628_v45, 0  ;;  %3374 = vmatmul.f32.vlgmr.msra.gmra.mxu0 %v3373_v3  ;;  %3494 = vmatmul.f32.vlgmr.msrb.gmra.mxu1 %v3369_v54  ;;  %4840 = vst.msk [vmem:[#allocation37 + $0x3] sm:$0x1] (%p466_p0), %vm2961_vm10, %v6628_v45 }
 0x80c   : > { %v3518_v53 = vand.u32 4294901760, %v3499_v4  ;;  %3570 = vmatpush.msra.mxu0 %v6587_v19  ;;  %3696 = vmatpush.msrb.mxu1 %v3695_v0  ;;  %v3844_v0 = vand.u32 4294901760, %v3843_v17 }
 0x80d   : > { %v3024_v41 = vpop.xlane.xlu0 %3023 }
 0x80e   : > { %v3519_v9 = vsub.f32 %v3499_v4, %v3518_v53  ;;  %5085 = vrcp.f32 %v3024_v41 }
 0x80f   : > { %3424 = vmatmul.f32.vlgmr.msra.gmra.mxu2 %v3370_v23  ;;  %3549 = vmatmul.f32.vlgmr.msrb.gmra.mxu3 %v3518_v53 }
 0x810   : > { %v3520_v39 = vand.u32 4294901760, %v3519_v9  ;;  %3619 = vmatpush.msra.mxu2 %v7163_v8  ;;  %3742 = vmatpush.msrb.mxu3 %v6602_v21 }
 0x812   : > { %v3521_v38 = vsub.f32 %v3519_v9, %v3520_v39 }
 0x813   : > { %3472 = vmatmul.f32.vlgmr.msrb.gmra.mxu0 %v3369_v54  ;;  %3597 = vmatmul.f32.vlgmr.msra.gmra.mxu1 %v3520_v39 }
 0x814   : > { %v5086_v35 = vpop.eup %5085  ;;  %v3522_v3 = vand.u32 4294901760, %v3521_v38  ;;  %3666 = vmatpush.msrb.mxu0 %v6602_v21  ;;  %3790 = vmatpush.msra.mxu1 %v6602_v21 }
 0x815   : > { %v6639_v23 = vmul.f32 %v5086_v35, %v6553_v56 }
 0x817   : > { %v7164_v4 = vmov %v6639_v23  ;;  %3523 = vmatmul.f32.vlgmr.msrb.gmra.mxu2 %v3522_v3  ;;  %3643 = vmatmul.f32.vlgmr.msra.gmra.mxu3 %v3518_v53 }
 0x818   : > { %v3648_v19 = vsel %vm3050_vm11, %v7164_v4, 0  ;;  %3719 = vmatpush.msrb.mxu2 %v6608_v49  ;;  %3845 = vmatpush.msra.mxu3 %v3844_v0  ;;  %4841 = vst.msk [vmem:[#allocation37 + $0x4] sm:$0x1] (%p466_p0), %vm2961_vm10, %v7164_v4 }
 0x819   : > { %v3667_v41 = vand.u32 4294901760, %v3648_v19  ;;  %v3027_v54 = vpop.xlane.xlu1 %3026 }
 0x81a   : > { %5087 = vrcp.f32 %v3027_v54 }
 0x81b   : > { %v3668_v39 = vsub.f32 %v3648_v19, %v3667_v41  ;;  %3573 = vmatmul.f32.vlgmr.msra.gmra.mxu0 %v3519_v9  ;;  %3698 = vmatmul.f32.vlgmr.msrb.gmra.mxu1 %v3667_v41 }
 0x81c   : > { %3768 = vmatpush.msra.mxu0 %v3693_v37  ;;  %3891 = vmatpush.msrb.mxu1 %v3814_v47 }
 0x81d   : > { %v3669_v8 = vand.u32 4294901760, %v3668_v39 }
 0x81f   : > { %v3670_v21 = vsub.f32 %v3668_v39, %v3669_v8  ;;  %3621 = vmatmul.f32.vlgmr.msra.gmra.mxu2 %v3518_v53  ;;  %3746 = vmatmul.f32.vlgmr.msrb.gmra.mxu3 %v3669_v8 }
 0x820   : > { %v5088_v56 = vpop.eup %5087  ;;  %3815 = vmatpush.msra.mxu2 %v3814_v47  ;;  %3939 = vmatpush.msrb.mxu3 %v3814_v47 }
 0x821   : > { %v3671_v17 = vand.u32 4294901760, %v3670_v21  ;;  %v6645_v38 = vmul.f32 %v5088_v56, %v6558_v46  ;;  %v7165_v46 = vld [vmem:[#allocation59_spill] sm:$0xff] }
 0x822   : > { %v3963_v47 = vand.u32 4294901760, %v7165_v46 }
 0x823   : > { %v3797_v49 = vsel %vm3050_vm11, %v6645_v38, 0  ;;  %3672 = vmatmul.f32.vlgmr.msrb.gmra.mxu0 %v3671_v17  ;;  %3792 = vmatmul.f32.vlgmr.msra.gmra.mxu1 %v3667_v41  ;;  %v7167_v17 = vld [vmem:[#allocation123_spill] sm:$0xff]  ;;  %4842 = vst.msk [vmem:[#allocation37 + $0x5] sm:$0x1] (%p466_p0), %vm2961_vm10, %v6645_v38 }
 0x824   : > { %v3816_v9 = vand.u32 4294901760, %v3797_v49  ;;  %3868 = vmatpush.msrb.mxu0 %v3841_v2  ;;  %v3990_v0 = vsub.f32 %v7165_v46, %v3963_v47  ;;  %v4686_v46 = vsub.f32 %v7183_v31, %v4644_v32 }
 0x826   : > { %v3817_v35 = vsub.f32 %v3797_v49, %v3816_v9  ;;  %v3991_v2 = vand.u32 4294901760, %v3990_v0  ;;  %v6654_v49 = vand.u32 4294901760, %v7167_v17 }
 0x827   : > { %3722 = vmatmul.f32.vlgmr.msrb.gmra.mxu2 %v3668_v39  ;;  %3847 = vmatmul.f32.vlgmr.msra.gmra.mxu3 %v3816_v9 }
 0x828   : > { %v3818_v37 = vand.u32 4294901760, %v3817_v35  ;;  %3917 = vmatpush.msrb.mxu2 %v3842_v7  ;;  %4040 = vmatpush.msra.mxu3 %v3963_v47  ;;  %v3992_v23 = vsub.f32 %v3990_v0, %v3991_v2  ;;  %v7166_v7 = vld [vmem:[#allocation60_spill] sm:$0xff] }
 0x82a   : > { %v3819_v53 = vsub.f32 %v3817_v35, %v3818_v37  ;;  %v3993_v19 = vand.u32 4294901760, %v3992_v23  ;;  %v7170_v23 = vld [vmem:[#allocation120_spill] sm:$0xff] }
 0x82b   : > { %3770 = vmatmul.f32.vlgmr.msra.gmra.mxu0 %v3667_v41  ;;  %3895 = vmatmul.f32.vlgmr.msrb.gmra.mxu1 %v3818_v37  ;;  %v4112_v41 = vand.u32 4294901760, %v7166_v7  ;;  %v6661_v37 = vsub.f32 %v7167_v17, %v6654_v49 }
 0x82c   : > { %v3820_v3 = vand.u32 4294901760, %v3819_v53  ;;  %3964 = vmatpush.msra.mxu0 %v3963_v47  ;;  %3994 = vmatpush.msra.mxu1 %v3993_v19  ;;  %v7169_v53 = vld [vmem:[#allocation121_spill] sm:$0xff]  ;;  %v7171_v19 = vmov %v7170_v23 }
 0x82d   : > { %v4139_v54 = vsub.f32 %v7166_v7, %v4112_v41  ;;  %v6967_v11 = vand.u32 4294901760, %v6661_v37 }
 0x82e   : > { %4088 = vmatpush.msrb.mxu1 %v3963_v47 }
 0x82f   : > { %3821 = vmatmul.f32.vlgmr.msra.gmra.mxu2 %v3820_v3  ;;  %3941 = vmatmul.f32.vlgmr.msrb.gmra.mxu3 %v3816_v9  ;;  %v4140_v39 = vand.u32 4294901760, %v4139_v54  ;;  %v6664_v3 = vand.u32 4294901760, %v7169_v53 }
 0x830   : > { %4017 = vmatpush.msra.mxu2 %v3990_v0 }
 0x831   : > { %v4141_v8 = vsub.f32 %v4139_v54, %v4140_v39  ;;  %v6681_v12 = vsub.f32 %v7169_v53, %v6664_v3 }
 0x833   : > { %3871 = vmatmul.f32.vlgmr.msrb.gmra.mxu0 %v3817_v35  ;;  %v4142_v21 = vand.u32 4294901760, %v4141_v8  ;;  %v6674_v8 = vand.u32 4294901760, %v7170_v23  ;;  %v6970_v25 = vand.u32 4294901760, %v6681_v12 }
 0x834   : > { %4066 = vmatpush.msrb.mxu0 %v3991_v2 }
 0x835   : > { %4143 = vmatpush.msrb.mxu3 %v4142_v21  ;;  %v6686_v14 = vsub.f32 %v7171_v19, %v6674_v8 }
 0x837   : > { %3919 = vmatmul.f32.vlgmr.msrb.gmra.mxu2 %v3816_v9  ;;  %v7168_v9 = vld [vmem:[#allocation122_spill] sm:$0xff] }
 0x838   : > { %4113 = vmatpush.msrb.mxu2 %v4112_v41  ;;  %v6657_v35 = vand.u32 4294901760, %v7168_v9 }
 0x83a   : > { %v6671_v2 = vsub.f32 %v7168_v9, %v6657_v35 }
 0x83c   : > { %v6969_v23 = vand.u32 4294901760, %v6671_v2 }
 0x866   : > { %v3030_v56 = vpop.xlane.xlu2 %3029 }
 0x867   : > { %5089 = vrcp.f32 %v3030_v56  ;;  %v3103_v21 = vpop.f32.mrf.mxu1 }
 0x86d   : > { %v5090_v47 = vpop.eup %5089 }
 0x86e   : > { %v6667_v0 = vmul.f32 %v5090_v47, %v6583_v44 }
 0x86f   : > { %v3077_v56 = vpop.f32.mrf.mxu0  ;;  %v3127_v47 = vpop.f32.mrf.mxu2 }
 0x870   : > { %v3946_v7 = vsel %vm3050_vm11, %v6667_v0, 0  ;;  %v3104_v10 = vadd.f32 %v3103_v21, %v3077_v56  ;;  %v4295_v56 = vsub.f32 %v6661_v37, %v6967_v11  ;;  %v4307_v11 = vsub.f32 %v6681_v12, %v6970_v25  ;;  %v3197_v27 = vpop.f32.mrf.mxu1  ;;  %4843 = vst.msk [vmem:[#allocation37 + $0x6] sm:$0x1] (%p466_p0), %vm2961_vm10, %v6667_v0 }
 0x871   : > { %v3965_v44 = vand.u32 4294901760, %v3946_v7  ;;  %v3033_v13 = vpop.xlane.xlu0 %3032  ;;  %v3151_v24 = vpop.f32.mrf.mxu3 }
 0x872   : > { %v3128_v9 = vadd.f32 %v3127_v47, %v3104_v10  ;;  %5091 = vrcp.f32 %v3033_v13  ;;  %v4301_v13 = vsub.f32 %v6671_v2, %v6969_v23  ;;  %v4296_v26 = vand.u32 4294901760, %v4295_v56 }
 0x873   : > { %v3966_v17 = vsub.f32 %v3946_v7, %v3965_v44  ;;  %3996 = vmatmul.f32.vlgmr.msra.gmra.mxu1 %v3965_v44  ;;  %v4308_v56 = vand.u32 4294901760, %v4307_v11 }
 0x874   : > { %v3152_v21 = vadd.f32 %v3151_v24, %v3128_v9  ;;  %4189 = vmatpush.msra.mxu1 %v4112_v41  ;;  %v4302_v47 = vand.u32 4294901760, %v4301_v13 }
 0x875   : > { %4020 = vmatmul.f32.vlgmr.msra.gmra.mxu2 %v3966_v17  ;;  %v3967_v10 = vand.u32 4294901760, %v3966_v17 }
 0x876   : > { %4215 = vmatpush.msra.mxu2 %v4140_v39  ;;  %v7172_v39 = vand.u32 4294901760, %v6686_v14 }
 0x877   : > { %4044 = vmatmul.f32.vlgmr.msra.gmra.mxu3 %v3967_v10  ;;  %v3175_v7 = vpop.f32.mrf.mxu0  ;;  %v3968_v19 = vsub.f32 %v3966_v17, %v3967_v10  ;;  %v7173_v10 = vld [vmem:[#allocation119_spill] sm:$0xff] }
 0x878   : > { %v5092_v24 = vpop.eup %5091  ;;  %v3176_v9 = vadd.f32 %v3175_v7, %v3152_v21  ;;  %4237 = vmatpush.msra.mxu3 %v4112_v41  ;;  %v4313_v17 = vsub.f32 %v6686_v14, %v7172_v39 }
 0x879   : > { %v6700_v28 = vmul.f32 %v5092_v24, %v6604_v55  ;;  %v3969_v29 = vand.u32 4294901760, %v3968_v19  ;;  %v6710_v55 = vand.u32 4294901760, %v7173_v10  ;;  %v7174_v19 = vld [vmem:[#allocation118_spill] sm:$0xff] }
 0x87a   : > { %v6702_v23 = vadd.f32 %v3197_v27, %v3176_v9  ;;  %v6713_v27 = vand.u32 4294901760, %v7174_v19  ;;  %v4314_v7 = vand.u32 4294901760, %v4313_v17 }
 0x87b   : > { %v4095_v21 = vsel %vm3050_vm11, %v6700_v28, 0  ;;  %3970 = vmatmul.f32.vlgmr.msra.gmra.mxu0 %v3969_v29  ;;  %4090 = vmatmul.f32.vlgmr.msrb.gmra.mxu1 %v3965_v44  ;;  %v6717_v24 = vsub.f32 %v7173_v10, %v6710_v55  ;;  %4844 = vst.msk [vmem:[#allocation37 + $0x7] sm:$0x1] (%p466_p0), %vm2961_vm10, %v6700_v28 }
 0x87c   : > { %v4114_v41 = vand.u32 4294901760, %v4095_v21  ;;  %4297 = vmatpush.msrb.mxu1 %v4296_v26  ;;  %4166 = vmatpush.msra.mxu0 %v4139_v54  ;;  %v6723_v26 = vsub.f32 %v7174_v19, %v6713_v27  ;;  %v3252_v54 = vpop.f32.mrf.mxu3  ;;  %v3300_v19 = vpop.f32.mrf.mxu1  ;;  %4884 = dma.vmem_to_hbm [thread:$0]  (%p466_p0), %s4877_s26, 128, %s4879_s19, [#allocation36], %s5716_s4, %s5716_s4, %s5717_s13  }
 0x87d   : > { %v6973_v11 = vand.u32 4294901760, %v6717_v24 }
 0x87e   : > { %v4115_v13 = vsub.f32 %v4095_v21, %v4114_v41  ;;  %4303 = vmatpush.msrb.mxu1 %v4302_v47  ;;  %v4485_v17 = vand.u32 4294901760, %v6723_v26 }
 0x87f   : > { %4145 = vmatmul.f32.vlgmr.msrb.gmra.mxu3 %v4114_v41  ;;  %v4480_v47 = vsub.f32 %v6717_v24, %v6973_v11 }
 0x880   : > { %v4116_v29 = vand.u32 4294901760, %v4115_v13  ;;  %4309 = vmatpush.msrb.mxu1 %v4308_v56  ;;  %4364 = vmatpush.msrb.mxu3 %v6654_v49  ;;  %v3276_v56 = vpop.f32.mrf.mxu0 }
 0x881   : > { %v4481_v11 = vand.u32 4294901760, %v4480_v47 }
 0x882   : > { %v3226_v9 = vpop.f32.mrf.mxu2  ;;  %v4117_v39 = vsub.f32 %v4115_v13, %v4116_v29  ;;  %4315 = vmatpush.msrb.mxu1 %v4314_v7  ;;  %4366 = vmatpush.msrb.mxu3 %v6657_v35  ;;  %v4486_v7 = vsub.f32 %v6723_v26, %v4485_v17 }
 0x883   : > { %v3253_v21 = vadd.f32 %v3252_v54, %v3226_v9  ;;  %4068 = vmatmul.f32.vlgmr.msrb.gmra.mxu0 %v3965_v44  ;;  %4193 = vmatmul.f32.vlgmr.msra.gmra.mxu1 %v4116_v29 }
 0x884   : > { %v4118_v25 = vand.u32 4294901760, %v4117_v39  ;;  %4264 = vmatpush.msrb.mxu0 %v6654_v49  ;;  %4368 = vmatpush.msrb.mxu3 %v6664_v3 }
 0x885   : > { %v3277_v10 = vadd.f32 %v3276_v56, %v3253_v21  ;;  %4424 = vmatpush.msra.mxu1 %v6654_v49  ;;  %v4487_v49 = vand.u32 4294901760, %v4486_v7  ;;  %v7180_v56 = vld [vmem:[#allocation127_spill] sm:$0xff] }
 0x886   : > { %4119 = vmatmul.f32.vlgmr.msrb.gmra.mxu2 %v4118_v25  ;;  %4266 = vmatpush.msrb.mxu0 %v6657_v35  ;;  %v4638_v7 = vand.u32 4294901760, %v7180_v56 }
 0x887   : > { %4239 = vmatmul.f32.vlgmr.msra.gmra.mxu3 %v4114_v41  ;;  %v3301_v54 = vadd.f32 %v3300_v19, %v3277_v10  ;;  %4426 = vmatpush.msra.mxu1 %v6657_v35  ;;  %v3346_v10 = vpop.f32.mrf.mxu3  ;;  %v7175_v19 = vand.u32 4294901760, %v6661_v37 }
 0x888   : > { %4370 = vmatpush.msrb.mxu3 %v6674_v8  ;;  %4268 = vmatpush.msrb.mxu0 %v6664_v3 }
 0x889   : > { %4335 = vmatpush.msrb.mxu2 %v6661_v37  ;;  %4428 = vmatpush.msra.mxu1 %v6664_v3  ;;  %v7177_v37 = vand.u32 4294901760, %v6681_v12 }
 0x88a   : > { %v3324_v44 = vpop.f32.mrf.mxu2  ;;  %4270 = vmatpush.msrb.mxu0 %v6674_v8  ;;  %4482 = vmatpush.msra.mxu3 %v4481_v11 }
 0x88b   : > { %v3325_v25 = vadd.f32 %v3324_v44, %v3301_v54  ;;  %4169 = vmatmul.f32.vlgmr.msra.gmra.mxu0 %v4115_v13  ;;  %4317 = vmatmul.f32.vlgmr.msrb.gmra.mxu1 %v6354_v40  ;;  %v7176_v13 = vand.u32 4294901760, %v6671_v2  ;;  %v4668_v54 = vsub.f32 %v7180_v56, %v4638_v7 }
 0x88c   : > { %4338 = vmatpush.msrb.mxu2 %v6671_v2  ;;  %4430 = vmatpush.msra.mxu1 %v6674_v8 }
 0x88d   : > { %v3347_v35 = vadd.f32 %v3346_v10, %v3325_v25  ;;  %4393 = vmatpush.msra.mxu0 %v7175_v19  ;;  %4488 = vmatpush.msra.mxu3 %v4487_v49  ;;  %v7181_v49 = vld [vmem:[#allocation126_spill] sm:$0xff] }
 0x88e   : > { %4217 = vmatmul.f32.vlgmr.msra.gmra.mxu2 %v4114_v41  ;;  %4535 = vmatpush.msrb.mxu1 %v6710_v55  ;;  %v4640_v44 = vand.u32 4294901760, %v7181_v49 }
 0x88f   : > { %v4603_v3 = vrot.slane %v3347_v35, 7  ;;  %4374 = vmatmul.f32.vlgmr.msrb.gmra.mxu3 %v6362_v5  ;;  %4341 = vmatpush.msrb.mxu2 %v6681_v12  ;;  %v7178_v5 = vand.u32 4294901760, %v6686_v14  ;;  %v7179_v12 = vand.u32 4294901760, %v6717_v24  ;;  %v4669_v35 = vand.u32 4294901760, %v4668_v54 }
 0x890   : > { %4397 = vmatpush.msra.mxu0 %v7176_v13  ;;  %4587 = vmatpush.msrb.mxu3 %v6710_v55  ;;  %v4674_v19 = vsub.f32 %v7181_v49, %v4640_v44 }
 0x891   : > { %v6753_v8 = vsel %vm4604_vm12, %v4603_v3, %v6702_v23  ;;  %4344 = vmatpush.msrb.mxu2 %v6686_v14  ;;  %4537 = vmatpush.msrb.mxu1 %v6713_v27  ;;  %v6778_v14 = vpop.f32.mrf.mxu3  ;;  %v7182_v3 = vld [vmem:[#allocation125_spill] sm:$0xff] }
 0x892   : > { %4401 = vmatpush.msra.mxu0 %v7177_v37  ;;  %4589 = vmatpush.msrb.mxu3 %v6713_v27  ;;  %v3425_v2 = vpop.f32.mrf.mxu2  ;;  %v4642_v13 = vand.u32 4294901760, %v7182_v3 }
 0x893   : > { %4451 = vmatpush.msra.mxu2 %v6710_v55  ;;  %4276 = vmatmul.f32.vlgmr.msrb.gmra.mxu0 %v6367_v1  ;;  %v3401_v1 = vpop.f32.mrf.mxu1 }
 0x894   : > { %4432 = vmatmul.f32.vlgmr.msra.gmra.mxu1 %v6354_v40  ;;  %4405 = vmatpush.msra.mxu0 %v7178_v5  ;;  %v4670_v5 = vsub.f32 %v4668_v54, %v4669_v35  ;;  %v4680_v30 = vsub.f32 %v7182_v3, %v4642_v13  ;;  %v4687_v3 = vand.u32 4294901760, %v4686_v46 }
 0x895   : > { %4453 = vmatpush.msra.mxu2 %v6713_v27 }
 0x896   : > { %4510 = vmatpush.msrb.mxu0 %v6717_v24  ;;  %4347 = vmatmul.f32.vlgmr.msrb.gmra.mxu2 %v6357_v48  ;;  %v3375_v48 = vpop.f32.mrf.mxu0  ;;  %v4671_v34 = vand.u32 4294901760, %v4670_v5  ;;  %v4681_v42 = vand.u32 4294901760, %v4680_v30  ;;  %v4688_v5 = vsub.f32 %v4686_v46, %v4687_v3 }
 0x897   : > { %4490 = vmatmul.f32.vlgmr.msra.gmra.mxu3 %v6210_v16  ;;  %4562 = vmatpush.msrb.mxu2 %v7179_v12  ;;  %v4675_v12 = vand.u32 4294901760, %v4674_v19  ;;  %v3402_v49 = vadd.f32 %v3401_v1, %v3375_v48 }
 0x898   : > { %4513 = vmatpush.msrb.mxu0 %v6723_v26  ;;  %4739 = vmatpush.msra.mxu3 %v4638_v7  ;;  %v4682_v53 = vsub.f32 %v4680_v30, %v4681_v42 }
 0x899   : > { %4566 = vmatpush.msrb.mxu2 %v4485_v17  ;;  %v4676_v36 = vsub.f32 %v4674_v19, %v4675_v12  ;;  %4672 = vmatpush.msra.mxu1 %v4671_v34  ;;  %v3426_v56 = vadd.f32 %v3425_v2, %v3402_v49  ;;  %v4689_v34 = vand.u32 4294901760, %v4688_v5 }
 0x89a   : > { %v3524_v55 = vpop.f32.mrf.mxu2  ;;  %4741 = vmatpush.msra.mxu3 %v4640_v44 }
 0x89b   : > { %4407 = vmatmul.f32.vlgmr.msra.gmra.mxu0 %v6354_v40  ;;  %v6782_v41 = vpop.f32.mrf.mxu1  ;;  %v3550_v40 = vpop.f32.mrf.mxu3 }
 0x89c   : > { %4541 = vmatmul.f32.vlgmr.msrb.gmra.mxu1 %v6225_v18  ;;  %4639 = vmatpush.msra.mxu0 %v4638_v7  ;;  %v3551_v50 = vadd.f32 %v3550_v40, %v3524_v55 }
 0x89d   : > { %4743 = vmatpush.msra.mxu3 %v4642_v13 }
 0x89e   : > { %4459 = vmatmul.f32.vlgmr.msra.gmra.mxu2 %v6244_v43  ;;  %v6780_v23 = vpop.f32.mrf.mxu0  ;;  %4641 = vmatpush.msra.mxu0 %v4640_v44 }
 0x89f   : > { %4591 = vmatmul.f32.vlgmr.msrb.gmra.mxu3 %v6210_v16  ;;  %4710 = vmatpush.msra.mxu2 %v4668_v54  ;;  %v4677_v54 = vand.u32 4294901760, %v4676_v36 }
 0x8a0   : > { %4643 = vmatpush.msra.mxu0 %v4642_v13  ;;  %4745 = vmatpush.msra.mxu3 %v4644_v32 }
 0x8a1   : > { %4713 = vmatpush.msra.mxu2 %v4674_v19  ;;  %4678 = vmatpush.msra.mxu1 %v4677_v54  ;;  %v4683_v19 = vand.u32 4294901760, %v4682_v53 }
 0x8a2   : > { %4645 = vmatpush.msra.mxu0 %v4644_v32 }
 0x8a3   : > { %4516 = vmatmul.f32.vlgmr.msrb.gmra.mxu0 %v6220_v20  ;;  %v6786_v43 = vpop.f32.mrf.mxu1  ;;  %v6788_v27 = vpop.f32.mrf.mxu3  ;;  %4716 = vmatpush.msra.mxu2 %v4680_v30  ;;  %v3450_v30 = vadd.f32 %v6778_v14, %v3426_v56 }
 0x8a4   : > { %v6790_v20 = vpop.f32.mrf.mxu2  ;;  %4768 = vmatpush.msrb.mxu0 %v4669_v35  ;;  %4684 = vmatpush.msra.mxu1 %v4683_v19 }
 0x8a5   : > { %4719 = vmatpush.msra.mxu2 %v4686_v46 }
 0x8a6   : > { %4568 = vmatmul.f32.vlgmr.msrb.gmra.mxu2 %v6210_v16  ;;  %v6784_v18 = vpop.f32.mrf.mxu0  ;;  %4772 = vmatpush.msrb.mxu0 %v4675_v12 }
 0x8a7   : > { %v3575_v48 = vadd.f32 %v6784_v18, %v3551_v50  ;;  %4690 = vmatpush.msra.mxu1 %v4689_v34 }
 0x8a8   : > { %4776 = vmatpush.msrb.mxu0 %v4681_v42 }
 0x8a9   : > { %4799 = vmatpush.msrb.mxu1 %v4638_v7 }
 0x8aa   : > { %4780 = vmatpush.msrb.mxu0 %v4687_v3 }
 0x8ab   : > { %v3699_v24 = vpop.f32.mrf.mxu1  ;;  %v6792_v29 = vpop.f32.mrf.mxu3  ;;  %4801 = vmatpush.msrb.mxu1 %v4640_v44 }
 0x8ac   : > { %v3723_v11 = vpop.f32.mrf.mxu2 }
 0x8ad   : > { %4803 = vmatpush.msrb.mxu1 %v4642_v13 }
 0x8ae   : > { %v3673_v16 = vpop.f32.mrf.mxu0 }
 0x8af   : > { %v3700_v57 = vadd.f32 %v3699_v24, %v3673_v16  ;;  %4805 = vmatpush.msrb.mxu1 %v4644_v32 }
 0x8b1   : > { %v3724_v60 = vadd.f32 %v3723_v11, %v3700_v57  ;;  %v3474_v57 = vadd.f32 %v6780_v23, %v3450_v30 }
 0x8b3   : > { %v6796_v9 = vpop.f32.mrf.mxu1  ;;  %v3848_v39 = vpop.f32.mrf.mxu3  ;;  %v3748_v1 = vadd.f32 %v6792_v29, %v3724_v60 }
 0x8b4   : > { %v3822_v47 = vpop.f32.mrf.mxu2 }
 0x8b5   : > { %v3849_v59 = vadd.f32 %v3848_v39, %v3822_v47 }
 0x8b6   : > { %v6794_v26 = vpop.f32.mrf.mxu0 }
 0x8b7   : > { %v3772_v53 = vadd.f32 %v6794_v26, %v3748_v1 }
 0x8bb   : > { %v6798_v21 = vpop.f32.mrf.mxu1  ;;  %v6803_v25 = vpop.f32.mrf.mxu3 }
 0x8bc   : > { %v3920_v37 = vpop.f32.mrf.mxu2 }
 0x8be   : > { %v3872_v17 = vpop.f32.mrf.mxu0 }
 0x8bf   : > { %v3873_v36 = vadd.f32 %v3872_v17, %v3849_v59 }
 0x8c1   : > { %v3897_v46 = vadd.f32 %v6798_v21, %v3873_v36 }
 0x8c3   : > { %v3921_v60 = vadd.f32 %v3920_v37, %v3897_v46 }
 0x8c5   : > { %v3943_v16 = vadd.f32 %v6803_v25, %v3921_v60 }
 0x8f0   : > { %v3997_v33 = vpop.f32.mrf.mxu1 }
 0x8f8   : > { %v3971_v10 = vpop.f32.mrf.mxu0  ;;  %v4021_v61 = vpop.f32.mrf.mxu2 }
 0x8f9   : > { %v3998_v31 = vadd.f32 %v3997_v33, %v3971_v10  ;;  %v4091_v40 = vpop.f32.mrf.mxu1  ;;  %v3599_v33 = vadd.f32 %v6786_v43, %v3575_v48 }
 0x8fa   : > { %v4045_v58 = vpop.f32.mrf.mxu3 }
 0x8fb   : > { %v4022_v2 = vadd.f32 %v4021_v61, %v3998_v31  ;;  %v3623_v50 = vadd.f32 %v6790_v20, %v3599_v33  ;;  %v3496_v61 = vadd.f32 %v6782_v41, %v3474_v57  ;;  %v3794_v20 = vadd.f32 %v6796_v9, %v3772_v53 }
 0x8fd   : > { %v4046_v42 = vadd.f32 %v4045_v58, %v4022_v2  ;;  %v3645_v23 = vadd.f32 %v6788_v27, %v3623_v50  ;;  %v4606_v24 = vrot.slane %v3496_v61, 6  ;;  %v4612_v39 = vrot.slane %v3794_v20, 4 }
 0x8ff   : > { %v4609_v11 = vrot.slane %v3645_v23, 5  ;;  %v4608_v32 = vsel %vm4607_vm13, %v4606_v24, %v6753_v8 }
 0x900   : > { %v4069_v62 = vpop.f32.mrf.mxu0 }
 0x901   : > { %v4070_v55 = vadd.f32 %v4069_v62, %v4046_v42  ;;  %v4194_v58 = vpop.f32.mrf.mxu1  ;;  %v4615_v62 = vrot.slane %v3943_v16, 3  ;;  %v4611_v9 = vsel %vm4610_vm14, %v4609_v11, %v4608_v32 }
 0x902   : > { %v4146_v59 = vpop.f32.mrf.mxu3  ;;  %v4614_v56 = vsel %vm4613_vm15, %v4612_v39, %v4611_v9 }
 0x903   : > { %v4092_v29 = vadd.f32 %v4091_v40, %v4070_v55  ;;  %v4617_v7 = vsel %vm4616_vm2, %v4615_v62, %v4614_v56 }
 0x905   : > { %v4618_v27 = vrot.slane %v4092_v29, 2 }
 0x907   : > { %v4620_v44 = vsel %vm4619_vm3, %v4618_v27, %v4617_v7 }
 0x908   : > { %v4170_v18 = vpop.f32.mrf.mxu0 }
 0x909   : > { %v4120_v14 = vpop.f32.mrf.mxu2  ;;  %v4318_v54 = vpop.f32.mrf.mxu1 }
 0x90a   : > { %v4147_v31 = vadd.f32 %v4146_v59, %v4120_v14  ;;  %v4240_v17 = vpop.f32.mrf.mxu3 }
 0x90c   : > { %v4171_v43 = vadd.f32 %v4170_v18, %v4147_v31 }
 0x90e   : > { %v4195_v26 = vadd.f32 %v4194_v58, %v4171_v43 }
 0x910   : > { %v4277_v12 = vpop.f32.mrf.mxu0 }
 0x911   : > { %v4218_v47 = vpop.f32.mrf.mxu2  ;;  %v4319_v5 = vadd.f32 %v4318_v54, %v4277_v12  ;;  %v4433_v2 = vpop.f32.mrf.mxu1 }
 0x912   : > { %v4219_v41 = vadd.f32 %v4218_v47, %v4195_v26  ;;  %v4375_v34 = vpop.f32.mrf.mxu3  ;;  %v7185_v47 = vld [vmem:[#allocation128_spill] sm:$0xff] }
 0x913   : > { %v4813_v62 = vperm.slane %v7185_v47, 0 }
 0x914   : > { %v4241_v21 = vadd.f32 %v4240_v17, %v4219_v41 }
 0x916   : > { %v4621_v49 = vrot.slane %v4241_v21, 1 }
 0x918   : > { %v6823_v1 = vsel %vm4622_vm4, %v4621_v49, %v4620_v44   ;;  %v4408_v36 = vpop.f32.mrf.mxu0 }
 0x919   : > { %v7184_v25 = vmov %v6823_v1  ;;  %v4348_v19 = vpop.f32.mrf.mxu2  ;;  %v4542_v53 = vpop.f32.mrf.mxu1 }
 0x91a   : > { %v4624_v10 = vsel %vm366_vm0, %v7184_v25, 0  ;;  %v4349_v48 = vadd.f32 %v4348_v19, %v4319_v5  ;;  %v4491_v57 = vpop.f32.mrf.mxu3  ;;  %4845 = vst.msk [vmem:[#allocation38] sm:$0xff] (%p466_p0), %vm366_vm0, %v7184_v25 }
 0x91b   : > { %v4646_v35 = vand.u32 4294901760, %v4624_v10  ;;  %4829 = vst.msk [vmem:[#allocation3] sm:$0xff] (%p466_p0), %vm366_vm0, %v7184_v25 }
 0x91c   : > { %v4376_v30 = vadd.f32 %v4375_v34, %v4349_v48 }
 0x91d   : > { %v4647_v3 = vsub.f32 %v4624_v10, %v4646_v35  ;;  %4692 = vmatmul.f32.vlgmr.msra.gmra.mxu1 %v4646_v35 }
 0x91e   : > { %v4409_v1 = vadd.f32 %v4408_v36, %v4376_v30 }
 0x91f   : > { %4722 = vmatmul.f32.vlgmr.msra.gmra.mxu2 %v4647_v3  ;;  %v4648_v8 = vand.u32 4294901760, %v4647_v3 }
 0x920   : > { %v4434_v33 = vadd.f32 %v4433_v2, %v4409_v1  ;;  %v4517_v46 = vpop.f32.mrf.mxu0  ;;  %v7186_v1 = vmov %v7184_v25 }
 0x921   : > { %4749 = vmatmul.f32.vlgmr.msra.gmra.mxu3 %v4648_v8  ;;  %v4649_v13 = vsub.f32 %v4647_v3, %v4648_v8  ;;  %v4460_v40 = vpop.f32.mrf.mxu2 }
 0x922   : > { %v4461_v50 = vadd.f32 %v4460_v40, %v4434_v33  ;;  %v4592_v14 = vpop.f32.mrf.mxu3 }
 0x923   : > { %v4650_v37 = vand.u32 4294901760, %v4649_v13 }
 0x924   : > { %v4492_v59 = vadd.f32 %v4491_v57, %v4461_v50 }
 0x925   : > { %4651 = vmatmul.f32.vlgmr.msra.gmra.mxu0 %v4650_v37  ;;  %4807 = vmatmul.f32.vlgmr.msrb.gmra.mxu1 %v4646_v35 }
 0x926   : > { %v4518_v60 = vadd.f32 %v4517_v46, %v4492_v59 }
 0x928   : > { %v4543_v23 = vadd.f32 %v4542_v53, %v4518_v60 }
 0x929   : > { %v4569_v42 = vpop.f32.mrf.mxu2 }
 0x92a   : > { %v4570_v16 = vadd.f32 %v4569_v42, %v4543_v23  ;;  %v7187_v23 = vmov %v7113_v52 }
 0x92c   : > { %v4593_v26 = vadd.f32 %v4592_v14, %v4570_v16 }
 0x92d   : > { %4782 = vmatmul.f32.vlgmr.msrb.gmra.mxu0 %v4646_v35 }
 0x99a   : > { %v4693_v31 = vpop.f32.mrf.mxu1 }
 0x9a2   : > { %v4652_v61 = vpop.f32.mrf.mxu0  ;;  %v4723_v18 = vpop.f32.mrf.mxu2 }
 0x9a3   : > { %v4694_v55 = vadd.f32 %v4693_v31, %v4652_v61  ;;  %v4808_v11 = vpop.f32.mrf.mxu1 }
 0x9a4   : > { %v4750_v20 = vpop.f32.mrf.mxu3 }
 0x9a5   : > { %v4724_v43 = vadd.f32 %v4723_v18, %v4694_v55 }
 0x9a7   : > { %v4751_v24 = vadd.f32 %v4750_v20, %v4724_v43 }
 0x9aa   : > { %v4783_v29 = vpop.f32.mrf.mxu0 }
 0x9ab   : > { %v4784_v58 = vadd.f32 %v4783_v29, %v4751_v24 }
 0x9ad   : > { %v4809_v39 = vadd.f32 %v4808_v11, %v4784_v58 }
 0x9af   : > { %v4811_v41 = vadd.f32 %v4809_v39, %v4593_v26 }
 0x9b1   : > { %v4815_v32 = vadd.f32 %v4813_v62, %v4811_v41  ;;  %v7188_v41 = vmov %v7110_v22 }
 0x9b3   : > { %4817 = vrot.lane.b32.xlu1 %v4815_v32, %s5729_s10 }
 0xa24   :  { %469 = sbr.rel (!%p466_p0) target bundleno = 185 (0xb9), region = 223 }
 0xa25   : > { %v4818_v27 = vpop.permute.xlu1 %4817 }
 0xa26   : > { %v4820_v17 = vmax.f32 %v4815_v32, %v4818_v27 }
 0xa28   : > { %4822 = vst.msk [vmem:[%s4821_s0] sm:$0xff] %vm673_vm1, %v4820_v17 }
 0xa29   :  { %4858 = dma.vmem_to_hbm [thread:$0]  %s4851_s2, 768, %s4853_s14, [#allocation6], %s5704_s3, %s5704_s3, %s5705_s25  }
 0xa2a   :  { %s5733_s3 = smov [#allocation38]  }
 0xa2b   :  { %s4890_s25 = sshll.u32 %s5733_s3, 4  ;;  %s4891_s25 = int_to_ptr.vmem [resolvable:$true] %s4890_s25 }
 0xa2c   :  { %4895 = dma.vmem_to_hbm [thread:$0]  %s4891_s25, 128, %s4893_s20, [#allocation39]  }
 0xa2d   :  { %5681 = dma.done.wait [#allocation6], 768  }
 0xa2e   :  { %5682 = vsyncadd [#allocation6], 4294966528 }
 0xa2f   :  { %5683 = dma.done.wait [#allocation36], 384  }
 0xa30   :  { %5684 = vsyncadd [#allocation36], 4294966912 }
 0xa31   :  { %5685 = dma.done.wait [#allocation39], 128  }
 0xa32   :  { %5686 = vsyncadd [#allocation39], 4294967168 }
 0xa33   :  { %4912 = vsyncpa [#allocation5], 1 }
 0xa34   :  { %4913 = vsyncpa [#allocation8], 1 }
 0xa35   :  { %4914 = vsyncpa [#allocation11], 1 }
 0xa36   :  { %4915 = vsyncpa [#allocation14], 1 }
 0xa37   :  { %4916 = vsyncpa [#allocation17], 1 }
 0xa38   :  { %4917 = vsyncpa [#allocation20], 1 }
 0xa39   :  { %4918 = vsyncpa [#allocation23], 1 }
 0xa3a   :  { %4919 = vsyncpa [#allocation26], 1 }
 0xa3b   :  { %4920 = vsyncpa [#allocation29], 1 }
 0xa3c   :  { %4921 = vsyncpa [#allocation32], 1 }
 0xa3d   :  { %4922 = vsyncpa [#allocation6], 1 }
 0xa3e   :  { %4923 = vsyncpa [#allocation36], 1 }
 0xa3f   :  { %4924 = vsyncpa [#allocation39], 1 }

</bundles_post_ra>
